<compile_context>
chip_gen: v7x
topology: tpu7x:2x2x1
jax: 0.10.0
libtpu: 0.0.40
codegen_flags: <defaults>
</compile_context>

<pallas_src>
import jax
import jax.numpy as jnp
import numpy as np
from jax.experimental import pallas as pl
from jax.experimental.pallas import tpu as pltpu


def _round_up(x, m):
    return ((x + m - 1) // m) * m


def _choose_tile_b(batch):
    """Batch tile: multiple of 8, sized to the real batch; >=2 grid steps when
    the batch is large enough (v7x megacore gets both TensorCores busy)."""
    b8 = _round_up(batch, 8)
    if b8 >= 256:
        return 128
    if b8 >= 32:
        return _round_up(b8 // 2, 8)
    return b8


# ---------------------------------------------------------------------------
# Fused 3-layer kernel: conv1+ReLU -> conv2+ReLU -> conv3+ReLU, all in VMEM.
# Activation rows are h-major: row r = h*TB + b, so a 3x3 valid conv is
#     out[h*TB + b] = sum_kh  A[(h+kh)*TB + b] @ Wband[kh]
# i.e. three sublane-aligned row-shifted MXU matmuls (shift = kh*TB, TB%8==0).
# ---------------------------------------------------------------------------
def _fused_cnn_kernel(x_ref, w1_ref, b1_ref, w2_ref, b2_ref, w3_ref, b3_ref,
                      o_ref, a1_ref, a2_ref):
    Ho1, TB, K1 = x_ref.shape
    Ho3, _, n3 = o_ref.shape
    Ho2 = Ho1 - 2

    # conv1: the three kh taps were pre-stacked along K in the wrapper -> one
    # matmul with K = 3*W*Cin (3x better MXU depth occupancy than 3 tiny dots).
    a0 = x_ref[...].reshape(Ho1 * TB, K1)
    z1 = jnp.dot(a0, w1_ref[...], preferred_element_type=jnp.float32)
    a1_ref[...] = jnp.maximum(z1 + b1_ref[...], 0.0).astype(a1_ref.dtype)

    def band_conv_relu(src_ref, w_ref, b_ref, rout):
        # acc starts from tap 0 (no zero-fill); fp32 accumulation on the MXU.
        acc = jnp.dot(src_ref[pl.ds(0, rout), :], w_ref[0],
                      preferred_element_type=jnp.float32)
        for kh in range(1, 3):                       # static unroll
            acc = acc + jnp.dot(src_ref[pl.ds(kh * TB, rout), :], w_ref[kh],
                                preferred_element_type=jnp.float32)
        return jnp.maximum(acc + b_ref[...], 0.0)    # fp32 bias + ReLU epilogue

    a2_ref[...] = band_conv_relu(a1_ref, w2_ref, b2_ref,
                                 Ho2 * TB).astype(a2_ref.dtype)
    a3 = band_conv_relu(a2_ref, w3_ref, b3_ref, Ho3 * TB)
    # (Ho3*TB, n3) -> (Ho3, TB, n3): layout no-op since TB is a multiple of 8.
    o_ref[...] = a3.reshape(Ho3, TB, n3).astype(o_ref.dtype)


# ---------------------------------------------------------------------------
# Trace-time weight prep: torch OIHW conv weight -> banded (block-Toeplitz)
# matrices, one per kernel row kh, so a conv over (w, c)-flattened lanes is a
# plain 2-D matmul.
#   band[kh][(w_out + kw)*Cin + ci, w_out*Cout + co] = w[co, ci, kh, kw]
# ---------------------------------------------------------------------------
def _banded_weight(w_oihw, w_in):
    cout, cin, KH, KW = w_oihw.shape
    w_out = w_in - KW + 1
    w = jnp.transpose(w_oihw, (2, 3, 1, 0)).astype(jnp.float32)  # (KH,KW,Cin,Cout)
    taps = []
    for kh in range(KH):
        band = jnp.zeros((w_in * cin, w_out * cout), jnp.float32)
        for kw in range(KW):
            band = band + jnp.kron(jnp.eye(w_in, w_out, k=-kw), w[kh, kw])
        taps.append(band)
    return jnp.stack(taps).astype(jnp.bfloat16)       # (KH, Win*Cin, Wout*Cout)


# ---------------------------------------------------------------------------
# Parameters (deterministic synthetic init; stand-in for orthogonal_init).
# TODO(synk): orthogonal_init is init-time only and does not affect the
#             forward-pass semantics implemented here.
# ---------------------------------------------------------------------------
def init_params(d_in, key):
    c_in = d_in[0]
    ks = jax.random.split(key, 6)

    def conv_w(k, cout, cin):
        scale = 1.0 / np.sqrt(9 * cin)
        return scale * jax.random.normal(k, (cout, cin, 3, 3), jnp.float32)

    return {
        "w1": conv_w(ks[0], 64, c_in),
        "b1": 0.01 * jax.random.normal(ks[1], (64,), jnp.float32),
        "w2": conv_w(ks[2], 128, 64),
        "b2": 0.01 * jax.random.normal(ks[3], (128,), jnp.float32),
        "w3": conv_w(ks[4], 256, 128),
        "b3": 0.01 * jax.random.normal(ks[5], (256,), jnp.float32),
    }


# ---------------------------------------------------------------------------
# CNN_Othello forward.
# ---------------------------------------------------------------------------
def _fused_forward_4d(params, x_nchw):
    B, C, H, W = x_nchw.shape
    assert H >= 8 and W >= 8, "CNN_Othello requires H, W >= 8"
    Ho1, Ho2, Ho3 = H - 2, H - 4, H - 6
    Wo1, Wo2, Wo3 = W - 2, W - 4, W - 6
    n1, n2, n3 = Wo1 * 64, Wo2 * 128, Wo3 * 256
    K1, K2, K3 = 3 * W * C, Wo1 * 64, Wo2 * 128

    tile_b = _choose_tile_b(B)
    Bp = _round_up(B, tile_b)

    # Layout glue (tiny, XLA): h-major bf16 slab with conv1's kh taps stacked
    # along lanes: x1[h, b, kh*W*C + w*C + c] = x[b, c, h+kh, w].
    xt = jnp.transpose(x_nchw, (2, 0, 3, 1)).astype(jnp.bfloat16)  # (H,B,W,C)
    x1 = jnp.stack([xt[kh:kh + Ho1] for kh in range(3)], axis=2)   # (Ho1,B,3,W,C)
    x1 = x1.reshape(Ho1, B, K1)
    if Bp != B:
        x1 = jnp.pad(x1, ((0, 0), (0, Bp - B), (0, 0)))

    # Banded bf16 weights + lane-tiled fp32 biases (VMEM-resident across grid).
    w1 = _banded_weight(params["w1"], W).reshape(K1, n1)   # kh stacked along K
    w2 = _banded_weight(params["w2"], Wo1)                 # (3, K2, n2)
    w3 = _banded_weight(params["w3"], Wo2)                 # (3, K3, n3)
    b1 = jnp.tile(params["b1"].astype(jnp.float32), Wo1).reshape(1, n1)
    b2 = jnp.tile(params["b2"].astype(jnp.float32), Wo2).reshape(1, n2)
    b3 = jnp.tile(params["b3"].astype(jnp.float32), Wo3).reshape(1, n3)

    flops = 2 * Bp * (Ho1 * K1 * n1 + 3 * Ho2 * K2 * n2 + 3 * Ho3 * K3 * n3)
    bytes_accessed = (Ho1 * Bp * K1 * 2 + Ho3 * Bp * n3 * 4
                      + (K1 * n1 + 3 * K2 * n2 + 3 * K3 * n3) * 2
                      + (n1 + n2 + n3) * 4)

    out = pl.pallas_call(
        _fused_cnn_kernel,
        out_shape=jax.ShapeDtypeStruct((Ho3, Bp, n3), jnp.float32),
        grid=(Bp // tile_b,),
        in_specs=[
            pl.BlockSpec((Ho1, tile_b, K1), lambda i: (0, i, 0)),   # input tile
            pl.BlockSpec((K1, n1), lambda i: (0, 0)),               # resident W1
            pl.BlockSpec((1, n1), lambda i: (0, 0)),
            pl.BlockSpec((3, K2, n2), lambda i: (0, 0, 0)),         # resident W2
            pl.BlockSpec((1, n2), lambda i: (0, 0)),
            pl.BlockSpec((3, K3, n3), lambda i: (0, 0, 0)),         # resident W3
            pl.BlockSpec((1, n3), lambda i: (0, 0)),
        ],
        out_specs=pl.BlockSpec((Ho3, tile_b, n3), lambda i: (0, i, 0)),
        scratch_shapes=[
            pltpu.VMEM((Ho1 * tile_b, n1), jnp.bfloat16),   # conv1 activations
            pltpu.VMEM((Ho2 * tile_b, n2), jnp.bfloat16),   # conv2 activations
        ],
        compiler_params=pltpu.CompilerParams(
            dimension_semantics=("parallel",),
            vmem_limit_bytes=32 * 1024 * 1024),
        cost_estimate=pl.CostEstimate(
            flops=flops, transcendentals=0, bytes_accessed=bytes_accessed),
    )(x1, w1, b1, w2, b2, w3, b3)

    # Channel-major flatten: matches PyTorch x.view(B, -1) on NCHW.
    y = out[:, :B, :].reshape(Ho3, B, Wo3, 256)
    return jnp.transpose(y, (1, 3, 0, 2)).reshape(B, -1)


@jax.jit
def cnn_othello_forward(params, x):
    if x.ndim == 5:                                  # (batch, seq, C, H, W)
        bl, sl = x.shape[0], x.shape[1]
        y = _fused_forward_4d(params, x.reshape(-1, *x.shape[2:]))
        return y.reshape(bl, sl, -1)
    return _fused_forward_4d(params, x)


# ---------------------------------------------------------------------------
# Pure-JAX reference (XLA convs, fp32) for correctness check.
# ---------------------------------------------------------------------------
def _reference_4d(params, x_nchw):
    def conv(h, w, b):
        y = jax.lax.conv_general_dilated(
            h, w, window_strides=(1, 1), padding="VALID",
            dimension_numbers=("NCHW", "OIHW", "NCHW"))
        return jax.nn.relu(y + b[None, :, None, None])
    h = conv(x_nchw, params["w1"], params["b1"])
    h = conv(h, params["w2"], params["b2"])
    h = conv(h, params["w3"], params["b3"])
    return h.reshape(h.shape[0], -1)


def _assert_close(a, b):
    # bf16 MXU operands with fp32 accumulation vs fp32 XLA reference.
    np.testing.assert_allclose(np.asarray(a), np.asarray(b),
                               rtol=5e-2, atol=1e-1)


if __name__ == "__main__":
    key = jax.random.PRNGKey(0)
    k_param, k_param2, k_x4, k_x5, k_x40, k_xo = jax.random.split(key, 6)

    D_in = (4, 8, 8)                                 # (C, H, W); H, W >= 8
    params = init_params(D_in, k_param)

    # 4-D path: (B, C, H, W), single small grid step.
    x4 = jax.random.normal(k_x4, (2, *D_in), jnp.float32)
    out4 = jax.block_until_ready(cnn_othello_forward(params, x4))
    assert out4.shape == (2, 256 * 2 * 2), out4.shape
    _assert_close(out4, _reference_4d(params, x4))

    # 5-D path: (batch, seq, C, H, W)
    x5 = jax.random.normal(k_x5, (2, 3, *D_in), jnp.float32)
    out5 = jax.block_until_ready(cnn_othello_forward(params, x5))
    assert out5.shape == (2, 3, 256 * 2 * 2), out5.shape
    _assert_close(out5, _reference_4d(params, x5.reshape(-1, *D_in)).reshape(2, 3, -1))

    # Larger batch: exercises >1 grid step + padded final tile.
    x40 = jax.random.normal(k_x40, (40, *D_in), jnp.float32)
    out40 = jax.block_until_ready(cnn_othello_forward(params, x40))
    assert out40.shape == (40, 256 * 2 * 2), out40.shape
    _assert_close(out40, _reference_4d(params, x40))

    # Non-square / non-8 board: exercises the general (H, W) path.
    D_in2 = (3, 10, 9)
    params2 = init_params(D_in2, k_param2)
    xo = jax.random.normal(k_xo, (5, *D_in2), jnp.float32)
    outo = jax.block_until_ready(cnn_othello_forward(params2, xo))
    assert outo.shape == (5, 256 * 4 * 3), outo.shape
    _assert_close(outo, _reference_4d(params2, xo))

    print("KERNEL_OK")
</pallas_src>

<mosaic_0001>
module attributes {stable_mosaic.version = 11 : i64} {
  func.func @_fused_cnn_kernel(%arg0: i32, %arg1: memref<6x8x96xbf16, #tpu.memory_space<vmem>>, %arg2: memref<96x384xbf16, #tpu.memory_space<vmem>>, %arg3: memref<1x384xf32, #tpu.memory_space<vmem>>, %arg4: memref<3x384x512xbf16, #tpu.memory_space<vmem>>, %arg5: memref<1x512xf32, #tpu.memory_space<vmem>>, %arg6: memref<3x512x512xbf16, #tpu.memory_space<vmem>>, %arg7: memref<1x512xf32, #tpu.memory_space<vmem>>, %arg8: memref<2x8x512xf32, #tpu.memory_space<vmem>>, %arg9: memref<48x384xbf16, #tpu.memory_space<vmem>>, %arg10: memref<32x512xbf16, #tpu.memory_space<vmem>>) attributes {dimension_semantics = [#tpu.dimension_semantics<parallel>], iteration_bounds = array<i64: 1>, scalar_prefetch = 0 : i64, scratch_operands = 2 : i64, tpu.core_type = #tpu.core_type<tc>, window_params = [{transform_indices = @transform_0, window_bounds = array<i64: 6, 8, 96>}, {pipeline_mode = #tpu.pipeline_mode<synchronous>, transform_indices = @transform_1, window_bounds = array<i64: 96, 384>}, {pipeline_mode = #tpu.pipeline_mode<synchronous>, transform_indices = @transform_2, window_bounds = array<i64: 1, 384>}, {pipeline_mode = #tpu.pipeline_mode<synchronous>, transform_indices = @transform_3, window_bounds = array<i64: 3, 384, 512>}, {pipeline_mode = #tpu.pipeline_mode<synchronous>, transform_indices = @transform_4, window_bounds = array<i64: 1, 512>}, {pipeline_mode = #tpu.pipeline_mode<synchronous>, transform_indices = @transform_5, window_bounds = array<i64: 3, 512, 512>}, {pipeline_mode = #tpu.pipeline_mode<synchronous>, transform_indices = @transform_6, window_bounds = array<i64: 1, 512>}, {transform_indices = @transform_7, window_bounds = array<i64: 2, 8, 512>}]} {
    %c0 = arith.constant 0 : index
    %c0_0 = arith.constant 0 : index
    %c0_1 = arith.constant 0 : index
    %0 = vector.load %arg1[%c0, %c0_0, %c0_1] : memref<6x8x96xbf16, #tpu.memory_space<vmem>>, vector<6x8x96xbf16>
    %1 = vector.shape_cast %0 : vector<6x8x96xbf16> to vector<48x96xbf16>
    %c0_2 = arith.constant 0 : index
    %c0_3 = arith.constant 0 : index
    %2 = vector.load %arg2[%c0_2, %c0_3] : memref<96x384xbf16, #tpu.memory_space<vmem>>, vector<96x384xbf16>
    %cst = arith.constant dense<0.000000e+00> : vector<48x384xf32>
    %3 = tpu.matmul %1, %2, %cst {dimension_numbers = #tpu.dot_dimension_numbers<[1], [0], [0], [1], [0, 0, 1, 1], [], []>} : vector<48x96xbf16>, vector<96x384xbf16>, vector<48x384xf32> -> vector<48x384xf32>
    %c0_4 = arith.constant 0 : index
    %c0_5 = arith.constant 0 : index
    %4 = vector.load %arg3[%c0_4, %c0_5] : memref<1x384xf32, #tpu.memory_space<vmem>>, vector<1x384xf32>
    %5 = vector.broadcast %4 : vector<1x384xf32> to vector<48x384xf32>
    %6 = arith.addf %3, %5 : vector<48x384xf32>
    %cst_6 = arith.constant 0.000000e+00 : f32
    %7 = vector.broadcast %cst_6 : f32 to vector<48x384xf32>
    %8 = arith.maximumf %6, %7 : vector<48x384xf32>
    %9 = arith.truncf %8 : vector<48x384xf32> to vector<48x384xbf16>
    %c0_7 = arith.constant 0 : index
    %c0_8 = arith.constant 0 : index
    %10 = vector.load %arg9[%c0_7, %c0_8] : memref<48x384xbf16, #tpu.memory_space<vmem>>, vector<48x384xbf16>
    tpu.vector_store %arg9[%c0_7, %c0_8], %9 {strides = array<i32>} : memref<48x384xbf16, #tpu.memory_space<vmem>>, vector<48x384xbf16>,
    %c0_9 = arith.constant 0 : index
    %c0_10 = arith.constant 0 : index
    %11 = vector.load %arg9[%c0_9, %c0_10] : memref<48x384xbf16, #tpu.memory_space<vmem>>, vector<32x384xbf16>
    %c0_11 = arith.constant 0 : index
    %c0_12 = arith.constant 0 : index
    %c0_13 = arith.constant 0 : index
    %12 = vector.load %arg4[%c0_11, %c0_12, %c0_13] : memref<3x384x512xbf16, #tpu.memory_space<vmem>>, vector<1x384x512xbf16>
    %13 = vector.shape_cast %12 : vector<1x384x512xbf16> to vector<384x512xbf16>
    %cst_14 = arith.constant dense<0.000000e+00> : vector<32x512xf32>
    %14 = tpu.matmul %11, %13, %cst_14 {dimension_numbers = #tpu.dot_dimension_numbers<[1], [0], [0], [1], [0, 0, 1, 1], [], []>} : vector<32x384xbf16>, vector<384x512xbf16>, vector<32x512xf32> -> vector<32x512xf32>
    %c8 = arith.constant 8 : index
    %c0_15 = arith.constant 0 : index
    %15 = vector.load %arg9[%c8, %c0_15] : memref<48x384xbf16, #tpu.memory_space<vmem>>, vector<32x384xbf16>
    %c1 = arith.constant 1 : index
    %c0_16 = arith.constant 0 : index
    %c0_17 = arith.constant 0 : index
    %16 = vector.load %arg4[%c1, %c0_16, %c0_17] : memref<3x384x512xbf16, #tpu.memory_space<vmem>>, vector<1x384x512xbf16>
    %17 = vector.shape_cast %16 : vector<1x384x512xbf16> to vector<384x512xbf16>
    %cst_18 = arith.constant dense<0.000000e+00> : vector<32x512xf32>
    %18 = tpu.matmul %15, %17, %cst_18 {dimension_numbers = #tpu.dot_dimension_numbers<[1], [0], [0], [1], [0, 0, 1, 1], [], []>} : vector<32x384xbf16>, vector<384x512xbf16>, vector<32x512xf32> -> vector<32x512xf32>
    %19 = arith.addf %14, %18 : vector<32x512xf32>
    %c16 = arith.constant 16 : index
    %c0_19 = arith.constant 0 : index
    %20 = vector.load %arg9[%c16, %c0_19] : memref<48x384xbf16, #tpu.memory_space<vmem>>, vector<32x384xbf16>
    %c2 = arith.constant 2 : index
    %c0_20 = arith.constant 0 : index
    %c0_21 = arith.constant 0 : index
    %21 = vector.load %arg4[%c2, %c0_20, %c0_21] : memref<3x384x512xbf16, #tpu.memory_space<vmem>>, vector<1x384x512xbf16>
    %22 = vector.shape_cast %21 : vector<1x384x512xbf16> to vector<384x512xbf16>
    %cst_22 = arith.constant dense<0.000000e+00> : vector<32x512xf32>
    %23 = tpu.matmul %20, %22, %cst_22 {dimension_numbers = #tpu.dot_dimension_numbers<[1], [0], [0], [1], [0, 0, 1, 1], [], []>} : vector<32x384xbf16>, vector<384x512xbf16>, vector<32x512xf32> -> vector<32x512xf32>
    %24 = arith.addf %19, %23 : vector<32x512xf32>
    %c0_23 = arith.constant 0 : index
    %c0_24 = arith.constant 0 : index
    %25 = vector.load %arg5[%c0_23, %c0_24] : memref<1x512xf32, #tpu.memory_space<vmem>>, vector<1x512xf32>
    %26 = vector.broadcast %25 : vector<1x512xf32> to vector<32x512xf32>
    %27 = arith.addf %24, %26 : vector<32x512xf32>
    %cst_25 = arith.constant 0.000000e+00 : f32
    %28 = vector.broadcast %cst_25 : f32 to vector<32x512xf32>
    %29 = arith.maximumf %27, %28 : vector<32x512xf32>
    %30 = arith.truncf %29 : vector<32x512xf32> to vector<32x512xbf16>
    %c0_26 = arith.constant 0 : index
    %c0_27 = arith.constant 0 : index
    %31 = vector.load %arg10[%c0_26, %c0_27] : memref<32x512xbf16, #tpu.memory_space<vmem>>, vector<32x512xbf16>
    tpu.vector_store %arg10[%c0_26, %c0_27], %30 {strides = array<i32>} : memref<32x512xbf16, #tpu.memory_space<vmem>>, vector<32x512xbf16>,
    %c0_28 = arith.constant 0 : index
    %c0_29 = arith.constant 0 : index
    %32 = vector.load %arg10[%c0_28, %c0_29] : memref<32x512xbf16, #tpu.memory_space<vmem>>, vector<16x512xbf16>
    %c0_30 = arith.constant 0 : index
    %c0_31 = arith.constant 0 : index
    %c0_32 = arith.constant 0 : index
    %33 = vector.load %arg6[%c0_30, %c0_31, %c0_32] : memref<3x512x512xbf16, #tpu.memory_space<vmem>>, vector<1x512x512xbf16>
    %34 = vector.shape_cast %33 : vector<1x512x512xbf16> to vector<512x512xbf16>
    %cst_33 = arith.constant dense<0.000000e+00> : vector<16x512xf32>
    %35 = tpu.matmul %32, %34, %cst_33 {dimension_numbers = #tpu.dot_dimension_numbers<[1], [0], [0], [1], [0, 0, 1, 1], [], []>} : vector<16x512xbf16>, vector<512x512xbf16>, vector<16x512xf32> -> vector<16x512xf32>
    %c8_34 = arith.constant 8 : index
    %c0_35 = arith.constant 0 : index
    %36 = vector.load %arg10[%c8_34, %c0_35] : memref<32x512xbf16, #tpu.memory_space<vmem>>, vector<16x512xbf16>
    %c1_36 = arith.constant 1 : index
    %c0_37 = arith.constant 0 : index
    %c0_38 = arith.constant 0 : index
    %37 = vector.load %arg6[%c1_36, %c0_37, %c0_38] : memref<3x512x512xbf16, #tpu.memory_space<vmem>>, vector<1x512x512xbf16>
    %38 = vector.shape_cast %37 : vector<1x512x512xbf16> to vector<512x512xbf16>
    %cst_39 = arith.constant dense<0.000000e+00> : vector<16x512xf32>
    %39 = tpu.matmul %36, %38, %cst_39 {dimension_numbers = #tpu.dot_dimension_numbers<[1], [0], [0], [1], [0, 0, 1, 1], [], []>} : vector<16x512xbf16>, vector<512x512xbf16>, vector<16x512xf32> -> vector<16x512xf32>
    %40 = arith.addf %35, %39 : vector<16x512xf32>
    %c16_40 = arith.constant 16 : index
    %c0_41 = arith.constant 0 : index
    %41 = vector.load %arg10[%c16_40, %c0_41] : memref<32x512xbf16, #tpu.memory_space<vmem>>, vector<16x512xbf16>
    %c2_42 = arith.constant 2 : index
    %c0_43 = arith.constant 0 : index
    %c0_44 = arith.constant 0 : index
    %42 = vector.load %arg6[%c2_42, %c0_43, %c0_44] : memref<3x512x512xbf16, #tpu.memory_space<vmem>>, vector<1x512x512xbf16>
    %43 = vector.shape_cast %42 : vector<1x512x512xbf16> to vector<512x512xbf16>
    %cst_45 = arith.constant dense<0.000000e+00> : vector<16x512xf32>
    %44 = tpu.matmul %41, %43, %cst_45 {dimension_numbers = #tpu.dot_dimension_numbers<[1], [0], [0], [1], [0, 0, 1, 1], [], []>} : vector<16x512xbf16>, vector<512x512xbf16>, vector<16x512xf32> -> vector<16x512xf32>
    %45 = arith.addf %40, %44 : vector<16x512xf32>
    %c0_46 = arith.constant 0 : index
    %c0_47 = arith.constant 0 : index
    %46 = vector.load %arg7[%c0_46, %c0_47] : memref<1x512xf32, #tpu.memory_space<vmem>>, vector<1x512xf32>
    %47 = vector.broadcast %46 : vector<1x512xf32> to vector<16x512xf32>
    %48 = arith.addf %45, %47 : vector<16x512xf32>
    %cst_48 = arith.constant 0.000000e+00 : f32
    %49 = vector.broadcast %cst_48 : f32 to vector<16x512xf32>
    %50 = arith.maximumf %48, %49 : vector<16x512xf32>
    %51 = vector.shape_cast %50 : vector<16x512xf32> to vector<2x8x512xf32>
    %c0_49 = arith.constant 0 : index
    %c0_50 = arith.constant 0 : index
    %c0_51 = arith.constant 0 : index
    %52 = vector.load %arg8[%c0_49, %c0_50, %c0_51] : memref<2x8x512xf32, #tpu.memory_space<vmem>>, vector<2x8x512xf32>
    tpu.vector_store %arg8[%c0_49, %c0_50, %c0_51], %51 {strides = array<i32>} : memref<2x8x512xf32, #tpu.memory_space<vmem>>, vector<2x8x512xf32>,
    return
  }
  func.func @transform_0(%arg0: i32) -> (i32, i32, i32) {
    %c0_i32 = arith.constant 0 : i32
    %c0_i32_0 = arith.constant 0 : i32
    %c0_i32_1 = arith.constant 0 : i32
    return %c0_i32, %arg0, %c0_i32_0 : i32, i32, i32
  }
  func.func @transform_1(%arg0: i32) -> (i32, i32) {
    %c0_i32 = arith.constant 0 : i32
    %c0_i32_0 = arith.constant 0 : i32
    %c0_i32_1 = arith.constant 0 : i32
    return %c0_i32, %c0_i32_0 : i32, i32
  }
  func.func @transform_2(%arg0: i32) -> (i32, i32) {
    %c0_i32 = arith.constant 0 : i32
    %c0_i32_0 = arith.constant 0 : i32
    %c0_i32_1 = arith.constant 0 : i32
    return %c0_i32, %c0_i32_0 : i32, i32
  }
  func.func @transform_3(%arg0: i32) -> (i32, i32, i32) {
    %c0_i32 = arith.constant 0 : i32
    %c0_i32_0 = arith.constant 0 : i32
    %c0_i32_1 = arith.constant 0 : i32
    %c0_i32_2 = arith.constant 0 : i32
    return %c0_i32, %c0_i32_0, %c0_i32_1 : i32, i32, i32
  }
  func.func @transform_4(%arg0: i32) -> (i32, i32) {
    %c0_i32 = arith.constant 0 : i32
    %c0_i32_0 = arith.constant 0 : i32
    %c0_i32_1 = arith.constant 0 : i32
    return %c0_i32, %c0_i32_0 : i32, i32
  }
  func.func @transform_5(%arg0: i32) -> (i32, i32, i32) {
    %c0_i32 = arith.constant 0 : i32
    %c0_i32_0 = arith.constant 0 : i32
    %c0_i32_1 = arith.constant 0 : i32
    %c0_i32_2 = arith.constant 0 : i32
    return %c0_i32, %c0_i32_0, %c0_i32_1 : i32, i32, i32
  }
  func.func @transform_6(%arg0: i32) -> (i32, i32) {
    %c0_i32 = arith.constant 0 : i32
    %c0_i32_0 = arith.constant 0 : i32
    %c0_i32_1 = arith.constant 0 : i32
    return %c0_i32, %c0_i32_0 : i32, i32
  }
  func.func @transform_7(%arg0: i32) -> (i32, i32, i32) {
    %c0_i32 = arith.constant 0 : i32
    %c0_i32_0 = arith.constant 0 : i32
    %c0_i32_1 = arith.constant 0 : i32
    return %c0_i32, %arg0, %c0_i32_0 : i32, i32, i32
  }
}

</mosaic_0001>

<bundles_post_ra>
// kernel: tile.18
= control target key start
LH: loop header
LB: loop body
LE: loop exit
PB: predicated region body
PF: predicated region fallthrough
CT: control target
= control target key end

     0   :  { %s22_s0 = inlined_call_operand.vmem [shape: f32[64], index: 0, kind: input, shape index: {}]   ;;  %s23_s1 = inlined_call_operand.vmem [shape: f32[6,64], index: 1, kind: output, shape index: {}]  }
   0x1   :  { %v4_v0 = vld [vmem:[%s22_s0] ss:$0 sm:$0xff] }
   0x2   :  { %5 = vst [vmem:[%s23_s1] sm:$0xff] %v4_v0 }

// kernel: tile.19
= control target key start
LH: loop header
LB: loop body
LE: loop exit
PB: predicated region body
PF: predicated region fallthrough
CT: control target
= control target key end

     0   :  { %vm3_vm0 = vcmask 523264   ;;  %s33_s8 = smov 64   ;;  %vm9_vm1 = vcmask 1048064   ;;  %s59_s0 = inlined_call_operand.vmem [shape: f32[6,64], index: 0, kind: input, shape index: {}]   ;;  %s60_s1 = inlined_call_operand.vmem [shape: f32[1,384], index: 1, kind: output, shape index: {}]  }
   0x1   :  { %v29_v0 = vld [vmem:[%s59_s0 + $0x1] ss:$2 sm:$0x7]   ;;  %v2_v1 = vld [vmem:[%s59_s0] ss:$2 sm:$0x7]  }
   0x2   :  { %7 = vrot.lane.b32.xlu0 %v29_v0, %s33_s8  ;;  %4 = vst.msk [vmem:[#allocation0] ss:$8 sm:$0x7] %vm3_vm0, %v2_v1  }
  0x74   :  { %v8_v2 = vpop.permute.xlu0 %7  }
  0x75   :  { %10 = vst.msk [vmem:[#allocation0] ss:$8 sm:$0x7] %vm9_vm1, %v8_v2  }
  0x7c   :  { %v14_v3 = vld [vmem:[#allocation0] sm:$0x1]  ;;  %v18_v4 = vld [vmem:[#allocation0 + $0x8] sm:$0x1]  ;;  %v23_v5 = vld [vmem:[#allocation0 + $0x10] sm:$0x1] }
  0x7d   :  { %16 = vst [vmem:[%s60_s1] sm:$0x1] %v14_v3  ;;  %30 = vst [vmem:[%s60_s1 + $0x1] sm:$0x1] %v18_v4 }
  0x7e   :  { %31 = vst [vmem:[%s60_s1 + $0x2] sm:$0x1] %v23_v5 }

// kernel: tile.23
= control target key start
LH: loop header
LB: loop body
LE: loop exit
PB: predicated region body
PF: predicated region fallthrough
CT: control target
= control target key end

     0   :  { %s22_s0 = inlined_call_operand.vmem [shape: f32[128], index: 0, kind: input, shape index: {}]   ;;  %s23_s1 = inlined_call_operand.vmem [shape: f32[4,128], index: 1, kind: output, shape index: {}]  }
   0x1   :  { %v4_v0 = vld [vmem:[%s22_s0] ss:$0 sm:$0xff] }
   0x2   :  { %5 = vst [vmem:[%s23_s1] sm:$0xf] %v4_v0 }

// kernel: cnn_othello_forward.1
= control target key start
LH: loop header
LB: loop body
LE: loop exit
PB: predicated region body
PF: predicated region fallthrough
CT: control target
= control target key end

     0   :  { %v8112_v1 = vmov 0   ;;  %v8113_v2 = vmov 0.0   ;;  %vm8114_vm0 = vmmov 0   ;;  %vm185_vm1 = vcmask 785408   ;;  %s10406_s1 = inlined_call_operand.vmem [shape: bf16[96,384], index: 1, kind: input, shape index: {}]   ;;  %s10407_s0 = inlined_call_operand.vmem [shape: bf16[6,8,96], index: 0, kind: input, shape index: {}]   ;;  %s10408_s3 = inlined_call_operand.vmem [shape: bf16[3,384,512], index: 3, kind: input, shape index: {}]   ;;  %s10409_s2 = inlined_call_operand.vmem [shape: f32[1,384], index: 2, kind: input, shape index: {}]   ;;  %s10410_s5 = inlined_call_operand.vmem [shape: bf16[3,512,512], index: 5, kind: input, shape index: {}]   ;;  %s10411_s4 = inlined_call_operand.vmem [shape: f32[1,512], index: 4, kind: input, shape index: {}]   ;;  %s10412_s6 = inlined_call_operand.vmem [shape: f32[1,512], index: 6, kind: input, shape index: {}]   ;;  %s10413_s7 = inlined_call_operand.vmem [shape: f32[2,8,512], index: 7, kind: output, shape index: {}]  }
   0x1   :  { %v7075_v0 = vld [vmem:[%s10406_s1 + $0x4] ss:$12 sps:$4 sm:$0xff]   ;;  %227 = vmatprep.mubr.bf16.mxu0 %v8112_v1  ;;  %6928 = vmatprep.subr.bf16.mxu1 %v8113_v2  ;;  %v7077_v3 = vld [vmem:[%s10406_s1] ss:$12 sps:$4 sm:$0xff]   ;;  %v7078_v4 = vld [vmem:[%s10406_s1 + $0x1c] ss:$12 sps:$4 sm:$0xff]  }
   0x2   :  { %6940 = vmatprep.mubr.msk.bf16.mxu1 %vm8114_vm0, %v8113_v2  ;;  %195 = vmatprep.subr.bf16.mxu0 %v7075_v0  ;;  %v7080_v5 = vld [vmem:[%s10406_s1 + $0x18] ss:$12 sps:$4 sm:$0xff]   ;;  %v7081_v6 = vld [vmem:[%s10406_s1 + $0x34] ss:$12 sps:$4 sm:$0xff]   ;;  %v7083_v7 = vld [vmem:[%s10406_s1 + $0x30] ss:$12 sps:$4 sm:$0xff]  }
   0x3   :  { %196 = vmatpush1.bf16.msra.mxu0 %v7077_v3  ;;  %v7084_v8 = vld [vmem:[%s10406_s1 + $0x4c] ss:$12 sps:$4 sm:$0xff]   ;;  %v7094_v9 = vld [vmem:[%s10406_s1 + $0x8] ss:$12 sps:$4 sm:$0xff]   ;;  %v7087_v12 = vld [vmem:[%s10406_s1 + $0x64] ss:$12 sps:$4 sm:$0xff]  }
   0x4   :  { %197 = vmatprep.subr.bf16.mxu0 %v7078_v4  ;;  %v7086_v10 = vld [vmem:[%s10406_s1 + $0x48] ss:$12 sps:$4 sm:$0xff]   ;;  %6929 = vmatpush3.bf16.msra.mxu1 %v7094_v9  ;;  %v7095_v11 = vld [vmem:[%s10406_s1 + $0x20] ss:$12 sps:$4 sm:$0xff]   ;;  %v7097_v14 = vld [vmem:[%s10406_s1 + $0x38] ss:$12 sps:$4 sm:$0xff]  }
   0x5   :  { %6930 = vmatprep.subr.bf16.mxu1 %v8113_v2  ;;  %v7089_v13 = vld [vmem:[%s10406_s1 + $0x60] ss:$12 sps:$4 sm:$0xff]   ;;  %v7090_v15 = vld [vmem:[%s10406_s1 + $0x7c] ss:$12 sps:$4 sm:$0xff]   ;;  %v7092_v16 = vld [vmem:[%s10406_s1 + $0x78] ss:$12 sps:$4 sm:$0xff]  }
   0x6   :  { %v7098_v17 = vld [vmem:[%s10406_s1 + $0x50] ss:$12 sps:$4 sm:$0xff]   ;;  %v7104_v18 = vld [vmem:[%s10408_s3 + $0x304] ss:$16 sps:$4 sm:$0xff]   ;;  %v7101_v23 = vld [vmem:[%s10406_s1 + $0x80] ss:$12 sps:$4 sm:$0xff]  }
   0x7   :  { %198 = vmatpush1.bf16.msra.mxu0 %v7080_v5  ;;  %v7093_v19 = vld [vmem:[%s10407_s0] sm:$0xff]   ;;  %v7100_v20 = vld [vmem:[%s10406_s1 + $0x68] ss:$12 sps:$4 sm:$0xff]   ;;  %v7107_v24 = vld [vmem:[%s10408_s3 + $0x30c] ss:$16 sps:$4 sm:$0xff]   ;;  %vm568_vm2 = vcmask 1043456  }
   0x8   :  { %199 = vmatprep.subr.bf16.mxu0 %v7081_v6  ;;  %6931 = vmatpush3.bf16.msra.mxu1 %v7095_v11  ;;  %v7102_v21 = vld [vmem:[%s10408_s3 + $0x300] ss:$16 sps:$4 sm:$0xff]   ;;  %v7110_v22 = vld [vmem:[%s10408_s3 + $0x324] ss:$16 sps:$4 sm:$0xff]   ;;  %v7096_v27 = vld [vmem:[%s10407_s0 + $0x8] sm:$0xff]  }
   0x9   :  { %6932 = vmatprep.subr.bf16.mxu1 %v8113_v2  ;;  %v7108_v25 = vld [vmem:[%s10408_s3 + $0x320] ss:$16 sps:$4 sm:$0xff]   ;;  %v7116_v26 = vld [vmem:[%s10408_s3 + $0x344] ss:$16 sps:$4 sm:$0xff]   ;;  %v7105_v28 = vld [vmem:[%s10408_s3 + $0x308] ss:$16 sps:$4 sm:$0xff]  }
   0xa   :  { %v7113_v29 = vld [vmem:[%s10408_s3 + $0x32c] ss:$16 sps:$4 sm:$0xff]   ;;  %v7114_v30 = vld [vmem:[%s10408_s3 + $0x340] ss:$16 sps:$4 sm:$0xff]   ;;  %v7122_v31 = vld [vmem:[%s10408_s3 + $0x364] ss:$16 sps:$4 sm:$0xff]  }
   0xb   :  { %200 = vmatpush1.bf16.msra.mxu0 %v7083_v7  ;;  %v7111_v32 = vld [vmem:[%s10408_s3 + $0x328] ss:$16 sps:$4 sm:$0xff]   ;;  %v7119_v33 = vld [vmem:[%s10408_s3 + $0x34c] ss:$16 sps:$4 sm:$0xff]   ;;  %v7120_v34 = vld [vmem:[%s10408_s3 + $0x360] ss:$16 sps:$4 sm:$0xff]  }
   0xc   :  { %201 = vmatprep.subr.bf16.mxu0 %v7084_v8  ;;  %6933 = vmatpush3.bf16.msra.mxu1 %v7097_v14  ;;  %v7128_v35 = vld [vmem:[%s10408_s3 + $0x384] ss:$16 sps:$4 sm:$0xff]   ;;  %v7117_v37 = vld [vmem:[%s10408_s3 + $0x348] ss:$16 sps:$4 sm:$0xff]   ;;  %v7125_v38 = vld [vmem:[%s10408_s3 + $0x36c] ss:$16 sps:$4 sm:$0xff]  }
   0xd   :  { %6934 = vmatprep.subr.bf16.mxu1 %v8113_v2  ;;  %v7099_v36 = vld [vmem:[%s10407_s0 + $0x10] sm:$0xff]   ;;  %v7123_v41 = vld [vmem:[%s10408_s3 + $0x368] ss:$16 sps:$4 sm:$0xff]   ;;  %v7131_v43 = vld [vmem:[%s10408_s3 + $0x38c] ss:$16 sps:$4 sm:$0xff]  }
   0xe   :  { %v7126_v39 = vld [vmem:[%s10408_s3 + $0x380] ss:$16 sps:$4 sm:$0xff]   ;;  %v7134_v40 = vld [vmem:[%s10408_s3 + $0x3a4] ss:$16 sps:$4 sm:$0xff]   ;;  %v7129_v45 = vld [vmem:[%s10408_s3 + $0x388] ss:$16 sps:$4 sm:$0xff]  }
   0xf   :  { %202 = vmatpush1.bf16.msra.mxu0 %v7086_v10  ;;  %v7132_v42 = vld [vmem:[%s10408_s3 + $0x3a0] ss:$16 sps:$4 sm:$0xff]   ;;  %v7140_v44 = vld [vmem:[%s10408_s3 + $0x3c4] ss:$16 sps:$4 sm:$0xff]   ;;  %v7137_v47 = vld [vmem:[%s10408_s3 + $0x3ac] ss:$16 sps:$4 sm:$0xff]  }
  0x10   :  { %203 = vmatprep.subr.bf16.mxu0 %v7087_v12  ;;  %6935 = vmatpush3.bf16.msra.mxu1 %v7098_v17  ;;  %v7138_v46 = vld [vmem:[%s10408_s3 + $0x3c0] ss:$16 sps:$4 sm:$0xff]   ;;  %v7146_v48 = vld [vmem:[%s10408_s3 + $0x3e4] ss:$16 sps:$4 sm:$0xff]   ;;  %v7135_v49 = vld [vmem:[%s10408_s3 + $0x3a8] ss:$16 sps:$4 sm:$0xff]  }
  0x11   :  { %6936 = vmatprep.subr.bf16.mxu1 %v8113_v2  ;;  %v7144_v50 = vld [vmem:[%s10408_s3 + $0x3e0] ss:$16 sps:$4 sm:$0xff]   ;;  %v7143_v51 = vld [vmem:[%s10408_s3 + $0x3cc] ss:$16 sps:$4 sm:$0xff]   ;;  %v7152_v52 = vld [vmem:[%s10408_s3 + $0x404] ss:$16 sps:$4 sm:$0xff]  }
  0x12   :  { %v7141_v53 = vld [vmem:[%s10408_s3 + $0x3c8] ss:$16 sps:$4 sm:$0xff]   ;;  %v7150_v54 = vld [vmem:[%s10408_s3 + $0x400] ss:$16 sps:$4 sm:$0xff]   ;;  %v7149_v55 = vld [vmem:[%s10408_s3 + $0x3ec] ss:$16 sps:$4 sm:$0xff]  }
  0x13   :  { %204 = vmatpush1.bf16.msra.mxu0 %v7089_v13  ;;  %v7147_v56 = vld [vmem:[%s10408_s3 + $0x3e8] ss:$16 sps:$4 sm:$0xff]   ;;  %v7155_v57 = vld [vmem:[%s10408_s3 + $0x40c] ss:$16 sps:$4 sm:$0xff]   ;;  %v7158_v59 = vld [vmem:[%s10408_s3 + $0x424] ss:$16 sps:$4 sm:$0xff]  }
  0x14   :  { %205 = vmatprep.subr.bf16.mxu0 %v7090_v15  ;;  %6937 = vmatpush3.bf16.msra.mxu1 %v7100_v20  ;;  %v7153_v58 = vld [vmem:[%s10408_s3 + $0x408] ss:$16 sps:$4 sm:$0xff]   ;;  %v7161_v60 = vld [vmem:[%s10408_s3 + $0x42c] ss:$16 sps:$4 sm:$0xff]   ;;  %v7156_v61 = vld [vmem:[%s10408_s3 + $0x420] ss:$16 sps:$4 sm:$0xff]  }
  0x15   :  { %6938 = vmatprep.subr.bf16.mxu1 %v8113_v2  ;;  %v7159_v62 = vld [vmem:[%s10408_s3 + $0x428] ss:$16 sps:$4 sm:$0xff]   ;;  %v7164_v63 = vld [vmem:[%s10408_s3 + $0x444] ss:$16 sps:$4 sm:$0xff]   ;;  %v7167_v0 = vld [vmem:[%s10408_s3 + $0x44c] ss:$16 sps:$4 sm:$0xff]  }
  0x16   :  { %v7165_v3 = vld [vmem:[%s10408_s3 + $0x448] ss:$16 sps:$4 sm:$0xff]   ;;  %v7170_v4 = vld [vmem:[%s10408_s3 + $0x464] ss:$16 sps:$4 sm:$0xff]   ;;  %v7173_v5 = vld [vmem:[%s10408_s3 + $0x46c] ss:$16 sps:$4 sm:$0xff]  }
  0x17   :  { %206 = vmatpush1.bf16.msra.mxu0 %v7092_v16  ;;  %v7168_v6 = vld [vmem:[%s10408_s3 + $0x460] ss:$16 sps:$4 sm:$0xff]   ;;  %v7171_v7 = vld [vmem:[%s10408_s3 + $0x468] ss:$16 sps:$4 sm:$0xff]   ;;  %v7176_v8 = vld [vmem:[%s10408_s3 + $0x484] ss:$16 sps:$4 sm:$0xff]  }
  0x18   :  { %1070 = vmatprep.subr.bf16.mxu0 %v7104_v18  ;;  %6939 = vmatpush3.bf16.msra.mxu1 %v7101_v23  ;;  %v7179_v9 = vld [vmem:[%s10408_s3 + $0x48c] ss:$16 sps:$4 sm:$0xff]   ;;  %v7174_v10 = vld [vmem:[%s10408_s3 + $0x480] ss:$16 sps:$4 sm:$0xff]   ;;  %v7177_v11 = vld [vmem:[%s10408_s3 + $0x488] ss:$16 sps:$4 sm:$0xff]  }
  0x19   :  { %1176 = vmatprep.subr.bf16.mxu1 %v7107_v24  ;;  %v7182_v12 = vld [vmem:[%s10408_s3 + $0x4a4] ss:$16 sps:$4 sm:$0xff]   ;;  %v7185_v13 = vld [vmem:[%s10408_s3 + $0x4ac] ss:$16 sps:$4 sm:$0xff]   ;;  %v7180_v14 = vld [vmem:[%s10408_s3 + $0x4a0] ss:$16 sps:$4 sm:$0xff]  }
  0x1a   :  { %5793 = vmatmul.mubr.msk.bf16.vlgmr.msra.gmra.mrb[0].mxu0 %vm185_vm1, %v7093_v19  ;;  %v7183_v15 = vld [vmem:[%s10408_s3 + $0x4a8] ss:$16 sps:$4 sm:$0xff]   ;;  %v7188_v16 = vld [vmem:[%s10408_s3 + $0x4c4] ss:$16 sps:$4 sm:$0xff]   ;;  %v7191_v17 = vld [vmem:[%s10408_s3 + $0x4cc] ss:$16 sps:$4 sm:$0xff]  }
  0x1b   :  { %237 = vmatprep.mubr.bf16.mxu0 %v8112_v1  ;;  %1071 = vmatpush1.bf16.msra.mxu0 %v7102_v21  ;;  %v7186_v18 = vld [vmem:[%s10408_s3 + $0x4c0] ss:$16 sps:$4 sm:$0xff]   ;;  %v7194_v20 = vld [vmem:[%s10408_s3 + $0x4e4] ss:$16 sps:$4 sm:$0xff]   ;;  %v7197_v21 = vld [vmem:[%s10408_s3 + $0x4ec] ss:$16 sps:$4 sm:$0xff]  }
  0x1c   :  { %1072 = vmatprep.subr.bf16.mxu0 %v7110_v22  ;;  %6941 = vmatmul.mubr.msk.bf16.vlgmr.msra.gmra.mrb[0].mxu1 %vm185_vm1, %v7093_v19  ;;  %v7189_v19 = vld [vmem:[%s10408_s3 + $0x4c8] ss:$16 sps:$4 sm:$0xff]   ;;  %v7192_v22 = vld [vmem:[%s10408_s3 + $0x4e0] ss:$16 sps:$4 sm:$0xff]   ;;  %v7200_v24 = vld [vmem:[%s10408_s3 + $0x504] ss:$16 sps:$4 sm:$0xff]  }
  0x1d   :  { %6944 = vmatprep.mubr.msk.bf16.mxu1 %vm8114_vm0, %v8113_v2  ;;  %1177 = vmatpush1.bf16.msra.mxu1 %v7105_v28  ;;  %v7195_v23 = vld [vmem:[%s10408_s3 + $0x4e8] ss:$16 sps:$4 sm:$0xff]  }
  0x1e   :  { %1178 = vmatprep.subr.bf16.mxu1 %v7113_v29  ;;  %v57_v29 = vld [vmem:[%s10409_s2] sm:$0x7] }
  0x1f   :  { %1073 = vmatpush1.bf16.msra.mxu0 %v7108_v25  ;;  %v7203_v25 = vld [vmem:[%s10408_s3 + $0x50c] ss:$16 sps:$4 sm:$0xff]  }
  0x20   :  { %1074 = vmatprep.subr.bf16.mxu0 %v7116_v26  ;;  %v59_v26 = vlaneseq }
  0x21   :  { %1179 = vmatpush1.bf16.msra.mxu1 %v7111_v32 }
  0x22   :  { %5794 = vmatmul.mubr.msk.bf16.gmra.mrb[4].mxu0 %vm185_vm1, %v7096_v27  ;;  %1180 = vmatprep.subr.bf16.mxu1 %v7119_v33 }
  0x23   :  { %247 = vmatprep.mubr.bf16.mxu0 %v8112_v1  ;;  %1075 = vmatpush1.bf16.msra.mxu0 %v7114_v30 }
  0x24   :  { %1076 = vmatprep.subr.bf16.mxu0 %v7122_v31  ;;  %6945 = vmatmul.mubr.msk.bf16.gmra.mrb[4].mxu1 %vm185_vm1, %v7096_v27  ;;  %v8437_v27 = vshrl.u32 %v59_v26, 7 }
  0x25   :  { %6948 = vmatprep.mubr.msk.bf16.mxu1 %vm8114_vm0, %v8113_v2  ;;  %1181 = vmatpush1.bf16.msra.mxu1 %v7117_v37  ;;  %v7162_v2 = vld [vmem:[%s10408_s3 + $0x440] ss:$16 sps:$4 sm:$0xff]  }
  0x26   :  { %1182 = vmatprep.subr.bf16.mxu1 %v7125_v38  ;;  %v8440_v28 = vsub.s32 0, %v8437_v27  ;;  %v8446_v30 = vsub.s32 1, %v8437_v27 }
  0x27   :  { %1077 = vmatpush1.bf16.msra.mxu0 %v7120_v34 }
  0x28   :  { %1078 = vmatprep.subr.bf16.mxu0 %v7128_v35  ;;  %v8449_v31 = vrot.slane %v57_v29, %v8440_v28  ;;  %v8452_v32 = vrot.slane %v57_v29, %v8446_v30 }
  0x29   :  { %1183 = vmatpush1.bf16.msra.mxu1 %v7123_v41 }
  0x2a   :  { %5795 = vmatmul.mubr.msk.bf16.gmra.mrb[8].mxu0 %vm185_vm1, %v7099_v36  ;;  %1184 = vmatprep.subr.bf16.mxu1 %v7131_v43 }
  0x2b   :  { %1079 = vmatpush1.bf16.msra.mxu0 %v7126_v39 }
  0x2c   :  { %1080 = vmatprep.subr.bf16.mxu0 %v7134_v40  ;;  %6949 = vmatmul.mubr.msk.bf16.gmra.mrb[8].mxu1 %vm185_vm1, %v7099_v36  ;;  %v8456_v36 = vsub.s32 2, %v8437_v27 }
  0x2d   :  { %1185 = vmatpush1.bf16.msra.mxu1 %v7129_v45 }
  0x2e   :  { %1186 = vmatprep.subr.bf16.mxu1 %v7137_v47 }
  0x2f   :  { %1081 = vmatpush1.bf16.msra.mxu0 %v7132_v42 }
  0x30   :  { %1082 = vmatprep.subr.bf16.mxu0 %v7140_v44  ;;  %v8462_v44 = vrot.slane %v57_v29, %v8456_v36 }
  0x31   :  { %1187 = vmatpush1.bf16.msra.mxu1 %v7135_v49 }
  0x32   :  { %1188 = vmatprep.subr.bf16.mxu1 %v7143_v51 }
  0x33   :  { %1083 = vmatpush1.bf16.msra.mxu0 %v7138_v46 }
  0x34   :  { %1084 = vmatprep.subr.bf16.mxu0 %v7146_v48 }
  0x35   :  { %1189 = vmatpush1.bf16.msra.mxu1 %v7141_v53 }
  0x36   :  { %1190 = vmatprep.subr.bf16.mxu1 %v7149_v55 }
  0x37   :  { %1085 = vmatpush1.bf16.msra.mxu0 %v7144_v50 }
  0x38   :  { %1086 = vmatprep.subr.bf16.mxu0 %v7152_v52 }
  0x39   :  { %1191 = vmatpush1.bf16.msra.mxu1 %v7147_v56 }
  0x3a   :  { %1192 = vmatprep.subr.bf16.mxu1 %v7155_v57 }
  0x3b   :  { %1087 = vmatpush1.bf16.msra.mxu0 %v7150_v54 }
  0x3c   :  { %1088 = vmatprep.subr.bf16.mxu0 %v7158_v59 }
  0x3d   :  { %1193 = vmatpush1.bf16.msra.mxu1 %v7153_v58 }
  0x3e   :  { %1194 = vmatprep.subr.bf16.mxu1 %v7161_v60 }
  0x3f   :  { %1089 = vmatpush1.bf16.msra.mxu0 %v7156_v61 }
  0x40   :  { %1090 = vmatprep.subr.bf16.mxu0 %v7164_v63 }
  0x41   :  { %1195 = vmatpush1.bf16.msra.mxu1 %v7159_v62 }
  0x42   :  { %1196 = vmatprep.subr.bf16.mxu1 %v7167_v0 }
  0x43   :  { %1091 = vmatpush1.bf16.msra.mxu0 %v7162_v2 }
  0x44   :  { %1092 = vmatprep.subr.bf16.mxu0 %v7170_v4 }
  0x45   :  { %1197 = vmatpush1.bf16.msra.mxu1 %v7165_v3 }
  0x46   :  { %1198 = vmatprep.subr.bf16.mxu1 %v7173_v5 }
  0x47   :  { %1093 = vmatpush1.bf16.msra.mxu0 %v7168_v6 }
  0x48   :  { %1094 = vmatprep.subr.bf16.mxu0 %v7176_v8 }
  0x49   :  { %1199 = vmatpush1.bf16.msra.mxu1 %v7171_v7 }
  0x4a   :  { %1200 = vmatprep.subr.bf16.mxu1 %v7179_v9 }
  0x4b   :  { %1095 = vmatpush1.bf16.msra.mxu0 %v7174_v10 }
  0x4c   :  { %1096 = vmatprep.subr.bf16.mxu0 %v7182_v12 }
  0x4d   :  { %1201 = vmatpush1.bf16.msra.mxu1 %v7177_v11 }
  0x4e   :  { %1202 = vmatprep.subr.bf16.mxu1 %v7185_v13 }
  0x4f   :  { %1097 = vmatpush1.bf16.msra.mxu0 %v7180_v14 }
  0x50   :  { %1098 = vmatprep.subr.bf16.mxu0 %v7188_v16 }
  0x51   :  { %1203 = vmatpush1.bf16.msra.mxu1 %v7183_v15 }
  0x52   :  { %1204 = vmatprep.subr.bf16.mxu1 %v7191_v17 }
  0x53   :  { %1099 = vmatpush1.bf16.msra.mxu0 %v7186_v18 }
  0x54   :  { %1100 = vmatprep.subr.bf16.mxu0 %v7194_v20 }
  0x55   :  { %1205 = vmatpush1.bf16.msra.mxu1 %v7189_v19 }
  0x56   :  { %1206 = vmatprep.subr.bf16.mxu1 %v7197_v21 }
  0x57   :  { %1101 = vmatpush1.bf16.msra.mxu0 %v7192_v22 }
  0x58   :  { %1123 = vmatprep.subr.bf16.mxu0 %v7200_v24 }
  0x59   :  { %1207 = vmatpush1.bf16.msra.mxu1 %v7195_v23  ;;  %v7198_v23 = vld [vmem:[%s10408_s3 + $0x500] ss:$16 sps:$4 sm:$0xff]  }
  0x5a   :  { %1229 = vmatprep.subr.bf16.mxu1 %v7203_v25 }
  0xed   :  { %v229_v33 = vpop.f32.mrb[0].mxu0 }
  0xee   :  { %v230_v34 = vadd.f32 %v229_v33, %v8449_v31  ;;  %v231_v35 = vpop.f32.mrb[1].mxu0  ;;  %v7201_v33 = vld [vmem:[%s10408_s3 + $0x508] ss:$16 sps:$4 sm:$0xff]  }
  0xef   :  { %v232_v37 = vadd.f32 %v231_v35, %v8452_v32  ;;  %v233_v38 = vpop.f32.mrb[2].mxu0  ;;  %v292_v50 = vpop.f32.mrb[0].mxu1 }
  0xf0   :  { %v234_v39 = vadd.f32 %v233_v38, %v8449_v31  ;;  %v235_v40 = vpop.f32.mrb[3].mxu0  ;;  %v315_v42 = vmax.f32 %v230_v34, 0.0  ;;  %v293_v53 = vadd.f32 %v292_v50, %v8462_v44  ;;  %v6942_v54 = vpop.f32.mrb[1].mxu1  ;;  %v7207_v50 = vld [vmem:[%s10408_s3 + $0x528] ss:$16 sps:$4 sm:$0xff]  }
  0xf1   :  { %v236_v41 = vadd.f32 %v235_v40, %v8452_v32  ;;  %v316_v45 = vmax.f32 %v232_v37, 0.0  ;;  %v295_v57 = vpop.f32.mrb[2].mxu1  ;;  %v7206_v40 = vld [vmem:[%s10408_s3 + $0x524] ss:$16 sps:$4 sm:$0xff]   ;;  %v7215_v54 = vld [vmem:[%s10408_s3 + $0x54c] ss:$16 sps:$4 sm:$0xff]  }
  0xf2   :  { %v318_v43 = vmax.f32 %v234_v39, 0.0  ;;  %v317_v60 = vmax.f32 %v293_v53, 0.0  ;;  %v296_v61 = vadd.f32 %v295_v57, %v8462_v44  ;;  %v6943_v62 = vpop.f32.mrb[3].mxu1  ;;  %v7212_v53 = vld [vmem:[%s10408_s3 + $0x544] ss:$16 sps:$4 sm:$0xff]  }
  0xf3   :  { %v319_v46 = vmax.f32 %v236_v41, 0.0 }
  0xf4   :  { %v8464_v47 = vpack.c.bf16 %v318_v43, %v315_v42  ;;  %v320_v3 = vmax.f32 %v296_v61, 0.0 }
  0xf5   :  { %v8466_v48 = vpack.c.bf16 %v319_v46, %v316_v45  ;;  %v239_v49 = vpop.f32.mrb[4].mxu0 }
  0xf6   :  { %342 = vst [vmem:[#allocation2] sm:$0xff] %v8464_v47  ;;  %v240_v51 = vadd.f32 %v239_v49, %v8449_v31  ;;  %v241_v52 = vpop.f32.mrb[5].mxu0  ;;  %v8478_v7 = vpack.c.bf16 %v320_v3, %v317_v60  ;;  %v7204_v49 = vld [vmem:[%s10408_s3 + $0x520] ss:$16 sps:$4 sm:$0xff]   ;;  %v7213_v60 = vld [vmem:[%s10408_s3 + $0x548] ss:$16 sps:$4 sm:$0xff]  }
  0xf7   :  { %343 = vst [vmem:[#allocation2 + $0x8] sm:$0xff] %v8466_v48  ;;  %v242_v55 = vadd.f32 %v241_v52, %v8452_v32  ;;  %v243_v56 = vpop.f32.mrb[6].mxu0  ;;  %v300_v11 = vpop.f32.mrb[4].mxu1 }
  0xf8   :  { %v244_v58 = vadd.f32 %v243_v56, %v8449_v31  ;;  %v245_v59 = vpop.f32.mrb[7].mxu0  ;;  %v321_v0 = vmax.f32 %v240_v51, 0.0  ;;  %344 = vst [vmem:[#allocation2 + $0x10] sm:$0xff] %v8478_v7  ;;  %v301_v17 = vadd.f32 %v300_v11, %v8462_v44  ;;  %v6946_v18 = vpop.f32.mrb[5].mxu1  ;;  %v7227_v11 = vld [vmem:[%s10408_s3 + $0x58c] ss:$16 sps:$4 sm:$0xff]  }
  0xf9   :  { %v246_v63 = vadd.f32 %v245_v59, %v8452_v32  ;;  %v322_v4 = vmax.f32 %v242_v55, 0.0  ;;  %v303_v24 = vpop.f32.mrb[6].mxu1  ;;  %v7210_v59 = vld [vmem:[%s10408_s3 + $0x540] ss:$16 sps:$4 sm:$0xff]  }
  0xfa   :  { %v324_v2 = vmax.f32 %v244_v58, 0.0  ;;  %v323_v34 = vmax.f32 %v301_v17, 0.0  ;;  %v6947_v35 = vpop.f32.mrb[7].mxu1  ;;  %v304_v41 = vadd.f32 %v303_v24, %v8462_v44  ;;  %v7225_v17 = vld [vmem:[%s10408_s3 + $0x588] ss:$16 sps:$4 sm:$0xff]  }
  0xfb   :  { %v325_v5 = vmax.f32 %v246_v63, 0.0  ;;  %v7236_v24 = vld [vmem:[%s10408_s3 + $0x5c4] ss:$16 sps:$4 sm:$0xff]   ;;  %v7240_v35 = vld [vmem:[%s10408_s3 + $0x5e0] ss:$16 sps:$4 sm:$0xff]  }
  0xfc   :  { %v8476_v6 = vpack.c.bf16 %v324_v2, %v321_v0  ;;  %v326_v45 = vmax.f32 %v304_v41, 0.0  ;;  %v7218_v0 = vld [vmem:[%s10408_s3 + $0x564] ss:$16 sps:$4 sm:$0xff]   ;;  %v7221_v2 = vld [vmem:[%s10408_s3 + $0x56c] ss:$16 sps:$4 sm:$0xff]  }
  0xfd   :  { %v8480_v8 = vpack.c.bf16 %v325_v5, %v322_v4  ;;  %v249_v9 = vpop.f32.mrb[8].mxu0  ;;  %v453_v10 = vld [vmem:[#allocation2] sm:$0xf0]  ;;  %v7216_v4 = vld [vmem:[%s10408_s3 + $0x560] ss:$16 sps:$4 sm:$0xff]  }
  0xfe   :  { %345 = vst [vmem:[#allocation2 + $0x18] sm:$0xff] %v8476_v6  ;;  %v250_v12 = vadd.f32 %v249_v9, %v8449_v31  ;;  %v251_v13 = vpop.f32.mrb[9].mxu0  ;;  %v454_v14 = vld [vmem:[#allocation2 + $0x8] sm:$0xf0]  ;;  %v569_v15 = vrot.slane %v453_v10, 4  ;;  %v570_v16 = vrot.slane %v8476_v6, 4  ;;  %v8516_v52 = vpack.c.bf16 %v326_v45, %v323_v34 }
  0xff   :  { %v252_v19 = vadd.f32 %v251_v13, %v8452_v32  ;;  %v253_v20 = vpop.f32.mrb[10].mxu0  ;;  %v572_v21 = vrot.slane %v454_v14, 4  ;;  %v573_v22 = vrot.slane %v8480_v8, 4  ;;  %v308_v55 = vpop.f32.mrb[8].mxu1  ;;  %v7224_v10 = vld [vmem:[%s10408_s3 + $0x584] ss:$16 sps:$4 sm:$0xff]  }
 0x100   :  { %v327_v25 = vmax.f32 %v250_v12, 0.0  ;;  %v254_v26 = vadd.f32 %v253_v20, %v8449_v31  ;;  %v255_v29 = vpop.f32.mrb[11].mxu0  ;;  %v7209_v31 = vld [vmem:[%s10408_s3 + $0x52c] ss:$16 sps:$4 sm:$0xff]   ;;  %v309_v56 = vadd.f32 %v308_v55, %v8462_v44  ;;  %v6950_v57 = vpop.f32.mrb[9].mxu1  ;;  %347 = vst [vmem:[#allocation2 + $0x28] sm:$0xff] %v8516_v52 }
 0x101   :  { %v328_v37 = vmax.f32 %v252_v19, 0.0  ;;  %v256_v38 = vadd.f32 %v255_v29, %v8452_v32  ;;  %v574_v39 = vsel %vm568_vm2, %v572_v21, %v573_v22  ;;  %v571_v32 = vsel %vm568_vm2, %v569_v15, %v570_v16  ;;  %v311_v58 = vpop.f32.mrb[10].mxu1  ;;  %v7222_v15 = vld [vmem:[%s10408_s3 + $0x580] ss:$16 sps:$4 sm:$0xff]   ;;  %v7230_v19 = vld [vmem:[%s10408_s3 + $0x5a4] ss:$16 sps:$4 sm:$0xff]  }
 0x102   :  { %v330_v42 = vmax.f32 %v254_v26, 0.0  ;;  %1102 = vmatprep.mubr.bf16.mxu0 %v574_v39  ;;  %1208 = vmatprep.mubr.bf16.mxu1 %v574_v39  ;;  %v329_v61 = vmax.f32 %v309_v56, 0.0  ;;  %v312_v62 = vadd.f32 %v311_v58, %v8462_v44  ;;  %v6951_v63 = vpop.f32.mrb[11].mxu1  ;;  %v7219_v44 = vld [vmem:[%s10408_s3 + $0x568] ss:$16 sps:$4 sm:$0xff]   ;;  %v576_v39 = vrot.slane %v8516_v52, 4 }
 0x103   :  { %v331_v43 = vmax.f32 %v256_v38, 0.0  ;;  %1103 = vmatmul.mubr.bf16.vlgmr.msra.gmra.mrb[12].mxu0 %v571_v32  ;;  %1209 = vmatmul.mubr.bf16.vlgmr.msra.gmra.mrb[12].mxu1 %v571_v32  ;;  %v7233_v20 = vld [vmem:[%s10408_s3 + $0x5ac] ss:$16 sps:$4 sm:$0xff]   ;;  %v7237_v26 = vld [vmem:[%s10408_s3 + $0x5c8] ss:$16 sps:$4 sm:$0xff]  }
 0x104   :  { %v339_v46 = vpack.c.bf16 %v330_v42, %v327_v25  ;;  %1124 = vmatpush1.bf16.msra.mxu0 %v7198_v23  ;;  %1230 = vmatpush1.bf16.msra.mxu1 %v7201_v33  ;;  %v332_v3 = vmax.f32 %v312_v62, 0.0  ;;  %v7231_v23 = vld [vmem:[%s10408_s3 + $0x5a8] ss:$16 sps:$4 sm:$0xff]   ;;  %v7234_v25 = vld [vmem:[%s10408_s3 + $0x5c0] ss:$16 sps:$4 sm:$0xff]  }
 0x105   :  { %v340_v51 = vpack.c.bf16 %v331_v43, %v328_v37  ;;  %1125 = vmatprep.subr.bf16.mxu0 %v7206_v40  ;;  %1231 = vmatprep.subr.bf16.mxu1 %v7209_v31  ;;  %v7242_v29 = vld [vmem:[%s10408_s3 + $0x5e4] ss:$16 sps:$4 sm:$0xff]   ;;  %v7245_v33 = vld [vmem:[%s10408_s3 + $0x5ec] ss:$16 sps:$4 sm:$0xff]   ;;  %v7243_v37 = vld [vmem:[%s10408_s3 + $0x5e8] ss:$16 sps:$4 sm:$0xff]  }
 0x106   :  { %348 = vst [vmem:[#allocation2 + $0x30] sm:$0xff] %v339_v46  ;;  %v341_v5 = vpack.c.bf16 %v332_v3, %v329_v61  ;;  %v455_v34 = vld [vmem:[#allocation2 + $0x10] sm:$0xf0]  ;;  %v7251_v31 = vld [vmem:[%s10408_s3 + $0xc] ss:$16 sps:$4 sm:$0xff]  }
 0x107   :  { %349 = vst [vmem:[#allocation2 + $0x38] sm:$0xff] %v340_v51  ;;  %v575_v38 = vrot.slane %v455_v34, 4  ;;  %v7248_v40 = vld [vmem:[%s10408_s3 + $0x4] ss:$16 sps:$4 sm:$0xff]   ;;  %v7246_v42 = vld [vmem:[%s10408_s3] ss:$16 sps:$4 sm:$0xff]  }
 0x108   :  { %1126 = vmatpush1.bf16.msra.mxu0 %v7204_v49  ;;  %1232 = vmatpush1.bf16.msra.mxu1 %v7207_v50  ;;  %350 = vst [vmem:[#allocation2 + $0x40] sm:$0xff] %v341_v5  ;;  %v7249_v32 = vld [vmem:[%s10408_s3 + $0x8] ss:$16 sps:$4 sm:$0xff]   ;;  %v7254_v43 = vld [vmem:[%s10408_s3 + $0x24] ss:$16 sps:$4 sm:$0xff]  }
 0x109   :  { %1127 = vmatprep.subr.bf16.mxu0 %v7212_v53  ;;  %1233 = vmatprep.subr.bf16.mxu1 %v7215_v54  ;;  %v577_v41 = vsel %vm568_vm2, %v575_v38, %v576_v39  ;;  %v7257_v45 = vld [vmem:[%s10408_s3 + $0x2c] ss:$16 sps:$4 sm:$0xff]   ;;  %v7252_v49 = vld [vmem:[%s10408_s3 + $0x20] ss:$16 sps:$4 sm:$0xff]   ;;  %v7255_v50 = vld [vmem:[%s10408_s3 + $0x28] ss:$16 sps:$4 sm:$0xff]  }
 0x10a   :  { %v7260_v51 = vld [vmem:[%s10408_s3 + $0x44] ss:$16 sps:$4 sm:$0xff]   ;;  %v7263_v53 = vld [vmem:[%s10408_s3 + $0x4c] ss:$16 sps:$4 sm:$0xff]   ;;  %v7258_v55 = vld [vmem:[%s10408_s3 + $0x40] ss:$16 sps:$4 sm:$0xff]  }
 0x10b   :  { %v7261_v56 = vld [vmem:[%s10408_s3 + $0x48] ss:$16 sps:$4 sm:$0xff]   ;;  %v7266_v58 = vld [vmem:[%s10408_s3 + $0x64] ss:$16 sps:$4 sm:$0xff]   ;;  %v7275_v63 = vld [vmem:[%s10408_s3 + $0x8c] ss:$16 sps:$4 sm:$0xff]  }
 0x10c   :  { %1128 = vmatpush1.bf16.msra.mxu0 %v7210_v59  ;;  %1234 = vmatpush1.bf16.msra.mxu1 %v7213_v60  ;;  %v7269_v59 = vld [vmem:[%s10408_s3 + $0x6c] ss:$16 sps:$4 sm:$0xff]   ;;  %v7264_v60 = vld [vmem:[%s10408_s3 + $0x60] ss:$16 sps:$4 sm:$0xff]   ;;  %v7267_v61 = vld [vmem:[%s10408_s3 + $0x68] ss:$16 sps:$4 sm:$0xff]  }
 0x10d   :  { %v459_v9 = vld [vmem:[#allocation2 + $0x30] sm:$0xf]  ;;  %1129 = vmatprep.subr.bf16.mxu0 %v7218_v0  ;;  %1235 = vmatprep.subr.bf16.mxu1 %v7221_v2  ;;  %v7272_v62 = vld [vmem:[%s10408_s3 + $0x84] ss:$16 sps:$4 sm:$0xff]   ;;  %v7281_v3 = vld [vmem:[%s10408_s3 + $0xac] ss:$16 sps:$4 sm:$0xff]  }
 0x10e   :  { %v460_v12 = vld [vmem:[#allocation2 + $0x38] sm:$0xf]  ;;  %v578_v13 = vrot.slane %v459_v9, 4  ;;  %v7270_v0 = vld [vmem:[%s10408_s3 + $0x80] ss:$16 sps:$4 sm:$0xff]  }
 0x10f   :  { %v580_v14 = vrot.slane %v460_v12, 4  ;;  %v461_v46 = vld [vmem:[#allocation2 + $0x40] sm:$0xf]  ;;  %v7278_v2 = vld [vmem:[%s10408_s3 + $0xa4] ss:$16 sps:$4 sm:$0xff]  }
 0x110   :  { %1130 = vmatpush1.bf16.msra.mxu0 %v7216_v4  ;;  %1236 = vmatpush1.bf16.msra.mxu1 %v7219_v44  ;;  %v579_v21 = vsel %vm568_vm2, %v570_v16, %v578_v13  ;;  %v7239_v16 = vld [vmem:[%s10408_s3 + $0x5cc] ss:$16 sps:$4 sm:$0xff]   ;;  %v582_v54 = vrot.slane %v461_v46, 4  ;;  %v7276_v4 = vld [vmem:[%s10408_s3 + $0xa0] ss:$16 sps:$4 sm:$0xff]  }
 0x111   :  { %v581_v18 = vsel %vm568_vm2, %v573_v22, %v580_v14  ;;  %1131 = vmatprep.subr.bf16.mxu0 %v7224_v10  ;;  %1237 = vmatprep.subr.bf16.mxu1 %v7227_v11  ;;  %v7228_v22 = vld [vmem:[%s10408_s3 + $0x5a0] ss:$16 sps:$4 sm:$0xff]   ;;  %v7279_v44 = vld [vmem:[%s10408_s3 + $0xa8] ss:$16 sps:$4 sm:$0xff]   ;;  %v7284_v5 = vld [vmem:[%s10408_s3 + $0xc4] ss:$16 sps:$4 sm:$0xff]  }
 0x112   :  { %1112 = vmatprep.mubr.bf16.mxu0 %v581_v18  ;;  %1218 = vmatprep.mubr.bf16.mxu1 %v581_v18  ;;  %v583_v57 = vsel %vm568_vm2, %v576_v39, %v582_v54  ;;  %v7287_v9 = vld [vmem:[%s10408_s3 + $0xcc] ss:$16 sps:$4 sm:$0xff]   ;;  %v7282_v10 = vld [vmem:[%s10408_s3 + $0xc0] ss:$16 sps:$4 sm:$0xff]   ;;  %v7285_v11 = vld [vmem:[%s10408_s3 + $0xc8] ss:$16 sps:$4 sm:$0xff]  }
 0x113   :  { %1113 = vmatmul.mubr.bf16.gmra.mrb[16].mxu0 %v579_v21  ;;  %1219 = vmatmul.mubr.bf16.gmra.mrb[16].mxu1 %v579_v21  ;;  %v7290_v12 = vld [vmem:[%s10408_s3 + $0xe4] ss:$16 sps:$4 sm:$0xff]   ;;  %v7293_v13 = vld [vmem:[%s10408_s3 + $0xec] ss:$16 sps:$4 sm:$0xff]   ;;  %v7288_v14 = vld [vmem:[%s10408_s3 + $0xe0] ss:$16 sps:$4 sm:$0xff]  }
 0x114   :  { %1132 = vmatpush1.bf16.msra.mxu0 %v7222_v15  ;;  %1238 = vmatpush1.bf16.msra.mxu1 %v7225_v17  ;;  %v7291_v15 = vld [vmem:[%s10408_s3 + $0xe8] ss:$16 sps:$4 sm:$0xff]   ;;  %v7296_v17 = vld [vmem:[%s10408_s3 + $0x104] ss:$16 sps:$4 sm:$0xff]   ;;  %v7299_v18 = vld [vmem:[%s10408_s3 + $0x10c] ss:$16 sps:$4 sm:$0xff]  }
 0x115   :  { %1133 = vmatprep.subr.bf16.mxu0 %v7230_v19  ;;  %1239 = vmatprep.subr.bf16.mxu1 %v7233_v20  ;;  %v7294_v19 = vld [vmem:[%s10408_s3 + $0x100] ss:$16 sps:$4 sm:$0xff]   ;;  %v7297_v20 = vld [vmem:[%s10408_s3 + $0x108] ss:$16 sps:$4 sm:$0xff]   ;;  %v7302_v21 = vld [vmem:[%s10408_s3 + $0x124] ss:$16 sps:$4 sm:$0xff]  }
 0x116   :  { %1155 = vmatprep.mubr.bf16.mxu0 %v8112_v1  ;;  %1261 = vmatprep.mubr.bf16.mxu1 %v8112_v1  ;;  %v7317_v34 = vld [vmem:[%s10408_s3 + $0x16c] ss:$16 sps:$4 sm:$0xff]   ;;  %v7320_v38 = vld [vmem:[%s10408_s3 + $0x184] ss:$16 sps:$4 sm:$0xff]   ;;  %v7336_v54 = vld [vmem:[%s10408_s3 + $0x1e0] ss:$16 sps:$4 sm:$0xff]  }
 0x117   :  { %v7323_v39 = vld [vmem:[%s10408_s3 + $0x18c] ss:$16 sps:$4 sm:$0xff]  }
 0x118   :  { %1134 = vmatpush1.bf16.msra.mxu0 %v7228_v22  ;;  %1240 = vmatpush1.bf16.msra.mxu1 %v7231_v23  ;;  %v7305_v22 = vld [vmem:[%s10408_s3 + $0x12c] ss:$16 sps:$4 sm:$0xff]   ;;  %v7300_v23 = vld [vmem:[%s10408_s3 + $0x120] ss:$16 sps:$4 sm:$0xff]  }
 0x119   :  { %1135 = vmatprep.subr.bf16.mxu0 %v7236_v24  ;;  %1241 = vmatprep.subr.bf16.mxu1 %v7239_v16  ;;  %v7303_v24 = vld [vmem:[%s10408_s3 + $0x128] ss:$16 sps:$4 sm:$0xff]   ;;  %v7308_v16 = vld [vmem:[%s10408_s3 + $0x144] ss:$16 sps:$4 sm:$0xff]   ;;  %v7335_v46 = vld [vmem:[%s10408_s3 + $0x1cc] ss:$16 sps:$4 sm:$0xff]  }
 0x11c   :  { %1136 = vmatpush1.bf16.msra.mxu0 %v7234_v25  ;;  %1242 = vmatpush1.bf16.msra.mxu1 %v7237_v26  ;;  %v7311_v25 = vld [vmem:[%s10408_s3 + $0x14c] ss:$16 sps:$4 sm:$0xff]   ;;  %v7306_v26 = vld [vmem:[%s10408_s3 + $0x140] ss:$16 sps:$4 sm:$0xff]  }
 0x11d   :  { %1137 = vmatprep.subr.bf16.mxu0 %v7242_v29  ;;  %1243 = vmatprep.subr.bf16.mxu1 %v7245_v33  ;;  %v7309_v29 = vld [vmem:[%s10408_s3 + $0x148] ss:$16 sps:$4 sm:$0xff]   ;;  %v7314_v33 = vld [vmem:[%s10408_s3 + $0x164] ss:$16 sps:$4 sm:$0xff]  }
 0x120   :  { %1138 = vmatpush1.bf16.msra.mxu0 %v7240_v35  ;;  %1244 = vmatpush1.bf16.msra.mxu1 %v7243_v37  ;;  %v7312_v35 = vld [vmem:[%s10408_s3 + $0x160] ss:$16 sps:$4 sm:$0xff]   ;;  %v7315_v37 = vld [vmem:[%s10408_s3 + $0x168] ss:$16 sps:$4 sm:$0xff]  }
 0x121   :  { %1762 = vmatprep.subr.bf16.mxu0 %v7248_v40  ;;  %1868 = vmatprep.subr.bf16.mxu1 %v7251_v31  ;;  %v7318_v40 = vld [vmem:[%s10408_s3 + $0x180] ss:$16 sps:$4 sm:$0xff]   ;;  %v7321_v31 = vld [vmem:[%s10408_s3 + $0x188] ss:$16 sps:$4 sm:$0xff]  }
 0x123   :  { %1156 = vmatmul.mubr.bf16.vlgmr.msra.gmra.mrb[12].mxu0 %v577_v41  ;;  %1262 = vmatmul.mubr.bf16.vlgmr.msra.gmra.mrb[12].mxu1 %v577_v41  ;;  %v7326_v41 = vld [vmem:[%s10408_s3 + $0x1a4] ss:$16 sps:$4 sm:$0xff]  }
 0x124   :  { %1763 = vmatpush1.bf16.msra.mxu0 %v7246_v42  ;;  %1869 = vmatpush1.bf16.msra.mxu1 %v7249_v32  ;;  %v7329_v42 = vld [vmem:[%s10408_s3 + $0x1ac] ss:$16 sps:$4 sm:$0xff]   ;;  %v7324_v32 = vld [vmem:[%s10408_s3 + $0x1a0] ss:$16 sps:$4 sm:$0xff]  }
 0x125   :  { %1764 = vmatprep.subr.bf16.mxu0 %v7254_v43  ;;  %1870 = vmatprep.subr.bf16.mxu1 %v7257_v45  ;;  %v7327_v43 = vld [vmem:[%s10408_s3 + $0x1a8] ss:$16 sps:$4 sm:$0xff]   ;;  %v7332_v45 = vld [vmem:[%s10408_s3 + $0x1c4] ss:$16 sps:$4 sm:$0xff]  }
 0x126   :  { %1165 = vmatprep.mubr.bf16.mxu0 %v8112_v1  ;;  %1271 = vmatprep.mubr.bf16.mxu1 %v8112_v1 }
 0x128   :  { %1765 = vmatpush1.bf16.msra.mxu0 %v7252_v49  ;;  %1871 = vmatpush1.bf16.msra.mxu1 %v7255_v50  ;;  %v7330_v49 = vld [vmem:[%s10408_s3 + $0x1c0] ss:$16 sps:$4 sm:$0xff]   ;;  %v7333_v50 = vld [vmem:[%s10408_s3 + $0x1c8] ss:$16 sps:$4 sm:$0xff]  }
 0x129   :  { %1766 = vmatprep.subr.bf16.mxu0 %v7260_v51  ;;  %1872 = vmatprep.subr.bf16.mxu1 %v7263_v53  ;;  %v7338_v51 = vld [vmem:[%s10408_s3 + $0x1e4] ss:$16 sps:$4 sm:$0xff]   ;;  %v7341_v53 = vld [vmem:[%s10408_s3 + $0x1ec] ss:$16 sps:$4 sm:$0xff]  }
 0x12b   :  { %1166 = vmatmul.mubr.bf16.gmra.mrb[16].mxu0 %v583_v57  ;;  %1272 = vmatmul.mubr.bf16.gmra.mrb[16].mxu1 %v583_v57  ;;  %v7347_v57 = vld [vmem:[%s10408_s3 + $0x20c] ss:$16 sps:$4 sm:$0xff]  }
 0x12c   :  { %1767 = vmatpush1.bf16.msra.mxu0 %v7258_v55  ;;  %1794 = vmatprep.mubr.bf16.mxu0 %v8466_v48  ;;  %v7339_v55 = vld [vmem:[%s10408_s3 + $0x1e8] ss:$16 sps:$4 sm:$0xff]  }
 0x12d   :  { %1873 = vmatpush1.bf16.msra.mxu1 %v7261_v56  ;;  %1900 = vmatprep.mubr.bf16.mxu1 %v8466_v48  ;;  %v7273_v48 = vld [vmem:[%s10408_s3 + $0x88] ss:$16 sps:$4 sm:$0xff]   ;;  %v7344_v56 = vld [vmem:[%s10408_s3 + $0x204] ss:$16 sps:$4 sm:$0xff]  }
 0x12e   :  { %1768 = vmatprep.subr.bf16.mxu0 %v7266_v58  ;;  %1874 = vmatprep.subr.bf16.mxu1 %v7269_v59  ;;  %v7342_v58 = vld [vmem:[%s10408_s3 + $0x200] ss:$16 sps:$4 sm:$0xff]   ;;  %v7345_v59 = vld [vmem:[%s10408_s3 + $0x208] ss:$16 sps:$4 sm:$0xff]  }
 0x130   :  { %1769 = vmatpush1.bf16.msra.mxu0 %v7264_v60  ;;  %v7350_v60 = vld [vmem:[%s10408_s3 + $0x224] ss:$16 sps:$4 sm:$0xff]  }
 0x131   :  { %1875 = vmatpush1.bf16.msra.mxu1 %v7267_v61  ;;  %1770 = vmatprep.subr.bf16.mxu0 %v7272_v62  ;;  %v7353_v61 = vld [vmem:[%s10408_s3 + $0x22c] ss:$16 sps:$4 sm:$0xff]   ;;  %v7348_v62 = vld [vmem:[%s10408_s3 + $0x220] ss:$16 sps:$4 sm:$0xff]  }
 0x132   :  { %1876 = vmatprep.subr.bf16.mxu1 %v7275_v63  ;;  %v7351_v63 = vld [vmem:[%s10408_s3 + $0x228] ss:$16 sps:$4 sm:$0xff]  }
 0x134   :  { %1771 = vmatpush1.bf16.msra.mxu0 %v7270_v0  ;;  %v7356_v0 = vld [vmem:[%s10408_s3 + $0x244] ss:$16 sps:$4 sm:$0xff]  }
 0x135   :  { %1877 = vmatpush1.bf16.msra.mxu1 %v7273_v48  ;;  %1772 = vmatprep.subr.bf16.mxu0 %v7278_v2  ;;  %v7354_v48 = vld [vmem:[%s10408_s3 + $0x240] ss:$16 sps:$4 sm:$0xff]   ;;  %v7357_v2 = vld [vmem:[%s10408_s3 + $0x248] ss:$16 sps:$4 sm:$0xff]  }
 0x136   :  { %1878 = vmatprep.subr.bf16.mxu1 %v7281_v3  ;;  %v7362_v3 = vld [vmem:[%s10408_s3 + $0x264] ss:$16 sps:$4 sm:$0xff]  }
 0x138   :  { %1773 = vmatpush1.bf16.msra.mxu0 %v7276_v4  ;;  %v7365_v4 = vld [vmem:[%s10408_s3 + $0x26c] ss:$16 sps:$4 sm:$0xff]  }
 0x139   :  { %1879 = vmatpush1.bf16.msra.mxu1 %v7279_v44  ;;  %1774 = vmatprep.subr.bf16.mxu0 %v7284_v5  ;;  %v7360_v44 = vld [vmem:[%s10408_s3 + $0x260] ss:$16 sps:$4 sm:$0xff]   ;;  %v7363_v5 = vld [vmem:[%s10408_s3 + $0x268] ss:$16 sps:$4 sm:$0xff]  }
 0x13a   :  { %1880 = vmatprep.subr.bf16.mxu1 %v7287_v9  ;;  %v7368_v9 = vld [vmem:[%s10408_s3 + $0x284] ss:$16 sps:$4 sm:$0xff]  }
 0x13c   :  { %1775 = vmatpush1.bf16.msra.mxu0 %v7282_v10  ;;  %v7366_v10 = vld [vmem:[%s10408_s3 + $0x280] ss:$16 sps:$4 sm:$0xff]  }
 0x13d   :  { %1881 = vmatpush1.bf16.msra.mxu1 %v7285_v11  ;;  %1776 = vmatprep.subr.bf16.mxu0 %v7290_v12  ;;  %v7369_v11 = vld [vmem:[%s10408_s3 + $0x288] ss:$16 sps:$4 sm:$0xff]   ;;  %v7374_v12 = vld [vmem:[%s10408_s3 + $0x2a4] ss:$16 sps:$4 sm:$0xff]  }
 0x13e   :  { %1882 = vmatprep.subr.bf16.mxu1 %v7293_v13  ;;  %v7377_v13 = vld [vmem:[%s10408_s3 + $0x2ac] ss:$16 sps:$4 sm:$0xff]  }
 0x140   :  { %1777 = vmatpush1.bf16.msra.mxu0 %v7288_v14  ;;  %v7372_v14 = vld [vmem:[%s10408_s3 + $0x2a0] ss:$16 sps:$4 sm:$0xff]  }
 0x141   :  { %1883 = vmatpush1.bf16.msra.mxu1 %v7291_v15  ;;  %1778 = vmatprep.subr.bf16.mxu0 %v7296_v17  ;;  %v7375_v15 = vld [vmem:[%s10408_s3 + $0x2a8] ss:$16 sps:$4 sm:$0xff]   ;;  %v7380_v17 = vld [vmem:[%s10408_s3 + $0x2c4] ss:$16 sps:$4 sm:$0xff]  }
 0x142   :  { %1884 = vmatprep.subr.bf16.mxu1 %v7299_v18  ;;  %v7383_v18 = vld [vmem:[%s10408_s3 + $0x2cc] ss:$16 sps:$4 sm:$0xff]  }
 0x144   :  { %1779 = vmatpush1.bf16.msra.mxu0 %v7294_v19  ;;  %v7378_v19 = vld [vmem:[%s10408_s3 + $0x2c0] ss:$16 sps:$4 sm:$0xff]  }
 0x145   :  { %1885 = vmatpush1.bf16.msra.mxu1 %v7297_v20  ;;  %1780 = vmatprep.subr.bf16.mxu0 %v7302_v21  ;;  %v7381_v20 = vld [vmem:[%s10408_s3 + $0x2c8] ss:$16 sps:$4 sm:$0xff]   ;;  %v7386_v21 = vld [vmem:[%s10408_s3 + $0x2e4] ss:$16 sps:$4 sm:$0xff]  }
 0x146   :  { %1886 = vmatprep.subr.bf16.mxu1 %v7305_v22  ;;  %v7389_v22 = vld [vmem:[%s10408_s3 + $0x2ec] ss:$16 sps:$4 sm:$0xff]  }
 0x148   :  { %1781 = vmatpush1.bf16.msra.mxu0 %v7300_v23  ;;  %v7384_v23 = vld [vmem:[%s10408_s3 + $0x2e0] ss:$16 sps:$4 sm:$0xff]  }
 0x149   :  { %1887 = vmatpush1.bf16.msra.mxu1 %v7303_v24  ;;  %1782 = vmatprep.subr.bf16.mxu0 %v7308_v16  ;;  %v7387_v24 = vld [vmem:[%s10408_s3 + $0x2e8] ss:$16 sps:$4 sm:$0xff]   ;;  %v7392_v16 = vld [vmem:[%s10408_s3 + $0x604] ss:$16 sps:$4 sm:$0xff]  }
 0x14a   :  { %1888 = vmatprep.subr.bf16.mxu1 %v7311_v25  ;;  %v7395_v25 = vld [vmem:[%s10408_s3 + $0x60c] ss:$16 sps:$4 sm:$0xff]  }
 0x14c   :  { %1783 = vmatpush1.bf16.msra.mxu0 %v7306_v26  ;;  %v7390_v26 = vld [vmem:[%s10408_s3 + $0x600] ss:$16 sps:$4 sm:$0xff]  }
 0x14d   :  { %1889 = vmatpush1.bf16.msra.mxu1 %v7309_v29  ;;  %1784 = vmatprep.subr.bf16.mxu0 %v7314_v33  ;;  %v7393_v29 = vld [vmem:[%s10408_s3 + $0x608] ss:$16 sps:$4 sm:$0xff]   ;;  %v7398_v33 = vld [vmem:[%s10408_s3 + $0x624] ss:$16 sps:$4 sm:$0xff]  }
 0x14e   :  { %1890 = vmatprep.subr.bf16.mxu1 %v7317_v34  ;;  %v7401_v34 = vld [vmem:[%s10408_s3 + $0x62c] ss:$16 sps:$4 sm:$0xff]  }
 0x150   :  { %1785 = vmatpush1.bf16.msra.mxu0 %v7312_v35  ;;  %v7396_v35 = vld [vmem:[%s10408_s3 + $0x620] ss:$16 sps:$4 sm:$0xff]  }
 0x151   :  { %1891 = vmatpush1.bf16.msra.mxu1 %v7315_v37  ;;  %1786 = vmatprep.subr.bf16.mxu0 %v7320_v38  ;;  %v7399_v37 = vld [vmem:[%s10408_s3 + $0x628] ss:$16 sps:$4 sm:$0xff]   ;;  %v7404_v38 = vld [vmem:[%s10408_s3 + $0x644] ss:$16 sps:$4 sm:$0xff]  }
 0x152   :  { %1892 = vmatprep.subr.bf16.mxu1 %v7323_v39  ;;  %v7407_v39 = vld [vmem:[%s10408_s3 + $0x64c] ss:$16 sps:$4 sm:$0xff]  }
 0x154   :  { %1787 = vmatpush1.bf16.msra.mxu0 %v7318_v40  ;;  %v7405_v40 = vld [vmem:[%s10408_s3 + $0x648] ss:$16 sps:$4 sm:$0xff]  }
 0x155   :  { %1893 = vmatpush1.bf16.msra.mxu1 %v7321_v31  ;;  %1788 = vmatprep.subr.bf16.mxu0 %v7326_v41  ;;  %v7410_v31 = vld [vmem:[%s10408_s3 + $0x664] ss:$16 sps:$4 sm:$0xff]   ;;  %v7413_v41 = vld [vmem:[%s10408_s3 + $0x66c] ss:$16 sps:$4 sm:$0xff]  }
 0x156   :  { %1894 = vmatprep.subr.bf16.mxu1 %v7329_v42  ;;  %v7408_v42 = vld [vmem:[%s10408_s3 + $0x660] ss:$16 sps:$4 sm:$0xff]  }
 0x158   :  { %1789 = vmatpush1.bf16.msra.mxu0 %v7324_v32  ;;  %v7411_v32 = vld [vmem:[%s10408_s3 + $0x668] ss:$16 sps:$4 sm:$0xff]  }
 0x159   :  { %1895 = vmatpush1.bf16.msra.mxu1 %v7327_v43  ;;  %1790 = vmatprep.subr.bf16.mxu0 %v7332_v45  ;;  %v7416_v43 = vld [vmem:[%s10408_s3 + $0x684] ss:$16 sps:$4 sm:$0xff]   ;;  %v7419_v45 = vld [vmem:[%s10408_s3 + $0x68c] ss:$16 sps:$4 sm:$0xff]  }
 0x15a   :  { %1896 = vmatprep.subr.bf16.mxu1 %v7335_v46  ;;  %v7414_v46 = vld [vmem:[%s10408_s3 + $0x680] ss:$16 sps:$4 sm:$0xff]  }
 0x15c   :  { %1791 = vmatpush1.bf16.msra.mxu0 %v7330_v49  ;;  %v7422_v49 = vld [vmem:[%s10408_s3 + $0x6a4] ss:$16 sps:$4 sm:$0xff]  }
 0x15d   :  { %1897 = vmatpush1.bf16.msra.mxu1 %v7333_v50  ;;  %1792 = vmatprep.subr.bf16.mxu0 %v7338_v51  ;;  %v7425_v50 = vld [vmem:[%s10408_s3 + $0x6ac] ss:$16 sps:$4 sm:$0xff]   ;;  %v7423_v51 = vld [vmem:[%s10408_s3 + $0x6a8] ss:$16 sps:$4 sm:$0xff]  }
 0x15e   :  { %1898 = vmatprep.subr.bf16.mxu1 %v7341_v53  ;;  %v7428_v53 = vld [vmem:[%s10408_s3 + $0x6c4] ss:$16 sps:$4 sm:$0xff]  }
 0x160   :  { %1793 = vmatpush1.bf16.msra.mxu0 %v7336_v54  ;;  %v7431_v54 = vld [vmem:[%s10408_s3 + $0x6cc] ss:$16 sps:$4 sm:$0xff]  }
 0x161   :  { %1899 = vmatpush1.bf16.msra.mxu1 %v7339_v55  ;;  %1815 = vmatprep.subr.bf16.mxu0 %v7344_v56  ;;  %v7426_v55 = vld [vmem:[%s10408_s3 + $0x6c0] ss:$16 sps:$4 sm:$0xff]   ;;  %v7429_v56 = vld [vmem:[%s10408_s3 + $0x6c8] ss:$16 sps:$4 sm:$0xff]  }
 0x162   :  { %1921 = vmatprep.subr.bf16.mxu1 %v7347_v57  ;;  %v7434_v57 = vld [vmem:[%s10408_s3 + $0x6e4] ss:$16 sps:$4 sm:$0xff]  }
 0x163   :  { %1795 = vmatmul.mubr.bf16.vlgmr.msra.gmra.mrb[12].mxu0 %v8464_v47 }
 0x164   :  { %1901 = vmatmul.mubr.bf16.vlgmr.msra.gmra.mrb[12].mxu1 %v8464_v47  ;;  %1804 = vmatprep.mubr.bf16.mxu0 %v8480_v8  ;;  %v7359_v47 = vld [vmem:[%s10408_s3 + $0x24c] ss:$16 sps:$4 sm:$0xff]  }
 0x165   :  { %1816 = vmatpush1.bf16.msra.mxu0 %v7342_v58  ;;  %1910 = vmatprep.mubr.bf16.mxu1 %v8480_v8  ;;  %v7437_v58 = vld [vmem:[%s10408_s3 + $0x6ec] ss:$16 sps:$4 sm:$0xff]  }
 0x166   :  { %1922 = vmatpush1.bf16.msra.mxu1 %v7345_v59  ;;  %1817 = vmatprep.subr.bf16.mxu0 %v7350_v60  ;;  %v7432_v59 = vld [vmem:[%s10408_s3 + $0x6e0] ss:$16 sps:$4 sm:$0xff]   ;;  %v7435_v60 = vld [vmem:[%s10408_s3 + $0x6e8] ss:$16 sps:$4 sm:$0xff]  }
 0x167   :  { %1923 = vmatprep.subr.bf16.mxu1 %v7353_v61  ;;  %v7440_v61 = vld [vmem:[%s10408_s3 + $0x704] ss:$16 sps:$4 sm:$0xff]  }
 0x169   :  { %1818 = vmatpush1.bf16.msra.mxu0 %v7348_v62  ;;  %v7443_v62 = vld [vmem:[%s10408_s3 + $0x70c] ss:$16 sps:$4 sm:$0xff]  }
 0x16a   :  { %1924 = vmatpush1.bf16.msra.mxu1 %v7351_v63  ;;  %1819 = vmatprep.subr.bf16.mxu0 %v7356_v0  ;;  %v7438_v63 = vld [vmem:[%s10408_s3 + $0x700] ss:$16 sps:$4 sm:$0xff]   ;;  %v7441_v0 = vld [vmem:[%s10408_s3 + $0x708] ss:$16 sps:$4 sm:$0xff]  }
 0x16b   :  { %1805 = vmatmul.mubr.bf16.gmra.mrb[16].mxu0 %v8476_v6  ;;  %1925 = vmatprep.subr.bf16.mxu1 %v7359_v47  ;;  %v7446_v47 = vld [vmem:[%s10408_s3 + $0x724] ss:$16 sps:$4 sm:$0xff]  }
 0x16c   :  { %1911 = vmatmul.mubr.bf16.gmra.mrb[16].mxu1 %v8476_v6  ;;  %1847 = vmatprep.mubr.bf16.mxu0 %v8112_v1  ;;  %v7371_v6 = vld [vmem:[%s10408_s3 + $0x28c] ss:$16 sps:$4 sm:$0xff]  }
 0x16d   :  { %1820 = vmatpush1.bf16.msra.mxu0 %v7354_v48  ;;  %1953 = vmatprep.mubr.bf16.mxu1 %v8112_v1  ;;  %v7449_v48 = vld [vmem:[%s10408_s3 + $0x72c] ss:$16 sps:$4 sm:$0xff]  }
 0x16e   :  { %1926 = vmatpush1.bf16.msra.mxu1 %v7357_v2  ;;  %1821 = vmatprep.subr.bf16.mxu0 %v7362_v3  ;;  %v7444_v2 = vld [vmem:[%s10408_s3 + $0x720] ss:$16 sps:$4 sm:$0xff]   ;;  %v7447_v3 = vld [vmem:[%s10408_s3 + $0x728] ss:$16 sps:$4 sm:$0xff]  }
 0x16f   :  { %1927 = vmatprep.subr.bf16.mxu1 %v7365_v4  ;;  %v7452_v4 = vld [vmem:[%s10408_s3 + $0x744] ss:$16 sps:$4 sm:$0xff]  }
 0x171   :  { %1822 = vmatpush1.bf16.msra.mxu0 %v7360_v44  ;;  %v7455_v44 = vld [vmem:[%s10408_s3 + $0x74c] ss:$16 sps:$4 sm:$0xff]  }
 0x172   :  { %1928 = vmatpush1.bf16.msra.mxu1 %v7363_v5  ;;  %1823 = vmatprep.subr.bf16.mxu0 %v7368_v9  ;;  %v7450_v5 = vld [vmem:[%s10408_s3 + $0x740] ss:$16 sps:$4 sm:$0xff]   ;;  %v7453_v9 = vld [vmem:[%s10408_s3 + $0x748] ss:$16 sps:$4 sm:$0xff]  }
 0x173   :  { %1929 = vmatprep.subr.bf16.mxu1 %v7371_v6  ;;  %v7458_v6 = vld [vmem:[%s10408_s3 + $0x764] ss:$16 sps:$4 sm:$0xff]  }
 0x175   :  { %1824 = vmatpush1.bf16.msra.mxu0 %v7366_v10  ;;  %v7461_v10 = vld [vmem:[%s10408_s3 + $0x76c] ss:$16 sps:$4 sm:$0xff]  }
 0x176   :  { %1930 = vmatpush1.bf16.msra.mxu1 %v7369_v11  ;;  %1825 = vmatprep.subr.bf16.mxu0 %v7374_v12  ;;  %v7456_v11 = vld [vmem:[%s10408_s3 + $0x760] ss:$16 sps:$4 sm:$0xff]   ;;  %v7459_v12 = vld [vmem:[%s10408_s3 + $0x768] ss:$16 sps:$4 sm:$0xff]  }
 0x177   :  { %1931 = vmatprep.subr.bf16.mxu1 %v7377_v13  ;;  %v7464_v13 = vld [vmem:[%s10408_s3 + $0x784] ss:$16 sps:$4 sm:$0xff]  }
 0x179   :  { %1826 = vmatpush1.bf16.msra.mxu0 %v7372_v14  ;;  %v7467_v14 = vld [vmem:[%s10408_s3 + $0x78c] ss:$16 sps:$4 sm:$0xff]  }
 0x17a   :  { %1932 = vmatpush1.bf16.msra.mxu1 %v7375_v15  ;;  %1827 = vmatprep.subr.bf16.mxu0 %v7380_v17  ;;  %v7462_v15 = vld [vmem:[%s10408_s3 + $0x780] ss:$16 sps:$4 sm:$0xff]   ;;  %v7465_v17 = vld [vmem:[%s10408_s3 + $0x788] ss:$16 sps:$4 sm:$0xff]  }
 0x17b   :  { %1933 = vmatprep.subr.bf16.mxu1 %v7383_v18  ;;  %v7470_v18 = vld [vmem:[%s10408_s3 + $0x7a4] ss:$16 sps:$4 sm:$0xff]  }
 0x17d   :  { %1828 = vmatpush1.bf16.msra.mxu0 %v7378_v19  ;;  %v7473_v19 = vld [vmem:[%s10408_s3 + $0x7ac] ss:$16 sps:$4 sm:$0xff]  }
 0x17e   :  { %1934 = vmatpush1.bf16.msra.mxu1 %v7381_v20  ;;  %1829 = vmatprep.subr.bf16.mxu0 %v7386_v21  ;;  %v7468_v20 = vld [vmem:[%s10408_s3 + $0x7a0] ss:$16 sps:$4 sm:$0xff]   ;;  %v7471_v21 = vld [vmem:[%s10408_s3 + $0x7a8] ss:$16 sps:$4 sm:$0xff]  }
 0x17f   :  { %1935 = vmatprep.subr.bf16.mxu1 %v7389_v22  ;;  %v7476_v22 = vld [vmem:[%s10408_s3 + $0x7c4] ss:$16 sps:$4 sm:$0xff]  }
 0x181   :  { %1830 = vmatpush1.bf16.msra.mxu0 %v7384_v23  ;;  %v7479_v23 = vld [vmem:[%s10408_s3 + $0x7cc] ss:$16 sps:$4 sm:$0xff]  }
 0x182   :  { %1936 = vmatpush1.bf16.msra.mxu1 %v7387_v24  ;;  %2554 = vmatprep.subr.bf16.mxu0 %v7392_v16  ;;  %v7474_v24 = vld [vmem:[%s10408_s3 + $0x7c0] ss:$16 sps:$4 sm:$0xff]   ;;  %v7477_v16 = vld [vmem:[%s10408_s3 + $0x7c8] ss:$16 sps:$4 sm:$0xff]  }
 0x183   :  { %2660 = vmatprep.subr.bf16.mxu1 %v7395_v25  ;;  %v7482_v25 = vld [vmem:[%s10408_s3 + $0x7e4] ss:$16 sps:$4 sm:$0xff]  }
 0x184   :  { %1848 = vmatmul.mubr.bf16.vlgmr.msra.gmra.mrb[12].mxu0 %v8478_v7 }
 0x185   :  { %1954 = vmatmul.mubr.bf16.vlgmr.msra.gmra.mrb[12].mxu1 %v8478_v7  ;;  %2555 = vmatpush1.bf16.msra.mxu0 %v7390_v26  ;;  %v7402_v7 = vld [vmem:[%s10408_s3 + $0x640] ss:$16 sps:$4 sm:$0xff]   ;;  %v7485_v26 = vld [vmem:[%s10408_s3 + $0x7ec] ss:$16 sps:$4 sm:$0xff]  }
 0x186   :  { %2661 = vmatpush1.bf16.msra.mxu1 %v7393_v29  ;;  %2556 = vmatprep.subr.bf16.mxu0 %v7398_v33  ;;  %v7480_v29 = vld [vmem:[%s10408_s3 + $0x7e0] ss:$16 sps:$4 sm:$0xff]   ;;  %v7483_v33 = vld [vmem:[%s10408_s3 + $0x7e8] ss:$16 sps:$4 sm:$0xff]  }
 0x187   :  { %2662 = vmatprep.subr.bf16.mxu1 %v7401_v34  ;;  %1857 = vmatprep.mubr.bf16.mxu0 %v8112_v1  ;;  %v7488_v34 = vld [vmem:[%s10408_s3 + $0x804] ss:$16 sps:$4 sm:$0xff]  }
 0x188   :  { %1963 = vmatprep.mubr.bf16.mxu1 %v8112_v1 }
 0x189   :  { %2557 = vmatpush1.bf16.msra.mxu0 %v7396_v35  ;;  %v7491_v35 = vld [vmem:[%s10408_s3 + $0x80c] ss:$16 sps:$4 sm:$0xff]  }
 0x18a   :  { %2663 = vmatpush1.bf16.msra.mxu1 %v7399_v37  ;;  %2558 = vmatprep.subr.bf16.mxu0 %v7404_v38  ;;  %v7486_v37 = vld [vmem:[%s10408_s3 + $0x800] ss:$16 sps:$4 sm:$0xff]   ;;  %v7489_v38 = vld [vmem:[%s10408_s3 + $0x808] ss:$16 sps:$4 sm:$0xff]  }
 0x18b   :  { %2664 = vmatprep.subr.bf16.mxu1 %v7407_v39  ;;  %v7494_v39 = vld [vmem:[%s10408_s3 + $0x824] ss:$16 sps:$4 sm:$0xff]  }
 0x18c   :  { %1858 = vmatmul.mubr.bf16.gmra.mrb[16].mxu0 %v8516_v52 }
 0x18d   :  { %1964 = vmatmul.mubr.bf16.gmra.mrb[16].mxu1 %v8516_v52  ;;  %2559 = vmatpush1.bf16.msra.mxu0 %v7402_v7  ;;  %v7417_v52 = vld [vmem:[%s10408_s3 + $0x688] ss:$16 sps:$4 sm:$0xff]  }
 0x18e   :  { %2586 = vmatprep.mubr.bf16.mxu0 %v8480_v8  ;;  %2665 = vmatpush1.bf16.msra.mxu1 %v7405_v40  ;;  %v1975_v7 = vld [vmem:[#allocation2 + $0x38] sm:$0xff] }
 0x18f   :  { %2692 = vmatprep.mubr.bf16.mxu1 %v8480_v8  ;;  %2560 = vmatprep.subr.bf16.mxu0 %v7410_v31  ;;  %v7420_v8 = vld [vmem:[%s10408_s3 + $0x6a0] ss:$16 sps:$4 sm:$0xff]   ;;  %v7497_v40 = vld [vmem:[%s10408_s3 + $0x82c] ss:$16 sps:$4 sm:$0xff]  }
 0x190   :  { %2666 = vmatprep.subr.bf16.mxu1 %v7413_v41  ;;  %v8110_v31 = vld [vmem:[#allocation2 + $0x18] sm:$0xff]  ;;  %v7492_v41 = vld [vmem:[%s10408_s3 + $0x820] ss:$16 sps:$4 sm:$0xff]  }
 0x191   :  { %2561 = vmatpush1.bf16.msra.mxu0 %v7408_v42  ;;  %v7495_v42 = vld [vmem:[%s10408_s3 + $0x828] ss:$16 sps:$4 sm:$0xff]  }
 0x192   :  { %2667 = vmatpush1.bf16.msra.mxu1 %v7411_v32  ;;  %2562 = vmatprep.subr.bf16.mxu0 %v7416_v43  ;;  %v7500_v32 = vld [vmem:[%s10408_s3 + $0x844] ss:$16 sps:$4 sm:$0xff]   ;;  %v7503_v43 = vld [vmem:[%s10408_s3 + $0x84c] ss:$16 sps:$4 sm:$0xff]  }
 0x193   :  { %2668 = vmatprep.subr.bf16.mxu1 %v7419_v45  ;;  %v7498_v45 = vld [vmem:[%s10408_s3 + $0x840] ss:$16 sps:$4 sm:$0xff]  }
 0x195   :  { %2563 = vmatpush1.bf16.msra.mxu0 %v7414_v46  ;;  %v1974_v46 = vld [vmem:[#allocation2 + $0x30] sm:$0xff] }
 0x196   :  { %2669 = vmatpush1.bf16.msra.mxu1 %v7417_v52  ;;  %2564 = vmatprep.subr.bf16.mxu0 %v7422_v49  ;;  %v7501_v52 = vld [vmem:[%s10408_s3 + $0x848] ss:$16 sps:$4 sm:$0xff]   ;;  %v7506_v49 = vld [vmem:[%s10408_s3 + $0x864] ss:$16 sps:$4 sm:$0xff]  }
 0x197   :  { %2670 = vmatprep.subr.bf16.mxu1 %v7425_v50  ;;  %v7509_v50 = vld [vmem:[%s10408_s3 + $0x86c] ss:$16 sps:$4 sm:$0xff]  }
 0x199   :  { %2565 = vmatpush1.bf16.msra.mxu0 %v7420_v8  ;;  %v7504_v8 = vld [vmem:[%s10408_s3 + $0x860] ss:$16 sps:$4 sm:$0xff]  }
 0x19a   :  { %2671 = vmatpush1.bf16.msra.mxu1 %v7423_v51  ;;  %2566 = vmatprep.subr.bf16.mxu0 %v7428_v53  ;;  %v7507_v51 = vld [vmem:[%s10408_s3 + $0x868] ss:$16 sps:$4 sm:$0xff]   ;;  %v7512_v53 = vld [vmem:[%s10408_s3 + $0x884] ss:$16 sps:$4 sm:$0xff]  }
 0x19b   :  { %2672 = vmatprep.subr.bf16.mxu1 %v7431_v54  ;;  %v7515_v54 = vld [vmem:[%s10408_s3 + $0x88c] ss:$16 sps:$4 sm:$0xff]  }
 0x19d   :  { %2567 = vmatpush1.bf16.msra.mxu0 %v7426_v55  ;;  %v7510_v55 = vld [vmem:[%s10408_s3 + $0x880] ss:$16 sps:$4 sm:$0xff]  }
 0x19e   :  { %2673 = vmatpush1.bf16.msra.mxu1 %v7429_v56  ;;  %2568 = vmatprep.subr.bf16.mxu0 %v7434_v57  ;;  %v7513_v56 = vld [vmem:[%s10408_s3 + $0x888] ss:$16 sps:$4 sm:$0xff]   ;;  %v7518_v57 = vld [vmem:[%s10408_s3 + $0x8a4] ss:$16 sps:$4 sm:$0xff]  }
 0x19f   :  { %2674 = vmatprep.subr.bf16.mxu1 %v7437_v58  ;;  %v7521_v58 = vld [vmem:[%s10408_s3 + $0x8ac] ss:$16 sps:$4 sm:$0xff]  }
 0x1a1   :  { %2569 = vmatpush1.bf16.msra.mxu0 %v7432_v59  ;;  %v7516_v59 = vld [vmem:[%s10408_s3 + $0x8a0] ss:$16 sps:$4 sm:$0xff]  }
 0x1a2   :  { %2675 = vmatpush1.bf16.msra.mxu1 %v7435_v60  ;;  %2570 = vmatprep.subr.bf16.mxu0 %v7440_v61  ;;  %v7519_v60 = vld [vmem:[%s10408_s3 + $0x8a8] ss:$16 sps:$4 sm:$0xff]   ;;  %v7524_v61 = vld [vmem:[%s10408_s3 + $0x8c4] ss:$16 sps:$4 sm:$0xff]  }
 0x1a3   :  { %2676 = vmatprep.subr.bf16.mxu1 %v7443_v62  ;;  %v7527_v62 = vld [vmem:[%s10408_s3 + $0x8cc] ss:$16 sps:$4 sm:$0xff]  }
 0x1a5   :  { %2571 = vmatpush1.bf16.msra.mxu0 %v7438_v63  ;;  %v7522_v63 = vld [vmem:[%s10408_s3 + $0x8c0] ss:$16 sps:$4 sm:$0xff]  }
 0x1a6   :  { %2677 = vmatpush1.bf16.msra.mxu1 %v7441_v0  ;;  %2572 = vmatprep.subr.bf16.mxu0 %v7446_v47  ;;  %v7525_v0 = vld [vmem:[%s10408_s3 + $0x8c8] ss:$16 sps:$4 sm:$0xff]   ;;  %v7530_v47 = vld [vmem:[%s10408_s3 + $0x8e4] ss:$16 sps:$4 sm:$0xff]  }
 0x1a7   :  { %2678 = vmatprep.subr.bf16.mxu1 %v7449_v48  ;;  %v7533_v48 = vld [vmem:[%s10408_s3 + $0x8ec] ss:$16 sps:$4 sm:$0xff]  }
 0x1a9   :  { %2573 = vmatpush1.bf16.msra.mxu0 %v7444_v2  ;;  %v7528_v2 = vld [vmem:[%s10408_s3 + $0x8e0] ss:$16 sps:$4 sm:$0xff]  }
 0x1aa   :  { %2679 = vmatpush1.bf16.msra.mxu1 %v7447_v3  ;;  %2574 = vmatprep.subr.bf16.mxu0 %v7452_v4  ;;  %v7531_v3 = vld [vmem:[%s10408_s3 + $0x8e8] ss:$16 sps:$4 sm:$0xff]   ;;  %v7536_v4 = vld [vmem:[%s10410_s5 + $0x404] ss:$16 sps:$4 sm:$0xff]  }
 0x1ab   :  { %2680 = vmatprep.subr.bf16.mxu1 %v7455_v44  ;;  %v7539_v44 = vld [vmem:[%s10410_s5 + $0x40c] ss:$16 sps:$4 sm:$0xff]  }
 0x1ad   :  { %2575 = vmatpush1.bf16.msra.mxu0 %v7450_v5  ;;  %v7534_v5 = vld [vmem:[%s10410_s5 + $0x400] ss:$16 sps:$4 sm:$0xff]  }
 0x1ae   :  { %2681 = vmatpush1.bf16.msra.mxu1 %v7453_v9  ;;  %2576 = vmatprep.subr.bf16.mxu0 %v7458_v6  ;;  %v7537_v9 = vld [vmem:[%s10410_s5 + $0x408] ss:$16 sps:$4 sm:$0xff]   ;;  %v7542_v6 = vld [vmem:[%s10410_s5 + $0x424] ss:$16 sps:$4 sm:$0xff]  }
 0x1af   :  { %2682 = vmatprep.subr.bf16.mxu1 %v7461_v10  ;;  %v7545_v10 = vld [vmem:[%s10410_s5 + $0x42c] ss:$16 sps:$4 sm:$0xff]  }
 0x1b1   :  { %2577 = vmatpush1.bf16.msra.mxu0 %v7456_v11  ;;  %v8111_v11 = vld [vmem:[#allocation2 + $0x28] sm:$0xff] }
 0x1b2   :  { %2683 = vmatpush1.bf16.msra.mxu1 %v7459_v12  ;;  %2578 = vmatprep.subr.bf16.mxu0 %v7464_v13  ;;  %v7540_v12 = vld [vmem:[%s10410_s5 + $0x420] ss:$16 sps:$4 sm:$0xff]   ;;  %v7543_v13 = vld [vmem:[%s10410_s5 + $0x428] ss:$16 sps:$4 sm:$0xff]  }
 0x1b3   :  { %2684 = vmatprep.subr.bf16.mxu1 %v7467_v14  ;;  %v7548_v14 = vld [vmem:[%s10410_s5 + $0x444] ss:$16 sps:$4 sm:$0xff]  }
 0x1b5   :  { %2579 = vmatpush1.bf16.msra.mxu0 %v7462_v15  ;;  %v7551_v15 = vld [vmem:[%s10410_s5 + $0x44c] ss:$16 sps:$4 sm:$0xff]  }
 0x1b6   :  { %2685 = vmatpush1.bf16.msra.mxu1 %v7465_v17  ;;  %2580 = vmatprep.subr.bf16.mxu0 %v7470_v18  ;;  %v7546_v17 = vld [vmem:[%s10410_s5 + $0x440] ss:$16 sps:$4 sm:$0xff]  }
 0x1b7   :  { %2686 = vmatprep.subr.bf16.mxu1 %v7473_v19  ;;  %v1976_v18 = vld [vmem:[#allocation2 + $0x40] sm:$0xff]  ;;  %v7549_v19 = vld [vmem:[%s10410_s5 + $0x448] ss:$16 sps:$4 sm:$0xff]  }
 0x1b9   :  { %2581 = vmatpush1.bf16.msra.mxu0 %v7468_v20  ;;  %v7557_v20 = vld [vmem:[%s10410_s5 + $0x46c] ss:$16 sps:$4 sm:$0xff]  }
 0x1ba   :  { %2687 = vmatpush1.bf16.msra.mxu1 %v7471_v21  ;;  %2582 = vmatprep.subr.bf16.mxu0 %v7476_v22  ;;  %v7552_v21 = vld [vmem:[%s10410_s5 + $0x460] ss:$16 sps:$4 sm:$0xff]   ;;  %v7555_v22 = vld [vmem:[%s10410_s5 + $0x468] ss:$16 sps:$4 sm:$0xff]  }
 0x1bb   :  { %2688 = vmatprep.subr.bf16.mxu1 %v7479_v23  ;;  %v7560_v23 = vld [vmem:[%s10410_s5 + $0x484] ss:$16 sps:$4 sm:$0xff]  }
 0x1bd   :  { %2583 = vmatpush1.bf16.msra.mxu0 %v7474_v24  ;;  %v7563_v24 = vld [vmem:[%s10410_s5 + $0x48c] ss:$16 sps:$4 sm:$0xff]  }
 0x1be   :  { %2689 = vmatpush1.bf16.msra.mxu1 %v7477_v16  ;;  %2584 = vmatprep.subr.bf16.mxu0 %v7482_v25  ;;  %v7558_v16 = vld [vmem:[%s10410_s5 + $0x480] ss:$16 sps:$4 sm:$0xff]   ;;  %v7561_v25 = vld [vmem:[%s10410_s5 + $0x488] ss:$16 sps:$4 sm:$0xff]  }
 0x1bf   :  { %2690 = vmatprep.subr.bf16.mxu1 %v7485_v26  ;;  %v7566_v26 = vld [vmem:[%s10410_s5 + $0x4a4] ss:$16 sps:$4 sm:$0xff]  }
 0x1c1   :  { %2585 = vmatpush1.bf16.msra.mxu0 %v7480_v29  ;;  %v7569_v29 = vld [vmem:[%s10410_s5 + $0x4ac] ss:$16 sps:$4 sm:$0xff]  }
 0x1c2   :  { %2691 = vmatpush1.bf16.msra.mxu1 %v7483_v33  ;;  %2607 = vmatprep.subr.bf16.mxu0 %v7488_v34  ;;  %v7564_v33 = vld [vmem:[%s10410_s5 + $0x4a0] ss:$16 sps:$4 sm:$0xff]   ;;  %v7567_v34 = vld [vmem:[%s10410_s5 + $0x4a8] ss:$16 sps:$4 sm:$0xff]  }
 0x1c3   :  { %2713 = vmatprep.subr.bf16.mxu1 %v7491_v35  ;;  %v7572_v35 = vld [vmem:[%s10410_s5 + $0x4c4] ss:$16 sps:$4 sm:$0xff]  }
 0x1c4   :  { %2587 = vmatmul.mubr.bf16.vlgmr.msra.gmra.mrb[12].mxu0 %v8110_v31 }
 0x1c5   :  { %2693 = vmatmul.mubr.bf16.vlgmr.msra.gmra.mrb[12].mxu1 %v8110_v31  ;;  %2596 = vmatprep.mubr.bf16.mxu0 %v1975_v7  ;;  %v7576_v31 = vld [vmem:[%s10410_s5 + $0x4e0] ss:$16 sps:$4 sm:$0xff]  }
 0x1c6   :  { %2608 = vmatpush1.bf16.msra.mxu0 %v7486_v37  ;;  %2702 = vmatprep.mubr.bf16.mxu1 %v1975_v7  ;;  %v7575_v37 = vld [vmem:[%s10410_s5 + $0x4cc] ss:$16 sps:$4 sm:$0xff]   ;;  %v7578_v7 = vld [vmem:[%s10410_s5 + $0x4e4] ss:$16 sps:$4 sm:$0xff]  }
 0x1c7   :  { %2714 = vmatpush1.bf16.msra.mxu1 %v7489_v38  ;;  %2609 = vmatprep.subr.bf16.mxu0 %v7494_v39  ;;  %v7570_v38 = vld [vmem:[%s10410_s5 + $0x4c0] ss:$16 sps:$4 sm:$0xff]   ;;  %v7573_v39 = vld [vmem:[%s10410_s5 + $0x4c8] ss:$16 sps:$4 sm:$0xff]  }
 0x1c8   :  { %2715 = vmatprep.subr.bf16.mxu1 %v7497_v40  ;;  %v7581_v40 = vld [vmem:[%s10410_s5 + $0x4ec] ss:$16 sps:$4 sm:$0xff]  }
 0x1ca   :  { %2610 = vmatpush1.bf16.msra.mxu0 %v7492_v41  ;;  %v7579_v41 = vld [vmem:[%s10410_s5 + $0x4e8] ss:$16 sps:$4 sm:$0xff]  }
 0x1cb   :  { %2716 = vmatpush1.bf16.msra.mxu1 %v7495_v42  ;;  %2611 = vmatprep.subr.bf16.mxu0 %v7500_v32  ;;  %v7584_v42 = vld [vmem:[%s10410_s5 + $0x504] ss:$16 sps:$4 sm:$0xff]   ;;  %v7587_v32 = vld [vmem:[%s10410_s5 + $0x50c] ss:$16 sps:$4 sm:$0xff]  }
 0x1cc   :  { %2597 = vmatmul.mubr.bf16.gmra.mrb[16].mxu0 %v1974_v46  ;;  %2717 = vmatprep.subr.bf16.mxu1 %v7503_v43  ;;  %v7582_v43 = vld [vmem:[%s10410_s5 + $0x500] ss:$16 sps:$4 sm:$0xff]  }
 0x1cd   :  { %2703 = vmatmul.mubr.bf16.gmra.mrb[16].mxu1 %v1974_v46  ;;  %2639 = vmatprep.mubr.bf16.mxu0 %v8112_v1  ;;  %v7590_v46 = vld [vmem:[%s10410_s5 + $0x524] ss:$16 sps:$4 sm:$0xff]  }
 0x1ce   :  { %2612 = vmatpush1.bf16.msra.mxu0 %v7498_v45  ;;  %2745 = vmatprep.mubr.bf16.mxu1 %v8112_v1  ;;  %v7585_v45 = vld [vmem:[%s10410_s5 + $0x508] ss:$16 sps:$4 sm:$0xff]  }
 0x1cf   :  { %2718 = vmatpush1.bf16.msra.mxu1 %v7501_v52  ;;  %2613 = vmatprep.subr.bf16.mxu0 %v7506_v49  ;;  %v7593_v52 = vld [vmem:[%s10410_s5 + $0x52c] ss:$16 sps:$4 sm:$0xff]   ;;  %v7588_v49 = vld [vmem:[%s10410_s5 + $0x520] ss:$16 sps:$4 sm:$0xff]  }
 0x1d0   :  { %2719 = vmatprep.subr.bf16.mxu1 %v7509_v50  ;;  %v7591_v50 = vld [vmem:[%s10410_s5 + $0x528] ss:$16 sps:$4 sm:$0xff]  }
 0x1d2   :  { %2614 = vmatpush1.bf16.msra.mxu0 %v7504_v8  ;;  %v7596_v8 = vld [vmem:[%s10410_s5 + $0x544] ss:$16 sps:$4 sm:$0xff]  }
 0x1d3   :  { %2720 = vmatpush1.bf16.msra.mxu1 %v7507_v51  ;;  %2615 = vmatprep.subr.bf16.mxu0 %v7512_v53  ;;  %v7599_v51 = vld [vmem:[%s10410_s5 + $0x54c] ss:$16 sps:$4 sm:$0xff]   ;;  %v7594_v53 = vld [vmem:[%s10410_s5 + $0x540] ss:$16 sps:$4 sm:$0xff]  }
 0x1d4   :  { %2721 = vmatprep.subr.bf16.mxu1 %v7515_v54  ;;  %v7597_v54 = vld [vmem:[%s10410_s5 + $0x548] ss:$16 sps:$4 sm:$0xff]  }
 0x1d6   :  { %2616 = vmatpush1.bf16.msra.mxu0 %v7510_v55  ;;  %v7602_v55 = vld [vmem:[%s10410_s5 + $0x564] ss:$16 sps:$4 sm:$0xff]  }
 0x1d7   :  { %2722 = vmatpush1.bf16.msra.mxu1 %v7513_v56  ;;  %2617 = vmatprep.subr.bf16.mxu0 %v7518_v57  ;;  %v7605_v56 = vld [vmem:[%s10410_s5 + $0x56c] ss:$16 sps:$4 sm:$0xff]   ;;  %v7600_v57 = vld [vmem:[%s10410_s5 + $0x560] ss:$16 sps:$4 sm:$0xff]  }
 0x1d8   :  { %2723 = vmatprep.subr.bf16.mxu1 %v7521_v58  ;;  %v7603_v58 = vld [vmem:[%s10410_s5 + $0x568] ss:$16 sps:$4 sm:$0xff]  }
 0x1da   :  { %2618 = vmatpush1.bf16.msra.mxu0 %v7516_v59  ;;  %v7608_v59 = vld [vmem:[%s10410_s5 + $0x584] ss:$16 sps:$4 sm:$0xff]  }
 0x1db   :  { %2724 = vmatpush1.bf16.msra.mxu1 %v7519_v60  ;;  %2619 = vmatprep.subr.bf16.mxu0 %v7524_v61  ;;  %v7611_v60 = vld [vmem:[%s10410_s5 + $0x58c] ss:$16 sps:$4 sm:$0xff]   ;;  %v7606_v61 = vld [vmem:[%s10410_s5 + $0x580] ss:$16 sps:$4 sm:$0xff]  }
 0x1dc   :  { %2725 = vmatprep.subr.bf16.mxu1 %v7527_v62  ;;  %v7609_v62 = vld [vmem:[%s10410_s5 + $0x588] ss:$16 sps:$4 sm:$0xff]  }
 0x1de   :  { %2620 = vmatpush1.bf16.msra.mxu0 %v7522_v63  ;;  %v7614_v63 = vld [vmem:[%s10410_s5 + $0x5a4] ss:$16 sps:$4 sm:$0xff]  }
 0x1df   :  { %2726 = vmatpush1.bf16.msra.mxu1 %v7525_v0  ;;  %2621 = vmatprep.subr.bf16.mxu0 %v7530_v47  ;;  %v7617_v0 = vld [vmem:[%s10410_s5 + $0x5ac] ss:$16 sps:$4 sm:$0xff]   ;;  %v7612_v47 = vld [vmem:[%s10410_s5 + $0x5a0] ss:$16 sps:$4 sm:$0xff]  }
 0x1e0   :  { %2727 = vmatprep.subr.bf16.mxu1 %v7533_v48  ;;  %v7615_v48 = vld [vmem:[%s10410_s5 + $0x5a8] ss:$16 sps:$4 sm:$0xff]  }
 0x1e2   :  { %2622 = vmatpush1.bf16.msra.mxu0 %v7528_v2  ;;  %v7618_v2 = vld [vmem:[%s10410_s5 + $0x5c0] ss:$16 sps:$4 sm:$0xff]  }
 0x1e3   :  { %2728 = vmatpush1.bf16.msra.mxu1 %v7531_v3  ;;  %3785 = vmatprep.subr.bf16.mxu0 %v7536_v4  ;;  %v7620_v3 = vld [vmem:[%s10410_s5 + $0x5c4] ss:$16 sps:$4 sm:$0xff]   ;;  %v7621_v4 = vld [vmem:[%s10410_s5 + $0x5c8] ss:$16 sps:$4 sm:$0xff]  }
 0x1e4   :  { %3871 = vmatprep.subr.bf16.mxu1 %v7539_v44  ;;  %v7623_v44 = vld [vmem:[%s10410_s5 + $0x5cc] ss:$16 sps:$4 sm:$0xff]  }
 0x1e5   :  { %2640 = vmatmul.mubr.bf16.vlgmr.msra.gmra.mrb[12].mxu0 %v8111_v11 }
 0x1e6   :  { %2746 = vmatmul.mubr.bf16.vlgmr.msra.gmra.mrb[12].mxu1 %v8111_v11  ;;  %2649 = vmatprep.mubr.bf16.mxu0 %v8112_v1  ;;  %v7632_v11 = vld [vmem:[%s10410_s5 + $0x604] ss:$16 sps:$4 sm:$0xff]  }
 0x1e7   :  { %2755 = vmatprep.mubr.bf16.mxu1 %v8112_v1  ;;  %3786 = vmatpush1.bf16.msra.mxu0 %v7534_v5  ;;  %v7554_v1 = vld [vmem:[%s10410_s5 + $0x464] ss:$16 sps:$4 sm:$0xff]  }
 0x1e8   :  { %3872 = vmatpush1.bf16.msra.mxu1 %v7537_v9  ;;  %3787 = vmatprep.subr.bf16.mxu0 %v7542_v6  ;;  %v7626_v5 = vld [vmem:[%s10410_s5 + $0x5e4] ss:$16 sps:$4 sm:$0xff]   ;;  %v7629_v9 = vld [vmem:[%s10410_s5 + $0x5ec] ss:$16 sps:$4 sm:$0xff]   ;;  %v7624_v6 = vld [vmem:[%s10410_s5 + $0x5e0] ss:$16 sps:$4 sm:$0xff]  }
 0x1e9   :  { %3873 = vmatprep.subr.bf16.mxu1 %v7545_v10  ;;  %v7627_v10 = vld [vmem:[%s10410_s5 + $0x5e8] ss:$16 sps:$4 sm:$0xff]  }
 0x1eb   :  { %3788 = vmatpush1.bf16.msra.mxu0 %v7540_v12  ;;  %v7635_v12 = vld [vmem:[%s10410_s5 + $0x60c] ss:$16 sps:$4 sm:$0xff]  }
 0x1ec   :  { %3874 = vmatpush1.bf16.msra.mxu1 %v7543_v13  ;;  %3789 = vmatprep.subr.bf16.mxu0 %v7548_v14  ;;  %v2782_v13 = vld [vmem:[%s10411_s4] sm:$0xf]  ;;  %v2798_v14 = vsub.s32 3, %v8437_v27 }
 0x1ed   :  { %2650 = vmatmul.mubr.bf16.gmra.mrb[16].mxu0 %v1976_v18  ;;  %3875 = vmatprep.subr.bf16.mxu1 %v7551_v15  ;;  %v2787_v15 = vrot.slane %v2782_v13, %v8440_v28 }
 0x1ee   :  { %2756 = vmatmul.mubr.bf16.gmra.mrb[16].mxu1 %v1976_v18  ;;  %v2791_v18 = vrot.slane %v2782_v13, %v8446_v30 }
 0x1ef   :  { %3790 = vmatpush1.bf16.msra.mxu0 %v7546_v17  ;;  %v2795_v17 = vrot.slane %v2782_v13, %v8456_v36 }
 0x1f0   :  { %3876 = vmatpush1.bf16.msra.mxu1 %v7549_v19  ;;  %3791 = vmatprep.subr.bf16.mxu0 %v7554_v1  ;;  %v2799_v19 = vrot.slane %v2782_v13, %v2798_v14 }
 0x1f1   :  { %3877 = vmatprep.subr.bf16.mxu1 %v7557_v20 }
 0x1f3   :  { %3792 = vmatpush1.bf16.msra.mxu0 %v7552_v21 }
 0x1f4   :  { %3878 = vmatpush1.bf16.msra.mxu1 %v7555_v22  ;;  %3793 = vmatprep.subr.bf16.mxu0 %v7560_v23 }
 0x1f5   :  { %3879 = vmatprep.subr.bf16.mxu1 %v7563_v24 }
 0x1f7   :  { %3794 = vmatpush1.bf16.msra.mxu0 %v7558_v16 }
 0x1f8   :  { %3880 = vmatpush1.bf16.msra.mxu1 %v7561_v25  ;;  %3795 = vmatprep.subr.bf16.mxu0 %v7566_v26 }
 0x1f9   :  { %3881 = vmatprep.subr.bf16.mxu1 %v7569_v29 }
 0x1fb   :  { %3796 = vmatpush1.bf16.msra.mxu0 %v7564_v33 }
 0x1fc   :  { %3882 = vmatpush1.bf16.msra.mxu1 %v7567_v34  ;;  %3797 = vmatprep.subr.bf16.mxu0 %v7572_v35 }
 0x1fd   :  { %3883 = vmatprep.subr.bf16.mxu1 %v7575_v37 }
 0x1ff   :  { %3798 = vmatpush1.bf16.msra.mxu0 %v7570_v38 }
 0x200   :  { %3884 = vmatpush1.bf16.msra.mxu1 %v7573_v39  ;;  %3799 = vmatprep.subr.bf16.mxu0 %v7578_v7 }
 0x201   :  { %3885 = vmatprep.subr.bf16.mxu1 %v7581_v40 }
 0x203   :  { %3800 = vmatpush1.bf16.msra.mxu0 %v7576_v31 }
 0x204   :  { %3886 = vmatpush1.bf16.msra.mxu1 %v7579_v41  ;;  %3801 = vmatprep.subr.bf16.mxu0 %v7584_v42 }
 0x205   :  { %3887 = vmatprep.subr.bf16.mxu1 %v7587_v32 }
 0x207   :  { %3802 = vmatpush1.bf16.msra.mxu0 %v7582_v43 }
 0x208   :  { %3888 = vmatpush1.bf16.msra.mxu1 %v7585_v45  ;;  %3803 = vmatprep.subr.bf16.mxu0 %v7590_v46 }
 0x209   :  { %3889 = vmatprep.subr.bf16.mxu1 %v7593_v52 }
 0x20b   :  { %3804 = vmatpush1.bf16.msra.mxu0 %v7588_v49 }
 0x20c   :  { %3890 = vmatpush1.bf16.msra.mxu1 %v7591_v50  ;;  %3805 = vmatprep.subr.bf16.mxu0 %v7596_v8 }
 0x20d   :  { %3891 = vmatprep.subr.bf16.mxu1 %v7599_v51 }
 0x20f   :  { %3806 = vmatpush1.bf16.msra.mxu0 %v7594_v53 }
 0x210   :  { %3892 = vmatpush1.bf16.msra.mxu1 %v7597_v54  ;;  %3807 = vmatprep.subr.bf16.mxu0 %v7602_v55 }
 0x211   :  { %3893 = vmatprep.subr.bf16.mxu1 %v7605_v56 }
 0x213   :  { %3808 = vmatpush1.bf16.msra.mxu0 %v7600_v57 }
 0x214   :  { %3894 = vmatpush1.bf16.msra.mxu1 %v7603_v58  ;;  %3809 = vmatprep.subr.bf16.mxu0 %v7608_v59 }
 0x215   :  { %3895 = vmatprep.subr.bf16.mxu1 %v7611_v60 }
 0x217   :  { %3810 = vmatpush1.bf16.msra.mxu0 %v7606_v61 }
 0x218   :  { %3896 = vmatpush1.bf16.msra.mxu1 %v7609_v62  ;;  %3811 = vmatprep.subr.bf16.mxu0 %v7614_v63 }
 0x219   :  { %3897 = vmatprep.subr.bf16.mxu1 %v7617_v0 }
 0x21b   :  { %3812 = vmatpush1.bf16.msra.mxu0 %v7612_v47 }
 0x21c   :  { %3898 = vmatpush1.bf16.msra.mxu1 %v7615_v48  ;;  %3813 = vmatprep.subr.bf16.mxu0 %v7620_v3 }
 0x21d   :  { %3899 = vmatprep.subr.bf16.mxu1 %v7623_v44 }
 0x21f   :  { %3814 = vmatpush1.bf16.msra.mxu0 %v7618_v2 }
 0x220   :  { %3900 = vmatpush1.bf16.msra.mxu1 %v7621_v4  ;;  %3815 = vmatprep.subr.bf16.mxu0 %v7626_v5 }
 0x221   :  { %3901 = vmatprep.subr.bf16.mxu1 %v7629_v9 }
 0x223   :  { %3816 = vmatpush1.bf16.msra.mxu0 %v7624_v6 }
 0x224   :  { %3902 = vmatpush1.bf16.msra.mxu1 %v7627_v10  ;;  %3828 = vmatprep.subr.bf16.mxu0 %v7632_v11 }
 0x225   :  { %3914 = vmatprep.subr.bf16.mxu1 %v7635_v12 }
 0x2b8   :  { %v2641_v1 = vpop.f32.mrb[12].mxu0 }
 0x2b9   :  { %v2804_v20 = vadd.f32 %v2787_v15, %v2641_v1  ;;  %v2747_v21 = vpop.f32.mrb[12].mxu1  ;;  %v2643_v22 = vpop.f32.mrb[13].mxu0 }
 0x2ba   :  { %v2806_v23 = vadd.f32 %v2795_v17, %v2747_v21  ;;  %v2805_v24 = vadd.f32 %v2791_v18, %v2643_v22  ;;  %v2749_v16 = vpop.f32.mrb[13].mxu1  ;;  %v2645_v25 = vpop.f32.mrb[14].mxu0 }
 0x2bb   :  { %v2807_v26 = vadd.f32 %v2799_v19, %v2749_v16  ;;  %v2808_v29 = vadd.f32 %v2787_v15, %v2645_v25  ;;  %v2751_v33 = vpop.f32.mrb[14].mxu1  ;;  %v2647_v34 = vpop.f32.mrb[15].mxu0  ;;  %v2820_v39 = vmax.f32 %v2804_v20, 0.0  ;;  %v7630_v16 = vld [vmem:[%s10410_s5 + $0x600] ss:$16 sps:$4 sm:$0xff]  }
 0x2bc   :  { %v2810_v35 = vadd.f32 %v2795_v17, %v2751_v33  ;;  %v2809_v37 = vadd.f32 %v2791_v18, %v2647_v34  ;;  %v2753_v38 = vpop.f32.mrb[15].mxu1  ;;  %v2822_v31 = vmax.f32 %v2806_v23, 0.0  ;;  %v2821_v41 = vmax.f32 %v2805_v24, 0.0  ;;  %v7633_v25 = vld [vmem:[%s10410_s5 + $0x608] ss:$16 sps:$4 sm:$0xff]  }
 0x2bd   :  { %v2824_v7 = vmax.f32 %v2808_v29, 0.0  ;;  %v2811_v40 = vadd.f32 %v2799_v19, %v2753_v38  ;;  %v2823_v43 = vmax.f32 %v2807_v26, 0.0  ;;  %v7641_v38 = vld [vmem:[%s10410_s5 + $0x62c] ss:$16 sps:$4 sm:$0xff]  }
 0x2be   :  { %v2826_v42 = vmax.f32 %v2810_v35, 0.0  ;;  %v2825_v32 = vmax.f32 %v2809_v37, 0.0  ;;  %v7638_v37 = vld [vmem:[%s10410_s5 + $0x624] ss:$16 sps:$4 sm:$0xff]  }
 0x2bf   :  { %v2836_v45 = vpack.c.bf16 %v2824_v7, %v2820_v39  ;;  %v2827_v46 = vmax.f32 %v2811_v40, 0.0  ;;  %v7636_v7 = vld [vmem:[%s10410_s5 + $0x620] ss:$16 sps:$4 sm:$0xff]   ;;  %v7639_v40 = vld [vmem:[%s10410_s5 + $0x628] ss:$16 sps:$4 sm:$0xff]  }
 0x2c0   :  { %v2838_v52 = vpack.c.bf16 %v2826_v42, %v2822_v31  ;;  %v9411_v49 = vpack.c.bf16 %v2825_v32, %v2821_v41  ;;  %v2651_v50 = vpop.f32.mrb[16].mxu0  ;;  %v7644_v31 = vld [vmem:[%s10410_s5 + $0x644] ss:$16 sps:$4 sm:$0xff]   ;;  %v7647_v41 = vld [vmem:[%s10410_s5 + $0x64c] ss:$16 sps:$4 sm:$0xff]  }
 0x2c1   :  { %2844 = vst [vmem:[#allocation3] sm:$0xff] %v2836_v45  ;;  %v2839_v8 = vpack.c.bf16 %v2827_v46, %v2823_v43  ;;  %v2812_v51 = vadd.f32 %v2787_v15, %v2651_v50  ;;  %v2757_v53 = vpop.f32.mrb[16].mxu1  ;;  %v2653_v54 = vpop.f32.mrb[17].mxu0  ;;  %v7642_v42 = vld [vmem:[%s10410_s5 + $0x640] ss:$16 sps:$4 sm:$0xff]  }
 0x2c2   :  { %2846 = vst [vmem:[#allocation3 + $0x10] sm:$0xff] %v2838_v52  ;;  %2845 = vst [vmem:[#allocation3 + $0x8] sm:$0xff] %v9411_v49  ;;  %v2814_v55 = vadd.f32 %v2795_v17, %v2757_v53  ;;  %v2813_v56 = vadd.f32 %v2791_v18, %v2653_v54  ;;  %v2759_v57 = vpop.f32.mrb[17].mxu1  ;;  %v2655_v58 = vpop.f32.mrb[18].mxu0  ;;  %v7645_v32 = vld [vmem:[%s10410_s5 + $0x648] ss:$16 sps:$4 sm:$0xff]  }
 0x2c3   :  { %2847 = vst [vmem:[#allocation3 + $0x18] sm:$0xff] %v2839_v8  ;;  %v2815_v59 = vadd.f32 %v2799_v19, %v2759_v57  ;;  %v2816_v60 = vadd.f32 %v2787_v15, %v2655_v58  ;;  %v2761_v61 = vpop.f32.mrb[18].mxu1  ;;  %v2657_v62 = vpop.f32.mrb[19].mxu0  ;;  %v2828_v48 = vmax.f32 %v2812_v51, 0.0  ;;  %v7650_v43 = vld [vmem:[%s10410_s5 + $0x664] ss:$16 sps:$4 sm:$0xff]  }
 0x2c4   :  { %v2818_v63 = vadd.f32 %v2795_v17, %v2761_v61  ;;  %v2817_v0 = vadd.f32 %v2791_v18, %v2657_v62  ;;  %v2763_v47 = vpop.f32.mrb[19].mxu1  ;;  %v2830_v4 = vmax.f32 %v2814_v55, 0.0  ;;  %v2829_v44 = vmax.f32 %v2813_v56, 0.0  ;;  %v7653_v45 = vld [vmem:[%s10410_s5 + $0x66c] ss:$16 sps:$4 sm:$0xff]  }
 0x2c5   :  { %v2832_v2 = vmax.f32 %v2816_v60, 0.0  ;;  %v2819_v3 = vadd.f32 %v2799_v19, %v2763_v47  ;;  %v2831_v6 = vmax.f32 %v2815_v59, 0.0  ;;  %v7648_v46 = vld [vmem:[%s10410_s5 + $0x660] ss:$16 sps:$4 sm:$0xff]   ;;  %v7651_v52 = vld [vmem:[%s10410_s5 + $0x668] ss:$16 sps:$4 sm:$0xff]  }
 0x2c6   :  { %v2834_v5 = vmax.f32 %v2818_v63, 0.0  ;;  %v2833_v9 = vmax.f32 %v2817_v0, 0.0  ;;  %v7656_v50 = vld [vmem:[%s10410_s5 + $0x684] ss:$16 sps:$4 sm:$0xff]   ;;  %v7659_v8 = vld [vmem:[%s10410_s5 + $0x68c] ss:$16 sps:$4 sm:$0xff]  }
 0x2c7   :  { %v2840_v10 = vpack.c.bf16 %v2832_v2, %v2828_v48  ;;  %v2835_v11 = vmax.f32 %v2819_v3, 0.0  ;;  %v7654_v51 = vld [vmem:[%s10410_s5 + $0x680] ss:$16 sps:$4 sm:$0xff]   ;;  %v7657_v53 = vld [vmem:[%s10410_s5 + $0x688] ss:$16 sps:$4 sm:$0xff]  }
 0x2c8   :  { %v2842_v12 = vpack.c.bf16 %v2834_v5, %v2830_v4  ;;  %v2841_v13 = vpack.c.bf16 %v2833_v9, %v2829_v44  ;;  %v2984_v17 = vld [vmem:[#allocation3] sm:$0xf0]  ;;  %v7662_v54 = vld [vmem:[%s10410_s5 + $0x6a4] ss:$16 sps:$4 sm:$0xff]   ;;  %v7660_v56 = vld [vmem:[%s10410_s5 + $0x6a0] ss:$16 sps:$4 sm:$0xff]  }
 0x2c9   :  { %2848 = vst [vmem:[#allocation3 + $0x20] sm:$0xff] %v2840_v10  ;;  %v2843_v1 = vpack.c.bf16 %v2835_v11, %v2831_v6  ;;  %v2985_v15 = vld [vmem:[#allocation3 + $0x8] sm:$0xf0]  ;;  %v3129_v26 = vrot.slane %v2984_v17, 4  ;;  %v7665_v55 = vld [vmem:[%s10410_s5 + $0x6ac] ss:$16 sps:$4 sm:$0xff]  }
 0x2ca   :  { %2850 = vst [vmem:[#allocation3 + $0x30] sm:$0xff] %v2842_v12  ;;  %2849 = vst [vmem:[#allocation3 + $0x28] sm:$0xff] %v2841_v13  ;;  %v3132_v19 = vrot.slane %v2985_v15, 4  ;;  %v2987_v23 = vld [vmem:[#allocation3 + $0x18] sm:$0xf0] }
 0x2cb   :  { %2851 = vst [vmem:[#allocation3 + $0x38] sm:$0xff] %v2843_v1  ;;  %v3138_v35 = vrot.slane %v2987_v23, 4  ;;  %v7663_v57 = vld [vmem:[%s10410_s5 + $0x6a8] ss:$16 sps:$4 sm:$0xff]   ;;  %v7668_v58 = vld [vmem:[%s10410_s5 + $0x6c4] ss:$16 sps:$4 sm:$0xff]  }
 0x2cc   :  { %v7671_v59 = vld [vmem:[%s10410_s5 + $0x6cc] ss:$16 sps:$4 sm:$0xff]   ;;  %v7666_v60 = vld [vmem:[%s10410_s5 + $0x6c0] ss:$16 sps:$4 sm:$0xff]   ;;  %v7669_v61 = vld [vmem:[%s10410_s5 + $0x6c8] ss:$16 sps:$4 sm:$0xff]  }
 0x2cd   :  { %v7674_v62 = vld [vmem:[%s10410_s5 + $0x6e4] ss:$16 sps:$4 sm:$0xff]   ;;  %v7677_v63 = vld [vmem:[%s10410_s5 + $0x6ec] ss:$16 sps:$4 sm:$0xff]   ;;  %v7672_v0 = vld [vmem:[%s10410_s5 + $0x6e0] ss:$16 sps:$4 sm:$0xff]  }
 0x2ce   :  { %v7675_v47 = vld [vmem:[%s10410_s5 + $0x6e8] ss:$16 sps:$4 sm:$0xff]   ;;  %v7680_v48 = vld [vmem:[%s10410_s5 + $0x704] ss:$16 sps:$4 sm:$0xff]   ;;  %v7683_v2 = vld [vmem:[%s10410_s5 + $0x70c] ss:$16 sps:$4 sm:$0xff]  }
 0x2cf   :  { %v7678_v3 = vld [vmem:[%s10410_s5 + $0x700] ss:$16 sps:$4 sm:$0xff]   ;;  %v7681_v4 = vld [vmem:[%s10410_s5 + $0x708] ss:$16 sps:$4 sm:$0xff]   ;;  %v7686_v44 = vld [vmem:[%s10410_s5 + $0x724] ss:$16 sps:$4 sm:$0xff]  }
 0x2d0   :  { %v2988_v18 = vld [vmem:[#allocation3 + $0x20] sm:$0xf]  ;;  %v7689_v5 = vld [vmem:[%s10410_s5 + $0x72c] ss:$16 sps:$4 sm:$0xff]   ;;  %v7684_v9 = vld [vmem:[%s10410_s5 + $0x720] ss:$16 sps:$4 sm:$0xff]  }
 0x2d1   :  { %v2989_v20 = vld [vmem:[#allocation3 + $0x28] sm:$0xf]  ;;  %v3130_v21 = vrot.slane %v2988_v18, 4  ;;  %v7687_v6 = vld [vmem:[%s10410_s5 + $0x728] ss:$16 sps:$4 sm:$0xff]  }
 0x2d2   :  { %v3133_v22 = vrot.slane %v2989_v20, 4  ;;  %v2991_v24 = vld [vmem:[#allocation3 + $0x38] sm:$0xf]  ;;  %v7692_v10 = vld [vmem:[%s10410_s5 + $0x744] ss:$16 sps:$4 sm:$0xff]  }
 0x2d3   :  { %v3139_v29 = vrot.slane %v2991_v24, 4  ;;  %v3131_v34 = vsel %vm568_vm2, %v3129_v26, %v3130_v21  ;;  %v7695_v11 = vld [vmem:[%s10410_s5 + $0x74c] ss:$16 sps:$4 sm:$0xff]   ;;  %v7690_v12 = vld [vmem:[%s10410_s5 + $0x740] ss:$16 sps:$4 sm:$0xff]  }
 0x2d4   :  { %v3134_v33 = vsel %vm568_vm2, %v3132_v19, %v3133_v22  ;;  %v7693_v13 = vld [vmem:[%s10410_s5 + $0x748] ss:$16 sps:$4 sm:$0xff]   ;;  %v7698_v1 = vld [vmem:[%s10410_s5 + $0x764] ss:$16 sps:$4 sm:$0xff]   ;;  %v7701_v15 = vld [vmem:[%s10410_s5 + $0x76c] ss:$16 sps:$4 sm:$0xff]  }
 0x2d5   :  { %3817 = vmatprep.mubr.bf16.mxu0 %v3134_v33  ;;  %3903 = vmatprep.mubr.bf16.mxu1 %v3134_v33  ;;  %v3140_v39 = vsel %vm568_vm2, %v3138_v35, %v3139_v29  ;;  %v7696_v17 = vld [vmem:[%s10410_s5 + $0x760] ss:$16 sps:$4 sm:$0xff]   ;;  %v7699_v18 = vld [vmem:[%s10410_s5 + $0x768] ss:$16 sps:$4 sm:$0xff]   ;;  %v7704_v20 = vld [vmem:[%s10410_s5 + $0x784] ss:$16 sps:$4 sm:$0xff]  }
 0x2d6   :  { %3818 = vmatmul.mubr.bf16.vlgmr.msra.gmra.mrb[20].mxu0 %v3131_v34  ;;  %3904 = vmatmul.mubr.bf16.vlgmr.msra.gmra.mrb[20].mxu1 %v3131_v34  ;;  %v7707_v21 = vld [vmem:[%s10410_s5 + $0x78c] ss:$16 sps:$4 sm:$0xff]   ;;  %v7702_v19 = vld [vmem:[%s10410_s5 + $0x780] ss:$16 sps:$4 sm:$0xff]   ;;  %v7705_v22 = vld [vmem:[%s10410_s5 + $0x788] ss:$16 sps:$4 sm:$0xff]  }
 0x2d7   :  { %3829 = vmatpush1.bf16.msra.mxu0 %v7630_v16  ;;  %3915 = vmatpush1.bf16.msra.mxu1 %v7633_v25  ;;  %v7710_v23 = vld [vmem:[%s10410_s5 + $0x7a4] ss:$16 sps:$4 sm:$0xff]   ;;  %v7713_v24 = vld [vmem:[%s10410_s5 + $0x7ac] ss:$16 sps:$4 sm:$0xff]   ;;  %v7708_v16 = vld [vmem:[%s10410_s5 + $0x7a0] ss:$16 sps:$4 sm:$0xff]  }
 0x2d8   :  { %3860 = vmatprep.mubr.bf16.mxu0 %v3140_v39  ;;  %3946 = vmatprep.mubr.bf16.mxu1 %v3140_v39  ;;  %v7711_v25 = vld [vmem:[%s10410_s5 + $0x7a8] ss:$16 sps:$4 sm:$0xff]   ;;  %v7716_v26 = vld [vmem:[%s10410_s5 + $0x7c4] ss:$16 sps:$4 sm:$0xff]   ;;  %v7719_v29 = vld [vmem:[%s10410_s5 + $0x7cc] ss:$16 sps:$4 sm:$0xff]  }
 0x2d9   :  { %3830 = vmatprep.subr.bf16.mxu0 %v7638_v37  ;;  %3916 = vmatprep.subr.bf16.mxu1 %v7641_v38  ;;  %v7714_v33 = vld [vmem:[%s10410_s5 + $0x7c0] ss:$16 sps:$4 sm:$0xff]   ;;  %v7717_v34 = vld [vmem:[%s10410_s5 + $0x7c8] ss:$16 sps:$4 sm:$0xff]   ;;  %v7722_v35 = vld [vmem:[%s10410_s5 + $0x7e4] ss:$16 sps:$4 sm:$0xff]  }
 0x2da   :  { %v7725_v37 = vld [vmem:[%s10410_s5 + $0x7ec] ss:$16 sps:$4 sm:$0xff]   ;;  %v2990_v38 = vld [vmem:[#allocation3 + $0x30] sm:$0xf]  ;;  %v7720_v39 = vld [vmem:[%s10410_s5 + $0x7e0] ss:$16 sps:$4 sm:$0xff]  }
 0x2db   :  { %3831 = vmatpush1.bf16.msra.mxu0 %v7636_v7  ;;  %3917 = vmatpush1.bf16.msra.mxu1 %v7639_v40  ;;  %v7723_v7 = vld [vmem:[%s10410_s5 + $0x7e8] ss:$16 sps:$4 sm:$0xff]   ;;  %v2986_v40 = vld [vmem:[#allocation3 + $0x10] sm:$0xf0] }
 0x2dc   :  { %3832 = vmatprep.subr.bf16.mxu0 %v7644_v31  ;;  %3918 = vmatprep.subr.bf16.mxu1 %v7647_v41  ;;  %v7728_v31 = vld [vmem:[%s10410_s5 + $0x4] ss:$16 sps:$4 sm:$0xff]   ;;  %v7731_v41 = vld [vmem:[%s10410_s5 + $0xc] ss:$16 sps:$4 sm:$0xff]  }
 0x2df   :  { %3833 = vmatpush1.bf16.msra.mxu0 %v7642_v42  ;;  %3919 = vmatpush1.bf16.msra.mxu1 %v7645_v32  ;;  %v3136_v42 = vrot.slane %v2990_v38, 4  ;;  %v3135_v32 = vrot.slane %v2986_v40, 4  ;;  %v7806_v38 = vld [vmem:[%s10410_s5 + $0x1a4] ss:$16 sps:$4 sm:$0xff]   ;;  %v7807_v40 = vld [vmem:[%s10410_s5 + $0x1a8] ss:$16 sps:$4 sm:$0xff]  }
 0x2e0   :  { %3834 = vmatprep.subr.bf16.mxu0 %v7650_v43  ;;  %3920 = vmatprep.subr.bf16.mxu1 %v7653_v45  ;;  %v7726_v43 = vld [vmem:[%s10410_s5] ss:$16 sps:$4 sm:$0xff]   ;;  %v7729_v45 = vld [vmem:[%s10410_s5 + $0x8] ss:$16 sps:$4 sm:$0xff]  }
 0x2e3   :  { %3835 = vmatpush1.bf16.msra.mxu0 %v7648_v46  ;;  %3921 = vmatpush1.bf16.msra.mxu1 %v7651_v52  ;;  %v3137_v46 = vsel %vm568_vm2, %v3135_v32, %v3136_v42  ;;  %v7734_v52 = vld [vmem:[%s10410_s5 + $0x24] ss:$16 sps:$4 sm:$0xff]   ;;  %v7810_v42 = vld [vmem:[%s10410_s5 + $0x1c0] ss:$16 sps:$4 sm:$0xff]   ;;  %v7813_v32 = vld [vmem:[%s10410_s5 + $0x1c8] ss:$16 sps:$4 sm:$0xff]  }
 0x2e4   :  { %3836 = vmatprep.subr.bf16.mxu0 %v7656_v50  ;;  %3922 = vmatprep.subr.bf16.mxu1 %v7659_v8  ;;  %v7737_v50 = vld [vmem:[%s10410_s5 + $0x2c] ss:$16 sps:$4 sm:$0xff]   ;;  %v7732_v8 = vld [vmem:[%s10410_s5 + $0x20] ss:$16 sps:$4 sm:$0xff]  }
 0x2e7   :  { %3837 = vmatpush1.bf16.msra.mxu0 %v7654_v51  ;;  %3923 = vmatpush1.bf16.msra.mxu1 %v7657_v53  ;;  %v7735_v51 = vld [vmem:[%s10410_s5 + $0x28] ss:$16 sps:$4 sm:$0xff]   ;;  %v7740_v53 = vld [vmem:[%s10410_s5 + $0x44] ss:$16 sps:$4 sm:$0xff]  }
 0x2e8   :  { %3838 = vmatprep.subr.bf16.mxu0 %v7662_v54  ;;  %3924 = vmatprep.subr.bf16.mxu1 %v7665_v55  ;;  %v7743_v54 = vld [vmem:[%s10410_s5 + $0x4c] ss:$16 sps:$4 sm:$0xff]   ;;  %v7738_v55 = vld [vmem:[%s10410_s5 + $0x40] ss:$16 sps:$4 sm:$0xff]  }
 0x2eb   :  { %3839 = vmatpush1.bf16.msra.mxu0 %v7660_v56  ;;  %3925 = vmatpush1.bf16.msra.mxu1 %v7663_v57  ;;  %v7746_v56 = vld [vmem:[%s10410_s5 + $0x64] ss:$16 sps:$4 sm:$0xff]   ;;  %v7749_v57 = vld [vmem:[%s10410_s5 + $0x6c] ss:$16 sps:$4 sm:$0xff]  }
 0x2ec   :  { %3840 = vmatprep.subr.bf16.mxu0 %v7668_v58  ;;  %3926 = vmatprep.subr.bf16.mxu1 %v7671_v59  ;;  %v7744_v58 = vld [vmem:[%s10410_s5 + $0x60] ss:$16 sps:$4 sm:$0xff]   ;;  %v7747_v59 = vld [vmem:[%s10410_s5 + $0x68] ss:$16 sps:$4 sm:$0xff]  }
 0x2ef   :  { %3841 = vmatpush1.bf16.msra.mxu0 %v7666_v60  ;;  %3927 = vmatpush1.bf16.msra.mxu1 %v7669_v61  ;;  %v7752_v60 = vld [vmem:[%s10410_s5 + $0x84] ss:$16 sps:$4 sm:$0xff]   ;;  %v7755_v61 = vld [vmem:[%s10410_s5 + $0x8c] ss:$16 sps:$4 sm:$0xff]  }
 0x2f0   :  { %3842 = vmatprep.subr.bf16.mxu0 %v7674_v62  ;;  %3928 = vmatprep.subr.bf16.mxu1 %v7677_v63  ;;  %v7750_v62 = vld [vmem:[%s10410_s5 + $0x80] ss:$16 sps:$4 sm:$0xff]   ;;  %v7753_v63 = vld [vmem:[%s10410_s5 + $0x88] ss:$16 sps:$4 sm:$0xff]  }
 0x2f3   :  { %3843 = vmatpush1.bf16.msra.mxu0 %v7672_v0  ;;  %3929 = vmatpush1.bf16.msra.mxu1 %v7675_v47  ;;  %v7758_v0 = vld [vmem:[%s10410_s5 + $0xa4] ss:$16 sps:$4 sm:$0xff]   ;;  %v7761_v47 = vld [vmem:[%s10410_s5 + $0xac] ss:$16 sps:$4 sm:$0xff]  }
 0x2f4   :  { %3844 = vmatprep.subr.bf16.mxu0 %v7680_v48  ;;  %3930 = vmatprep.subr.bf16.mxu1 %v7683_v2  ;;  %v7756_v48 = vld [vmem:[%s10410_s5 + $0xa0] ss:$16 sps:$4 sm:$0xff]   ;;  %v7759_v2 = vld [vmem:[%s10410_s5 + $0xa8] ss:$16 sps:$4 sm:$0xff]  }
 0x2f7   :  { %3845 = vmatpush1.bf16.msra.mxu0 %v7678_v3  ;;  %3931 = vmatpush1.bf16.msra.mxu1 %v7681_v4  ;;  %v7764_v3 = vld [vmem:[%s10410_s5 + $0xc4] ss:$16 sps:$4 sm:$0xff]   ;;  %v7767_v4 = vld [vmem:[%s10410_s5 + $0xcc] ss:$16 sps:$4 sm:$0xff]  }
 0x2f8   :  { %3846 = vmatprep.subr.bf16.mxu0 %v7686_v44  ;;  %3932 = vmatprep.subr.bf16.mxu1 %v7689_v5  ;;  %v7762_v44 = vld [vmem:[%s10410_s5 + $0xc0] ss:$16 sps:$4 sm:$0xff]   ;;  %v7765_v5 = vld [vmem:[%s10410_s5 + $0xc8] ss:$16 sps:$4 sm:$0xff]  }
 0x2fb   :  { %3847 = vmatpush1.bf16.msra.mxu0 %v7684_v9  ;;  %3933 = vmatpush1.bf16.msra.mxu1 %v7687_v6  ;;  %v7770_v9 = vld [vmem:[%s10410_s5 + $0xe4] ss:$16 sps:$4 sm:$0xff]   ;;  %v7773_v6 = vld [vmem:[%s10410_s5 + $0xec] ss:$16 sps:$4 sm:$0xff]  }
 0x2fc   :  { %3848 = vmatprep.subr.bf16.mxu0 %v7692_v10  ;;  %3934 = vmatprep.subr.bf16.mxu1 %v7695_v11  ;;  %v7768_v10 = vld [vmem:[%s10410_s5 + $0xe0] ss:$16 sps:$4 sm:$0xff]   ;;  %v7771_v11 = vld [vmem:[%s10410_s5 + $0xe8] ss:$16 sps:$4 sm:$0xff]  }
 0x2ff   :  { %3849 = vmatpush1.bf16.msra.mxu0 %v7690_v12  ;;  %3935 = vmatpush1.bf16.msra.mxu1 %v7693_v13  ;;  %v7776_v12 = vld [vmem:[%s10410_s5 + $0x104] ss:$16 sps:$4 sm:$0xff]   ;;  %v7779_v13 = vld [vmem:[%s10410_s5 + $0x10c] ss:$16 sps:$4 sm:$0xff]  }
 0x300   :  { %3850 = vmatprep.subr.bf16.mxu0 %v7698_v1  ;;  %3936 = vmatprep.subr.bf16.mxu1 %v7701_v15  ;;  %v7774_v1 = vld [vmem:[%s10410_s5 + $0x100] ss:$16 sps:$4 sm:$0xff]   ;;  %v7777_v15 = vld [vmem:[%s10410_s5 + $0x108] ss:$16 sps:$4 sm:$0xff]  }
 0x303   :  { %3851 = vmatpush1.bf16.msra.mxu0 %v7696_v17  ;;  %3937 = vmatpush1.bf16.msra.mxu1 %v7699_v18  ;;  %v7782_v17 = vld [vmem:[%s10410_s5 + $0x124] ss:$16 sps:$4 sm:$0xff]   ;;  %v7785_v18 = vld [vmem:[%s10410_s5 + $0x12c] ss:$16 sps:$4 sm:$0xff]  }
 0x304   :  { %3852 = vmatprep.subr.bf16.mxu0 %v7704_v20  ;;  %3938 = vmatprep.subr.bf16.mxu1 %v7707_v21  ;;  %v7780_v20 = vld [vmem:[%s10410_s5 + $0x120] ss:$16 sps:$4 sm:$0xff]   ;;  %v7783_v21 = vld [vmem:[%s10410_s5 + $0x128] ss:$16 sps:$4 sm:$0xff]  }
 0x307   :  { %3853 = vmatpush1.bf16.msra.mxu0 %v7702_v19  ;;  %3939 = vmatpush1.bf16.msra.mxu1 %v7705_v22  ;;  %v7788_v19 = vld [vmem:[%s10410_s5 + $0x144] ss:$16 sps:$4 sm:$0xff]   ;;  %v7791_v22 = vld [vmem:[%s10410_s5 + $0x14c] ss:$16 sps:$4 sm:$0xff]  }
 0x308   :  { %3854 = vmatprep.subr.bf16.mxu0 %v7710_v23  ;;  %3940 = vmatprep.subr.bf16.mxu1 %v7713_v24  ;;  %v7786_v23 = vld [vmem:[%s10410_s5 + $0x140] ss:$16 sps:$4 sm:$0xff]   ;;  %v7789_v24 = vld [vmem:[%s10410_s5 + $0x148] ss:$16 sps:$4 sm:$0xff]  }
 0x30b   :  { %3855 = vmatpush1.bf16.msra.mxu0 %v7708_v16  ;;  %3941 = vmatpush1.bf16.msra.mxu1 %v7711_v25  ;;  %v7794_v16 = vld [vmem:[%s10410_s5 + $0x164] ss:$16 sps:$4 sm:$0xff]   ;;  %v7797_v25 = vld [vmem:[%s10410_s5 + $0x16c] ss:$16 sps:$4 sm:$0xff]  }
 0x30c   :  { %3856 = vmatprep.subr.bf16.mxu0 %v7716_v26  ;;  %3942 = vmatprep.subr.bf16.mxu1 %v7719_v29  ;;  %v7792_v26 = vld [vmem:[%s10410_s5 + $0x160] ss:$16 sps:$4 sm:$0xff]   ;;  %v7795_v29 = vld [vmem:[%s10410_s5 + $0x168] ss:$16 sps:$4 sm:$0xff]  }
 0x30f   :  { %3857 = vmatpush1.bf16.msra.mxu0 %v7714_v33  ;;  %3943 = vmatpush1.bf16.msra.mxu1 %v7717_v34  ;;  %v7800_v33 = vld [vmem:[%s10410_s5 + $0x184] ss:$16 sps:$4 sm:$0xff]   ;;  %v7803_v34 = vld [vmem:[%s10410_s5 + $0x18c] ss:$16 sps:$4 sm:$0xff]  }
 0x310   :  { %3858 = vmatprep.subr.bf16.mxu0 %v7722_v35  ;;  %3944 = vmatprep.subr.bf16.mxu1 %v7725_v37  ;;  %v7798_v35 = vld [vmem:[%s10410_s5 + $0x180] ss:$16 sps:$4 sm:$0xff]   ;;  %v7801_v37 = vld [vmem:[%s10410_s5 + $0x188] ss:$16 sps:$4 sm:$0xff]  }
 0x313   :  { %3859 = vmatpush1.bf16.msra.mxu0 %v7720_v39  ;;  %3945 = vmatpush1.bf16.msra.mxu1 %v7723_v7  ;;  %v7809_v39 = vld [vmem:[%s10410_s5 + $0x1ac] ss:$16 sps:$4 sm:$0xff]   ;;  %v7804_v7 = vld [vmem:[%s10410_s5 + $0x1a0] ss:$16 sps:$4 sm:$0xff]  }
 0x314   :  { %4597 = vmatprep.subr.bf16.mxu0 %v7728_v31  ;;  %4683 = vmatprep.subr.bf16.mxu1 %v7731_v41  ;;  %v7812_v31 = vld [vmem:[%s10410_s5 + $0x1c4] ss:$16 sps:$4 sm:$0xff]   ;;  %v7815_v41 = vld [vmem:[%s10410_s5 + $0x1cc] ss:$16 sps:$4 sm:$0xff]  }
 0x316   :  { %3861 = vmatmul.mubr.bf16.vlgmr.msra.gmra.mrb[20].mxu0 %v3137_v46  ;;  %3947 = vmatmul.mubr.bf16.vlgmr.msra.gmra.mrb[20].mxu1 %v3137_v46  ;;  %v7816_v46 = vld [vmem:[%s10410_s5 + $0x1e0] ss:$16 sps:$4 sm:$0xff]  }
 0x317   :  { %4598 = vmatpush1.bf16.msra.mxu0 %v7726_v43  ;;  %4629 = vmatprep.mubr.bf16.mxu0 %v9411_v49  ;;  %v7818_v43 = vld [vmem:[%s10410_s5 + $0x1e4] ss:$16 sps:$4 sm:$0xff]  }
 0x318   :  { %4684 = vmatpush1.bf16.msra.mxu1 %v7729_v45  ;;  %4715 = vmatprep.mubr.bf16.mxu1 %v9411_v49  ;;  %v7741_v49 = vld [vmem:[%s10410_s5 + $0x48] ss:$16 sps:$4 sm:$0xff]   ;;  %v7821_v45 = vld [vmem:[%s10410_s5 + $0x1ec] ss:$16 sps:$4 sm:$0xff]  }
 0x319   :  { %4599 = vmatprep.subr.bf16.mxu0 %v7734_v52  ;;  %4685 = vmatprep.subr.bf16.mxu1 %v7737_v50  ;;  %v7819_v52 = vld [vmem:[%s10410_s5 + $0x1e8] ss:$16 sps:$4 sm:$0xff]   ;;  %v7824_v50 = vld [vmem:[%s10410_s5 + $0x204] ss:$16 sps:$4 sm:$0xff]  }
 0x31b   :  { %4600 = vmatpush1.bf16.msra.mxu0 %v7732_v8  ;;  %v7827_v8 = vld [vmem:[%s10410_s5 + $0x20c] ss:$16 sps:$4 sm:$0xff]  }
 0x31c   :  { %4686 = vmatpush1.bf16.msra.mxu1 %v7735_v51  ;;  %4601 = vmatprep.subr.bf16.mxu0 %v7740_v53  ;;  %v7822_v51 = vld [vmem:[%s10410_s5 + $0x200] ss:$16 sps:$4 sm:$0xff]   ;;  %v7825_v53 = vld [vmem:[%s10410_s5 + $0x208] ss:$16 sps:$4 sm:$0xff]  }
 0x31d   :  { %4687 = vmatprep.subr.bf16.mxu1 %v7743_v54  ;;  %v2852_v54 = vld [vmem:[#allocation3] sm:$0xff] }
 0x31f   :  { %4602 = vmatpush1.bf16.msra.mxu0 %v7738_v55  ;;  %v7830_v55 = vld [vmem:[%s10410_s5 + $0x224] ss:$16 sps:$4 sm:$0xff]  }
 0x320   :  { %4688 = vmatpush1.bf16.msra.mxu1 %v7741_v49  ;;  %4603 = vmatprep.subr.bf16.mxu0 %v7746_v56  ;;  %v7833_v49 = vld [vmem:[%s10410_s5 + $0x22c] ss:$16 sps:$4 sm:$0xff]   ;;  %v2855_v56 = vld [vmem:[#allocation3 + $0x18] sm:$0xff] }
 0x321   :  { %4689 = vmatprep.subr.bf16.mxu1 %v7749_v57  ;;  %v7828_v57 = vld [vmem:[%s10410_s5 + $0x220] ss:$16 sps:$4 sm:$0xff]  }
 0x323   :  { %4604 = vmatpush1.bf16.msra.mxu0 %v7744_v58  ;;  %v7831_v58 = vld [vmem:[%s10410_s5 + $0x228] ss:$16 sps:$4 sm:$0xff]  }
 0x324   :  { %4690 = vmatpush1.bf16.msra.mxu1 %v7747_v59  ;;  %4605 = vmatprep.subr.bf16.mxu0 %v7752_v60  ;;  %v7836_v59 = vld [vmem:[%s10410_s5 + $0x244] ss:$16 sps:$4 sm:$0xff]   ;;  %v7839_v60 = vld [vmem:[%s10410_s5 + $0x24c] ss:$16 sps:$4 sm:$0xff]  }
 0x325   :  { %4691 = vmatprep.subr.bf16.mxu1 %v7755_v61  ;;  %v7834_v61 = vld [vmem:[%s10410_s5 + $0x240] ss:$16 sps:$4 sm:$0xff]  }
 0x327   :  { %4606 = vmatpush1.bf16.msra.mxu0 %v7750_v62  ;;  %v7837_v62 = vld [vmem:[%s10410_s5 + $0x248] ss:$16 sps:$4 sm:$0xff]  }
 0x328   :  { %4692 = vmatpush1.bf16.msra.mxu1 %v7753_v63  ;;  %4607 = vmatprep.subr.bf16.mxu0 %v7758_v0  ;;  %v7842_v63 = vld [vmem:[%s10410_s5 + $0x264] ss:$16 sps:$4 sm:$0xff]   ;;  %v7845_v0 = vld [vmem:[%s10410_s5 + $0x26c] ss:$16 sps:$4 sm:$0xff]  }
 0x329   :  { %4693 = vmatprep.subr.bf16.mxu1 %v7761_v47  ;;  %v7840_v47 = vld [vmem:[%s10410_s5 + $0x260] ss:$16 sps:$4 sm:$0xff]  }
 0x32b   :  { %4608 = vmatpush1.bf16.msra.mxu0 %v7756_v48  ;;  %v7843_v48 = vld [vmem:[%s10410_s5 + $0x268] ss:$16 sps:$4 sm:$0xff]  }
 0x32c   :  { %4694 = vmatpush1.bf16.msra.mxu1 %v7759_v2  ;;  %4609 = vmatprep.subr.bf16.mxu0 %v7764_v3  ;;  %v7848_v2 = vld [vmem:[%s10410_s5 + $0x284] ss:$16 sps:$4 sm:$0xff]   ;;  %v7851_v3 = vld [vmem:[%s10410_s5 + $0x28c] ss:$16 sps:$4 sm:$0xff]  }
 0x32d   :  { %4695 = vmatprep.subr.bf16.mxu1 %v7767_v4  ;;  %v7846_v4 = vld [vmem:[%s10410_s5 + $0x280] ss:$16 sps:$4 sm:$0xff]  }
 0x32f   :  { %4610 = vmatpush1.bf16.msra.mxu0 %v7762_v44  ;;  %v7849_v44 = vld [vmem:[%s10410_s5 + $0x288] ss:$16 sps:$4 sm:$0xff]  }
 0x330   :  { %4696 = vmatpush1.bf16.msra.mxu1 %v7765_v5  ;;  %4611 = vmatprep.subr.bf16.mxu0 %v7770_v9  ;;  %v7854_v5 = vld [vmem:[%s10410_s5 + $0x2a4] ss:$16 sps:$4 sm:$0xff]   ;;  %v7857_v9 = vld [vmem:[%s10410_s5 + $0x2ac] ss:$16 sps:$4 sm:$0xff]  }
 0x331   :  { %4697 = vmatprep.subr.bf16.mxu1 %v7773_v6  ;;  %v7852_v6 = vld [vmem:[%s10410_s5 + $0x2a0] ss:$16 sps:$4 sm:$0xff]  }
 0x333   :  { %4612 = vmatpush1.bf16.msra.mxu0 %v7768_v10  ;;  %v7855_v10 = vld [vmem:[%s10410_s5 + $0x2a8] ss:$16 sps:$4 sm:$0xff]  }
 0x334   :  { %4698 = vmatpush1.bf16.msra.mxu1 %v7771_v11  ;;  %4613 = vmatprep.subr.bf16.mxu0 %v7776_v12  ;;  %v7860_v11 = vld [vmem:[%s10410_s5 + $0x2c4] ss:$16 sps:$4 sm:$0xff]   ;;  %v7863_v12 = vld [vmem:[%s10410_s5 + $0x2cc] ss:$16 sps:$4 sm:$0xff]  }
 0x335   :  { %4699 = vmatprep.subr.bf16.mxu1 %v7779_v13  ;;  %v7858_v13 = vld [vmem:[%s10410_s5 + $0x2c0] ss:$16 sps:$4 sm:$0xff]  }
 0x337   :  { %4614 = vmatpush1.bf16.msra.mxu0 %v7774_v1  ;;  %v7861_v1 = vld [vmem:[%s10410_s5 + $0x2c8] ss:$16 sps:$4 sm:$0xff]  }
 0x338   :  { %4700 = vmatpush1.bf16.msra.mxu1 %v7777_v15  ;;  %4615 = vmatprep.subr.bf16.mxu0 %v7782_v17  ;;  %v7866_v15 = vld [vmem:[%s10410_s5 + $0x2e4] ss:$16 sps:$4 sm:$0xff]   ;;  %v7869_v17 = vld [vmem:[%s10410_s5 + $0x2ec] ss:$16 sps:$4 sm:$0xff]  }
 0x339   :  { %4701 = vmatprep.subr.bf16.mxu1 %v7785_v18  ;;  %v7864_v18 = vld [vmem:[%s10410_s5 + $0x2e0] ss:$16 sps:$4 sm:$0xff]  }
 0x33b   :  { %4616 = vmatpush1.bf16.msra.mxu0 %v7780_v20  ;;  %v7867_v20 = vld [vmem:[%s10410_s5 + $0x2e8] ss:$16 sps:$4 sm:$0xff]  }
 0x33c   :  { %4702 = vmatpush1.bf16.msra.mxu1 %v7783_v21  ;;  %4617 = vmatprep.subr.bf16.mxu0 %v7788_v19  ;;  %v7872_v21 = vld [vmem:[%s10410_s5 + $0x304] ss:$16 sps:$4 sm:$0xff]   ;;  %v7875_v19 = vld [vmem:[%s10410_s5 + $0x30c] ss:$16 sps:$4 sm:$0xff]  }
 0x33d   :  { %4703 = vmatprep.subr.bf16.mxu1 %v7791_v22  ;;  %v7870_v22 = vld [vmem:[%s10410_s5 + $0x300] ss:$16 sps:$4 sm:$0xff]  }
 0x33f   :  { %4618 = vmatpush1.bf16.msra.mxu0 %v7786_v23  ;;  %v7873_v23 = vld [vmem:[%s10410_s5 + $0x308] ss:$16 sps:$4 sm:$0xff]  }
 0x340   :  { %4704 = vmatpush1.bf16.msra.mxu1 %v7789_v24  ;;  %4619 = vmatprep.subr.bf16.mxu0 %v7794_v16  ;;  %v7878_v24 = vld [vmem:[%s10410_s5 + $0x324] ss:$16 sps:$4 sm:$0xff]   ;;  %v7881_v16 = vld [vmem:[%s10410_s5 + $0x32c] ss:$16 sps:$4 sm:$0xff]  }
 0x341   :  { %4705 = vmatprep.subr.bf16.mxu1 %v7797_v25  ;;  %v7876_v25 = vld [vmem:[%s10410_s5 + $0x320] ss:$16 sps:$4 sm:$0xff]  }
 0x343   :  { %4620 = vmatpush1.bf16.msra.mxu0 %v7792_v26  ;;  %v7879_v26 = vld [vmem:[%s10410_s5 + $0x328] ss:$16 sps:$4 sm:$0xff]  }
 0x344   :  { %4706 = vmatpush1.bf16.msra.mxu1 %v7795_v29  ;;  %4621 = vmatprep.subr.bf16.mxu0 %v7800_v33  ;;  %v7884_v29 = vld [vmem:[%s10410_s5 + $0x344] ss:$16 sps:$4 sm:$0xff]   ;;  %v7887_v33 = vld [vmem:[%s10410_s5 + $0x34c] ss:$16 sps:$4 sm:$0xff]  }
 0x345   :  { %4707 = vmatprep.subr.bf16.mxu1 %v7803_v34  ;;  %v7882_v34 = vld [vmem:[%s10410_s5 + $0x340] ss:$16 sps:$4 sm:$0xff]  }
 0x347   :  { %4622 = vmatpush1.bf16.msra.mxu0 %v7798_v35  ;;  %v7885_v35 = vld [vmem:[%s10410_s5 + $0x348] ss:$16 sps:$4 sm:$0xff]  }
 0x348   :  { %4708 = vmatpush1.bf16.msra.mxu1 %v7801_v37  ;;  %4623 = vmatprep.subr.bf16.mxu0 %v7806_v38  ;;  %v7890_v37 = vld [vmem:[%s10410_s5 + $0x364] ss:$16 sps:$4 sm:$0xff]   ;;  %v7893_v38 = vld [vmem:[%s10410_s5 + $0x36c] ss:$16 sps:$4 sm:$0xff]  }
 0x349   :  { %4709 = vmatprep.subr.bf16.mxu1 %v7809_v39  ;;  %v7888_v39 = vld [vmem:[%s10410_s5 + $0x360] ss:$16 sps:$4 sm:$0xff]  }
 0x34b   :  { %4624 = vmatpush1.bf16.msra.mxu0 %v7804_v7  ;;  %v7891_v7 = vld [vmem:[%s10410_s5 + $0x368] ss:$16 sps:$4 sm:$0xff]  }
 0x34c   :  { %4710 = vmatpush1.bf16.msra.mxu1 %v7807_v40  ;;  %4625 = vmatprep.subr.bf16.mxu0 %v7812_v31  ;;  %v7896_v40 = vld [vmem:[%s10410_s5 + $0x384] ss:$16 sps:$4 sm:$0xff]   ;;  %v7899_v31 = vld [vmem:[%s10410_s5 + $0x38c] ss:$16 sps:$4 sm:$0xff]  }
 0x34d   :  { %4711 = vmatprep.subr.bf16.mxu1 %v7815_v41  ;;  %v7894_v41 = vld [vmem:[%s10410_s5 + $0x380] ss:$16 sps:$4 sm:$0xff]  }
 0x34f   :  { %4626 = vmatpush1.bf16.msra.mxu0 %v7810_v42  ;;  %v7897_v42 = vld [vmem:[%s10410_s5 + $0x388] ss:$16 sps:$4 sm:$0xff]  }
 0x350   :  { %4712 = vmatpush1.bf16.msra.mxu1 %v7813_v32  ;;  %4627 = vmatprep.subr.bf16.mxu0 %v7818_v43  ;;  %v7902_v32 = vld [vmem:[%s10410_s5 + $0x3a4] ss:$16 sps:$4 sm:$0xff]   ;;  %v7905_v43 = vld [vmem:[%s10410_s5 + $0x3ac] ss:$16 sps:$4 sm:$0xff]  }
 0x351   :  { %4713 = vmatprep.subr.bf16.mxu1 %v7821_v45  ;;  %v7900_v45 = vld [vmem:[%s10410_s5 + $0x3a0] ss:$16 sps:$4 sm:$0xff]  }
 0x353   :  { %4628 = vmatpush1.bf16.msra.mxu0 %v7816_v46  ;;  %v7903_v46 = vld [vmem:[%s10410_s5 + $0x3a8] ss:$16 sps:$4 sm:$0xff]  }
 0x354   :  { %4714 = vmatpush1.bf16.msra.mxu1 %v7819_v52  ;;  %4640 = vmatprep.subr.bf16.mxu0 %v7824_v50  ;;  %v7908_v52 = vld [vmem:[%s10410_s5 + $0x3c4] ss:$16 sps:$4 sm:$0xff]   ;;  %v7911_v50 = vld [vmem:[%s10410_s5 + $0x3cc] ss:$16 sps:$4 sm:$0xff]  }
 0x355   :  { %4726 = vmatprep.subr.bf16.mxu1 %v7827_v8  ;;  %v7906_v8 = vld [vmem:[%s10410_s5 + $0x3c0] ss:$16 sps:$4 sm:$0xff]  }
 0x356   :  { %4630 = vmatmul.mubr.bf16.vlgmr.msra.gmra.mrb[20].mxu0 %v2852_v54 }
 0x357   :  { %4716 = vmatmul.mubr.bf16.vlgmr.msra.gmra.mrb[20].mxu1 %v2852_v54  ;;  %4641 = vmatpush1.bf16.msra.mxu0 %v7822_v51  ;;  %v7909_v51 = vld [vmem:[%s10410_s5 + $0x3c8] ss:$16 sps:$4 sm:$0xff]   ;;  %v7917_v54 = vld [vmem:[%s10410_s5 + $0x3ec] ss:$16 sps:$4 sm:$0xff]  }
 0x358   :  { %4672 = vmatprep.mubr.bf16.mxu0 %v2855_v56  ;;  %4727 = vmatpush1.bf16.msra.mxu1 %v7825_v53  ;;  %v7914_v53 = vld [vmem:[%s10410_s5 + $0x3e4] ss:$16 sps:$4 sm:$0xff]  }
 0x359   :  { %4758 = vmatprep.mubr.bf16.mxu1 %v2855_v56  ;;  %4642 = vmatprep.subr.bf16.mxu0 %v7830_v55  ;;  %v7912_v55 = vld [vmem:[%s10410_s5 + $0x3e0] ss:$16 sps:$4 sm:$0xff]   ;;  %v7920_v56 = vld [vmem:[%s10410_s5 + $0x804] ss:$16 sps:$4 sm:$0xff]  }
 0x35a   :  { %4728 = vmatprep.subr.bf16.mxu1 %v7833_v49  ;;  %v7915_v49 = vld [vmem:[%s10410_s5 + $0x3e8] ss:$16 sps:$4 sm:$0xff]  }
 0x35b   :  { %4643 = vmatpush1.bf16.msra.mxu0 %v7828_v57  ;;  %v7923_v57 = vld [vmem:[%s10410_s5 + $0x80c] ss:$16 sps:$4 sm:$0xff]  }
 0x35c   :  { %4729 = vmatpush1.bf16.msra.mxu1 %v7831_v58  ;;  %4644 = vmatprep.subr.bf16.mxu0 %v7836_v59  ;;  %v7918_v58 = vld [vmem:[%s10410_s5 + $0x800] ss:$16 sps:$4 sm:$0xff]   ;;  %v7921_v59 = vld [vmem:[%s10410_s5 + $0x808] ss:$16 sps:$4 sm:$0xff]  }
 0x35d   :  { %4730 = vmatprep.subr.bf16.mxu1 %v7839_v60  ;;  %v2854_v60 = vld [vmem:[#allocation3 + $0x10] sm:$0xff] }
 0x35f   :  { %4645 = vmatpush1.bf16.msra.mxu0 %v7834_v61  ;;  %v7926_v61 = vld [vmem:[%s10410_s5 + $0x824] ss:$16 sps:$4 sm:$0xff]  }
 0x360   :  { %4731 = vmatpush1.bf16.msra.mxu1 %v7837_v62  ;;  %4646 = vmatprep.subr.bf16.mxu0 %v7842_v63  ;;  %v7929_v62 = vld [vmem:[%s10410_s5 + $0x82c] ss:$16 sps:$4 sm:$0xff]   ;;  %v4770_v63 = vld [vmem:[#allocation3 + $0x28] sm:$0xff] }
 0x361   :  { %4732 = vmatprep.subr.bf16.mxu1 %v7845_v0  ;;  %v7924_v0 = vld [vmem:[%s10410_s5 + $0x820] ss:$16 sps:$4 sm:$0xff]  }
 0x363   :  { %4647 = vmatpush1.bf16.msra.mxu0 %v7840_v47  ;;  %v7927_v47 = vld [vmem:[%s10410_s5 + $0x828] ss:$16 sps:$4 sm:$0xff]  }
 0x364   :  { %4733 = vmatpush1.bf16.msra.mxu1 %v7843_v48  ;;  %4648 = vmatprep.subr.bf16.mxu0 %v7848_v2  ;;  %v7932_v48 = vld [vmem:[%s10410_s5 + $0x844] ss:$16 sps:$4 sm:$0xff]   ;;  %v7935_v2 = vld [vmem:[%s10410_s5 + $0x84c] ss:$16 sps:$4 sm:$0xff]  }
 0x365   :  { %4734 = vmatprep.subr.bf16.mxu1 %v7851_v3  ;;  %v7930_v3 = vld [vmem:[%s10410_s5 + $0x840] ss:$16 sps:$4 sm:$0xff]  }
 0x367   :  { %4649 = vmatpush1.bf16.msra.mxu0 %v7846_v4  ;;  %v7933_v4 = vld [vmem:[%s10410_s5 + $0x848] ss:$16 sps:$4 sm:$0xff]  }
 0x368   :  { %4735 = vmatpush1.bf16.msra.mxu1 %v7849_v44  ;;  %4650 = vmatprep.subr.bf16.mxu0 %v7854_v5  ;;  %v7938_v44 = vld [vmem:[%s10410_s5 + $0x864] ss:$16 sps:$4 sm:$0xff]   ;;  %v7941_v5 = vld [vmem:[%s10410_s5 + $0x86c] ss:$16 sps:$4 sm:$0xff]  }
 0x369   :  { %4736 = vmatprep.subr.bf16.mxu1 %v7857_v9  ;;  %v7936_v9 = vld [vmem:[%s10410_s5 + $0x860] ss:$16 sps:$4 sm:$0xff]  }
 0x36b   :  { %4651 = vmatpush1.bf16.msra.mxu0 %v7852_v6  ;;  %v7939_v6 = vld [vmem:[%s10410_s5 + $0x868] ss:$16 sps:$4 sm:$0xff]  }
 0x36c   :  { %4737 = vmatpush1.bf16.msra.mxu1 %v7855_v10  ;;  %4652 = vmatprep.subr.bf16.mxu0 %v7860_v11  ;;  %v7944_v10 = vld [vmem:[%s10410_s5 + $0x884] ss:$16 sps:$4 sm:$0xff]   ;;  %v7947_v11 = vld [vmem:[%s10410_s5 + $0x88c] ss:$16 sps:$4 sm:$0xff]  }
 0x36d   :  { %4738 = vmatprep.subr.bf16.mxu1 %v7863_v12  ;;  %v7942_v12 = vld [vmem:[%s10410_s5 + $0x880] ss:$16 sps:$4 sm:$0xff]  }
 0x36f   :  { %4653 = vmatpush1.bf16.msra.mxu0 %v7858_v13  ;;  %v7945_v13 = vld [vmem:[%s10410_s5 + $0x888] ss:$16 sps:$4 sm:$0xff]  }
 0x370   :  { %4739 = vmatpush1.bf16.msra.mxu1 %v7861_v1  ;;  %4654 = vmatprep.subr.bf16.mxu0 %v7866_v15  ;;  %v7950_v1 = vld [vmem:[%s10410_s5 + $0x8a4] ss:$16 sps:$4 sm:$0xff]   ;;  %v7953_v15 = vld [vmem:[%s10410_s5 + $0x8ac] ss:$16 sps:$4 sm:$0xff]  }
 0x371   :  { %4740 = vmatprep.subr.bf16.mxu1 %v7869_v17  ;;  %v7948_v17 = vld [vmem:[%s10410_s5 + $0x8a0] ss:$16 sps:$4 sm:$0xff]  }
 0x373   :  { %4655 = vmatpush1.bf16.msra.mxu0 %v7864_v18  ;;  %v7951_v18 = vld [vmem:[%s10410_s5 + $0x8a8] ss:$16 sps:$4 sm:$0xff]  }
 0x374   :  { %4741 = vmatpush1.bf16.msra.mxu1 %v7867_v20  ;;  %4656 = vmatprep.subr.bf16.mxu0 %v7872_v21  ;;  %v7956_v20 = vld [vmem:[%s10410_s5 + $0x8c4] ss:$16 sps:$4 sm:$0xff]   ;;  %v7959_v21 = vld [vmem:[%s10410_s5 + $0x8cc] ss:$16 sps:$4 sm:$0xff]  }
 0x375   :  { %4742 = vmatprep.subr.bf16.mxu1 %v7875_v19  ;;  %v7954_v19 = vld [vmem:[%s10410_s5 + $0x8c0] ss:$16 sps:$4 sm:$0xff]  }
 0x377   :  { %4657 = vmatpush1.bf16.msra.mxu0 %v7870_v22  ;;  %v7957_v22 = vld [vmem:[%s10410_s5 + $0x8c8] ss:$16 sps:$4 sm:$0xff]  }
 0x378   :  { %4743 = vmatpush1.bf16.msra.mxu1 %v7873_v23  ;;  %4658 = vmatprep.subr.bf16.mxu0 %v7878_v24  ;;  %v7962_v23 = vld [vmem:[%s10410_s5 + $0x8e4] ss:$16 sps:$4 sm:$0xff]   ;;  %v7965_v24 = vld [vmem:[%s10410_s5 + $0x8ec] ss:$16 sps:$4 sm:$0xff]  }
 0x379   :  { %4744 = vmatprep.subr.bf16.mxu1 %v7881_v16  ;;  %v7960_v16 = vld [vmem:[%s10410_s5 + $0x8e0] ss:$16 sps:$4 sm:$0xff]  }
 0x37b   :  { %4659 = vmatpush1.bf16.msra.mxu0 %v7876_v25  ;;  %v7963_v25 = vld [vmem:[%s10410_s5 + $0x8e8] ss:$16 sps:$4 sm:$0xff]  }
 0x37c   :  { %4745 = vmatpush1.bf16.msra.mxu1 %v7879_v26  ;;  %4660 = vmatprep.subr.bf16.mxu0 %v7884_v29  ;;  %v7968_v26 = vld [vmem:[%s10410_s5 + $0x904] ss:$16 sps:$4 sm:$0xff]   ;;  %v7971_v29 = vld [vmem:[%s10410_s5 + $0x90c] ss:$16 sps:$4 sm:$0xff]  }
 0x37d   :  { %4746 = vmatprep.subr.bf16.mxu1 %v7887_v33  ;;  %v7966_v33 = vld [vmem:[%s10410_s5 + $0x900] ss:$16 sps:$4 sm:$0xff]  }
 0x37f   :  { %4661 = vmatpush1.bf16.msra.mxu0 %v7882_v34  ;;  %v7969_v34 = vld [vmem:[%s10410_s5 + $0x908] ss:$16 sps:$4 sm:$0xff]  }
 0x380   :  { %4747 = vmatpush1.bf16.msra.mxu1 %v7885_v35  ;;  %4662 = vmatprep.subr.bf16.mxu0 %v7890_v37  ;;  %v7974_v35 = vld [vmem:[%s10410_s5 + $0x924] ss:$16 sps:$4 sm:$0xff]   ;;  %v7977_v37 = vld [vmem:[%s10410_s5 + $0x92c] ss:$16 sps:$4 sm:$0xff]  }
 0x381   :  { %4748 = vmatprep.subr.bf16.mxu1 %v7893_v38  ;;  %v7972_v38 = vld [vmem:[%s10410_s5 + $0x920] ss:$16 sps:$4 sm:$0xff]  }
 0x383   :  { %4663 = vmatpush1.bf16.msra.mxu0 %v7888_v39  ;;  %v7975_v39 = vld [vmem:[%s10410_s5 + $0x928] ss:$16 sps:$4 sm:$0xff]  }
 0x384   :  { %4749 = vmatpush1.bf16.msra.mxu1 %v7891_v7  ;;  %4664 = vmatprep.subr.bf16.mxu0 %v7896_v40  ;;  %v7980_v7 = vld [vmem:[%s10410_s5 + $0x944] ss:$16 sps:$4 sm:$0xff]   ;;  %v7983_v40 = vld [vmem:[%s10410_s5 + $0x94c] ss:$16 sps:$4 sm:$0xff]  }
 0x385   :  { %4750 = vmatprep.subr.bf16.mxu1 %v7899_v31  ;;  %v7978_v31 = vld [vmem:[%s10410_s5 + $0x940] ss:$16 sps:$4 sm:$0xff]  }
 0x387   :  { %4665 = vmatpush1.bf16.msra.mxu0 %v7894_v41  ;;  %v7981_v41 = vld [vmem:[%s10410_s5 + $0x948] ss:$16 sps:$4 sm:$0xff]  }
 0x388   :  { %4751 = vmatpush1.bf16.msra.mxu1 %v7897_v42  ;;  %4666 = vmatprep.subr.bf16.mxu0 %v7902_v32  ;;  %v7986_v42 = vld [vmem:[%s10410_s5 + $0x964] ss:$16 sps:$4 sm:$0xff]   ;;  %v7989_v32 = vld [vmem:[%s10410_s5 + $0x96c] ss:$16 sps:$4 sm:$0xff]  }
 0x389   :  { %4752 = vmatprep.subr.bf16.mxu1 %v7905_v43  ;;  %v7984_v43 = vld [vmem:[%s10410_s5 + $0x960] ss:$16 sps:$4 sm:$0xff]  }
 0x38b   :  { %4667 = vmatpush1.bf16.msra.mxu0 %v7900_v45  ;;  %v7987_v45 = vld [vmem:[%s10410_s5 + $0x968] ss:$16 sps:$4 sm:$0xff]  }
 0x38c   :  { %4753 = vmatpush1.bf16.msra.mxu1 %v7903_v46  ;;  %4668 = vmatprep.subr.bf16.mxu0 %v7908_v52  ;;  %v7992_v46 = vld [vmem:[%s10410_s5 + $0x984] ss:$16 sps:$4 sm:$0xff]   ;;  %v7995_v52 = vld [vmem:[%s10410_s5 + $0x98c] ss:$16 sps:$4 sm:$0xff]  }
 0x38d   :  { %4754 = vmatprep.subr.bf16.mxu1 %v7911_v50  ;;  %v7990_v50 = vld [vmem:[%s10410_s5 + $0x980] ss:$16 sps:$4 sm:$0xff]  }
 0x38f   :  { %4669 = vmatpush1.bf16.msra.mxu0 %v7906_v8  ;;  %v7993_v8 = vld [vmem:[%s10410_s5 + $0x988] ss:$16 sps:$4 sm:$0xff]  }
 0x390   :  { %4755 = vmatpush1.bf16.msra.mxu1 %v7909_v51  ;;  %4670 = vmatprep.subr.bf16.mxu0 %v7914_v53  ;;  %v7998_v51 = vld [vmem:[%s10410_s5 + $0x9a4] ss:$16 sps:$4 sm:$0xff]   ;;  %v8001_v53 = vld [vmem:[%s10410_s5 + $0x9ac] ss:$16 sps:$4 sm:$0xff]  }
 0x391   :  { %4756 = vmatprep.subr.bf16.mxu1 %v7917_v54  ;;  %v7996_v54 = vld [vmem:[%s10410_s5 + $0x9a0] ss:$16 sps:$4 sm:$0xff]  }
 0x393   :  { %4671 = vmatpush1.bf16.msra.mxu0 %v7912_v55  ;;  %v7999_v55 = vld [vmem:[%s10410_s5 + $0x9a8] ss:$16 sps:$4 sm:$0xff]  }
 0x394   :  { %4757 = vmatpush1.bf16.msra.mxu1 %v7915_v49  ;;  %5542 = vmatprep.subr.bf16.mxu0 %v7920_v56  ;;  %v8004_v49 = vld [vmem:[%s10410_s5 + $0x9c4] ss:$16 sps:$4 sm:$0xff]   ;;  %v8007_v56 = vld [vmem:[%s10410_s5 + $0x9cc] ss:$16 sps:$4 sm:$0xff]  }
 0x395   :  { %5628 = vmatprep.subr.bf16.mxu1 %v7923_v57  ;;  %v8002_v57 = vld [vmem:[%s10410_s5 + $0x9c0] ss:$16 sps:$4 sm:$0xff]  }
 0x396   :  { %4673 = vmatmul.mubr.bf16.vlgmr.msra.gmra.mrb[20].mxu0 %v2854_v60 }
 0x397   :  { %4759 = vmatmul.mubr.bf16.vlgmr.msra.gmra.mrb[20].mxu1 %v2854_v60  ;;  %5543 = vmatpush1.bf16.msra.mxu0 %v7918_v58  ;;  %v8005_v58 = vld [vmem:[%s10410_s5 + $0x9c8] ss:$16 sps:$4 sm:$0xff]   ;;  %v8013_v60 = vld [vmem:[%s10410_s5 + $0x9ec] ss:$16 sps:$4 sm:$0xff]  }
 0x398   :  { %5574 = vmatprep.mubr.bf16.mxu0 %v4770_v63  ;;  %5629 = vmatpush1.bf16.msra.mxu1 %v7921_v59  ;;  %v8010_v59 = vld [vmem:[%s10410_s5 + $0x9e4] ss:$16 sps:$4 sm:$0xff]  }
 0x399   :  { %5660 = vmatprep.mubr.bf16.mxu1 %v4770_v63  ;;  %5544 = vmatprep.subr.bf16.mxu0 %v7926_v61  ;;  %v8008_v61 = vld [vmem:[%s10410_s5 + $0x9e0] ss:$16 sps:$4 sm:$0xff]   ;;  %v8016_v63 = vld [vmem:[%s10410_s5 + $0xa04] ss:$16 sps:$4 sm:$0xff]  }
 0x39a   :  { %5630 = vmatprep.subr.bf16.mxu1 %v7929_v62  ;;  %v8011_v62 = vld [vmem:[%s10410_s5 + $0x9e8] ss:$16 sps:$4 sm:$0xff]  }
 0x39b   :  { %5545 = vmatpush1.bf16.msra.mxu0 %v7924_v0  ;;  %v8019_v0 = vld [vmem:[%s10410_s5 + $0xa0c] ss:$16 sps:$4 sm:$0xff]  }
 0x39c   :  { %5631 = vmatpush1.bf16.msra.mxu1 %v7927_v47  ;;  %5546 = vmatprep.subr.bf16.mxu0 %v7932_v48  ;;  %v8014_v47 = vld [vmem:[%s10410_s5 + $0xa00] ss:$16 sps:$4 sm:$0xff]   ;;  %v8017_v48 = vld [vmem:[%s10410_s5 + $0xa08] ss:$16 sps:$4 sm:$0xff]  }
 0x39d   :  { %5632 = vmatprep.subr.bf16.mxu1 %v7935_v2  ;;  %v4769_v2 = vld [vmem:[#allocation3 + $0x20] sm:$0xff] }
 0x39f   :  { %5547 = vmatpush1.bf16.msra.mxu0 %v7930_v3  ;;  %v8022_v3 = vld [vmem:[%s10410_s5 + $0xa24] ss:$16 sps:$4 sm:$0xff]  }
 0x3a0   :  { %5633 = vmatpush1.bf16.msra.mxu1 %v7933_v4  ;;  %5548 = vmatprep.subr.bf16.mxu0 %v7938_v44  ;;  %v8025_v4 = vld [vmem:[%s10410_s5 + $0xa2c] ss:$16 sps:$4 sm:$0xff]   ;;  %v4772_v44 = vld [vmem:[#allocation3 + $0x38] sm:$0xff] }
 0x3a1   :  { %5634 = vmatprep.subr.bf16.mxu1 %v7941_v5  ;;  %v8020_v5 = vld [vmem:[%s10410_s5 + $0xa20] ss:$16 sps:$4 sm:$0xff]  }
 0x3a3   :  { %5549 = vmatpush1.bf16.msra.mxu0 %v7936_v9  ;;  %v8023_v9 = vld [vmem:[%s10410_s5 + $0xa28] ss:$16 sps:$4 sm:$0xff]  }
 0x3a4   :  { %5635 = vmatpush1.bf16.msra.mxu1 %v7939_v6  ;;  %5550 = vmatprep.subr.bf16.mxu0 %v7944_v10  ;;  %v8028_v6 = vld [vmem:[%s10410_s5 + $0xa44] ss:$16 sps:$4 sm:$0xff]   ;;  %v8031_v10 = vld [vmem:[%s10410_s5 + $0xa4c] ss:$16 sps:$4 sm:$0xff]  }
 0x3a5   :  { %5636 = vmatprep.subr.bf16.mxu1 %v7947_v11  ;;  %v8026_v11 = vld [vmem:[%s10410_s5 + $0xa40] ss:$16 sps:$4 sm:$0xff]  }
 0x3a7   :  { %5551 = vmatpush1.bf16.msra.mxu0 %v7942_v12  ;;  %v8029_v12 = vld [vmem:[%s10410_s5 + $0xa48] ss:$16 sps:$4 sm:$0xff]  }
 0x3a8   :  { %5637 = vmatpush1.bf16.msra.mxu1 %v7945_v13  ;;  %5552 = vmatprep.subr.bf16.mxu0 %v7950_v1  ;;  %v8034_v13 = vld [vmem:[%s10410_s5 + $0xa64] ss:$16 sps:$4 sm:$0xff]   ;;  %v8037_v1 = vld [vmem:[%s10410_s5 + $0xa6c] ss:$16 sps:$4 sm:$0xff]  }
 0x3a9   :  { %5638 = vmatprep.subr.bf16.mxu1 %v7953_v15  ;;  %v8032_v15 = vld [vmem:[%s10410_s5 + $0xa60] ss:$16 sps:$4 sm:$0xff]  }
 0x3ab   :  { %5553 = vmatpush1.bf16.msra.mxu0 %v7948_v17  ;;  %v8035_v17 = vld [vmem:[%s10410_s5 + $0xa68] ss:$16 sps:$4 sm:$0xff]  }
 0x3ac   :  { %5639 = vmatpush1.bf16.msra.mxu1 %v7951_v18  ;;  %5554 = vmatprep.subr.bf16.mxu0 %v7956_v20  ;;  %v8040_v18 = vld [vmem:[%s10410_s5 + $0xa84] ss:$16 sps:$4 sm:$0xff]   ;;  %v8043_v20 = vld [vmem:[%s10410_s5 + $0xa8c] ss:$16 sps:$4 sm:$0xff]  }
 0x3ad   :  { %5640 = vmatprep.subr.bf16.mxu1 %v7959_v21  ;;  %v8038_v21 = vld [vmem:[%s10410_s5 + $0xa80] ss:$16 sps:$4 sm:$0xff]  }
 0x3af   :  { %5555 = vmatpush1.bf16.msra.mxu0 %v7954_v19  ;;  %v8041_v19 = vld [vmem:[%s10410_s5 + $0xa88] ss:$16 sps:$4 sm:$0xff]  }
 0x3b0   :  { %5641 = vmatpush1.bf16.msra.mxu1 %v7957_v22  ;;  %5556 = vmatprep.subr.bf16.mxu0 %v7962_v23  ;;  %v8046_v22 = vld [vmem:[%s10410_s5 + $0xaa4] ss:$16 sps:$4 sm:$0xff]   ;;  %v8049_v23 = vld [vmem:[%s10410_s5 + $0xaac] ss:$16 sps:$4 sm:$0xff]  }
 0x3b1   :  { %5642 = vmatprep.subr.bf16.mxu1 %v7965_v24  ;;  %v8044_v24 = vld [vmem:[%s10410_s5 + $0xaa0] ss:$16 sps:$4 sm:$0xff]  }
 0x3b3   :  { %5557 = vmatpush1.bf16.msra.mxu0 %v7960_v16  ;;  %v8047_v16 = vld [vmem:[%s10410_s5 + $0xaa8] ss:$16 sps:$4 sm:$0xff]  }
 0x3b4   :  { %5643 = vmatpush1.bf16.msra.mxu1 %v7963_v25  ;;  %5558 = vmatprep.subr.bf16.mxu0 %v7968_v26  ;;  %v8052_v25 = vld [vmem:[%s10410_s5 + $0xac4] ss:$16 sps:$4 sm:$0xff]   ;;  %v8055_v26 = vld [vmem:[%s10410_s5 + $0xacc] ss:$16 sps:$4 sm:$0xff]  }
 0x3b5   :  { %5644 = vmatprep.subr.bf16.mxu1 %v7971_v29  ;;  %v8050_v29 = vld [vmem:[%s10410_s5 + $0xac0] ss:$16 sps:$4 sm:$0xff]  }
 0x3b7   :  { %5559 = vmatpush1.bf16.msra.mxu0 %v7966_v33  ;;  %v8053_v33 = vld [vmem:[%s10410_s5 + $0xac8] ss:$16 sps:$4 sm:$0xff]  }
 0x3b8   :  { %5645 = vmatpush1.bf16.msra.mxu1 %v7969_v34  ;;  %5560 = vmatprep.subr.bf16.mxu0 %v7974_v35  ;;  %v8058_v34 = vld [vmem:[%s10410_s5 + $0xae4] ss:$16 sps:$4 sm:$0xff]   ;;  %v8061_v35 = vld [vmem:[%s10410_s5 + $0xaec] ss:$16 sps:$4 sm:$0xff]  }
 0x3b9   :  { %5646 = vmatprep.subr.bf16.mxu1 %v7977_v37  ;;  %v8056_v37 = vld [vmem:[%s10410_s5 + $0xae0] ss:$16 sps:$4 sm:$0xff]  }
 0x3bb   :  { %5561 = vmatpush1.bf16.msra.mxu0 %v7972_v38  ;;  %v8059_v38 = vld [vmem:[%s10410_s5 + $0xae8] ss:$16 sps:$4 sm:$0xff]  }
 0x3bc   :  { %5647 = vmatpush1.bf16.msra.mxu1 %v7975_v39  ;;  %5562 = vmatprep.subr.bf16.mxu0 %v7980_v7  ;;  %v8064_v39 = vld [vmem:[%s10410_s5 + $0xb04] ss:$16 sps:$4 sm:$0xff]   ;;  %v8067_v7 = vld [vmem:[%s10410_s5 + $0xb0c] ss:$16 sps:$4 sm:$0xff]  }
 0x3bd   :  { %5648 = vmatprep.subr.bf16.mxu1 %v7983_v40  ;;  %v8062_v40 = vld [vmem:[%s10410_s5 + $0xb00] ss:$16 sps:$4 sm:$0xff]  }
 0x3bf   :  { %5563 = vmatpush1.bf16.msra.mxu0 %v7978_v31  ;;  %v8065_v31 = vld [vmem:[%s10410_s5 + $0xb08] ss:$16 sps:$4 sm:$0xff]  }
 0x3c0   :  { %5649 = vmatpush1.bf16.msra.mxu1 %v7981_v41  ;;  %5564 = vmatprep.subr.bf16.mxu0 %v7986_v42  ;;  %v8070_v41 = vld [vmem:[%s10410_s5 + $0xb24] ss:$16 sps:$4 sm:$0xff]   ;;  %v8073_v42 = vld [vmem:[%s10410_s5 + $0xb2c] ss:$16 sps:$4 sm:$0xff]  }
 0x3c1   :  { %5650 = vmatprep.subr.bf16.mxu1 %v7989_v32  ;;  %v8068_v32 = vld [vmem:[%s10410_s5 + $0xb20] ss:$16 sps:$4 sm:$0xff]  }
 0x3c3   :  { %5565 = vmatpush1.bf16.msra.mxu0 %v7984_v43  ;;  %v8071_v43 = vld [vmem:[%s10410_s5 + $0xb28] ss:$16 sps:$4 sm:$0xff]  }
 0x3c4   :  { %5651 = vmatpush1.bf16.msra.mxu1 %v7987_v45  ;;  %5566 = vmatprep.subr.bf16.mxu0 %v7992_v46  ;;  %v8076_v45 = vld [vmem:[%s10410_s5 + $0xb44] ss:$16 sps:$4 sm:$0xff]   ;;  %v8079_v46 = vld [vmem:[%s10410_s5 + $0xb4c] ss:$16 sps:$4 sm:$0xff]  }
 0x3c5   :  { %5652 = vmatprep.subr.bf16.mxu1 %v7995_v52  ;;  %v8074_v52 = vld [vmem:[%s10410_s5 + $0xb40] ss:$16 sps:$4 sm:$0xff]  }
 0x3c7   :  { %5567 = vmatpush1.bf16.msra.mxu0 %v7990_v50  ;;  %v8077_v50 = vld [vmem:[%s10410_s5 + $0xb48] ss:$16 sps:$4 sm:$0xff]  }
 0x3c8   :  { %5653 = vmatpush1.bf16.msra.mxu1 %v7993_v8  ;;  %5568 = vmatprep.subr.bf16.mxu0 %v7998_v51  ;;  %v8082_v8 = vld [vmem:[%s10410_s5 + $0xb64] ss:$16 sps:$4 sm:$0xff]   ;;  %v8085_v51 = vld [vmem:[%s10410_s5 + $0xb6c] ss:$16 sps:$4 sm:$0xff]  }
 0x3c9   :  { %5654 = vmatprep.subr.bf16.mxu1 %v8001_v53  ;;  %v8080_v53 = vld [vmem:[%s10410_s5 + $0xb60] ss:$16 sps:$4 sm:$0xff]  }
 0x3cb   :  { %5569 = vmatpush1.bf16.msra.mxu0 %v7996_v54  ;;  %v8083_v54 = vld [vmem:[%s10410_s5 + $0xb68] ss:$16 sps:$4 sm:$0xff]  }
 0x3cc   :  { %5655 = vmatpush1.bf16.msra.mxu1 %v7999_v55  ;;  %5570 = vmatprep.subr.bf16.mxu0 %v8004_v49  ;;  %v8088_v55 = vld [vmem:[%s10410_s5 + $0xb84] ss:$16 sps:$4 sm:$0xff]   ;;  %v8091_v49 = vld [vmem:[%s10410_s5 + $0xb8c] ss:$16 sps:$4 sm:$0xff]  }
 0x3cd   :  { %5656 = vmatprep.subr.bf16.mxu1 %v8007_v56  ;;  %v8086_v56 = vld [vmem:[%s10410_s5 + $0xb80] ss:$16 sps:$4 sm:$0xff]  }
 0x3cf   :  { %5571 = vmatpush1.bf16.msra.mxu0 %v8002_v57  ;;  %v8089_v57 = vld [vmem:[%s10410_s5 + $0xb88] ss:$16 sps:$4 sm:$0xff]  }
 0x3d0   :  { %5657 = vmatpush1.bf16.msra.mxu1 %v8005_v58  ;;  %5572 = vmatprep.subr.bf16.mxu0 %v8010_v59  ;;  %v8094_v58 = vld [vmem:[%s10410_s5 + $0xba4] ss:$16 sps:$4 sm:$0xff]   ;;  %v8097_v59 = vld [vmem:[%s10410_s5 + $0xbac] ss:$16 sps:$4 sm:$0xff]  }
 0x3d1   :  { %5658 = vmatprep.subr.bf16.mxu1 %v8013_v60  ;;  %v8092_v60 = vld [vmem:[%s10410_s5 + $0xba0] ss:$16 sps:$4 sm:$0xff]  }
 0x3d3   :  { %5573 = vmatpush1.bf16.msra.mxu0 %v8008_v61  ;;  %v8095_v61 = vld [vmem:[%s10410_s5 + $0xba8] ss:$16 sps:$4 sm:$0xff]  }
 0x3d4   :  { %5659 = vmatpush1.bf16.msra.mxu1 %v8011_v62  ;;  %5585 = vmatprep.subr.bf16.mxu0 %v8016_v63  ;;  %v8100_v62 = vld [vmem:[%s10410_s5 + $0xbc4] ss:$16 sps:$4 sm:$0xff]   ;;  %v8103_v63 = vld [vmem:[%s10410_s5 + $0xbcc] ss:$16 sps:$4 sm:$0xff]  }
 0x3d5   :  { %5671 = vmatprep.subr.bf16.mxu1 %v8019_v0  ;;  %v8098_v0 = vld [vmem:[%s10410_s5 + $0xbc0] ss:$16 sps:$4 sm:$0xff]  }
 0x3d6   :  { %5575 = vmatmul.mubr.bf16.vlgmr.msra.gmra.mrb[20].mxu0 %v4769_v2 }
 0x3d7   :  { %5661 = vmatmul.mubr.bf16.vlgmr.msra.gmra.mrb[20].mxu1 %v4769_v2  ;;  %5586 = vmatpush1.bf16.msra.mxu0 %v8014_v47  ;;  %v8101_v47 = vld [vmem:[%s10410_s5 + $0xbc8] ss:$16 sps:$4 sm:$0xff]   ;;  %v8109_v2 = vld [vmem:[%s10410_s5 + $0xbec] ss:$16 sps:$4 sm:$0xff]  }
 0x3d8   :  { %5617 = vmatprep.mubr.bf16.mxu0 %v4772_v44  ;;  %5672 = vmatpush1.bf16.msra.mxu1 %v8017_v48  ;;  %v8106_v48 = vld [vmem:[%s10410_s5 + $0xbe4] ss:$16 sps:$4 sm:$0xff]  }
 0x3d9   :  { %5703 = vmatprep.mubr.bf16.mxu1 %v4772_v44  ;;  %5587 = vmatprep.subr.bf16.mxu0 %v8022_v3  ;;  %v8104_v3 = vld [vmem:[%s10410_s5 + $0xbe0] ss:$16 sps:$4 sm:$0xff]   ;;  %v4771_v44 = vld [vmem:[#allocation3 + $0x30] sm:$0xff] }
 0x3da   :  { %5673 = vmatprep.subr.bf16.mxu1 %v8025_v4  ;;  %v8107_v4 = vld [vmem:[%s10410_s5 + $0xbe8] ss:$16 sps:$4 sm:$0xff]  }
 0x3db   :  { %5588 = vmatpush1.bf16.msra.mxu0 %v8020_v5  ;;  %v5722_v5 = vld [vmem:[%s10412_s6] sm:$0xf] }
 0x3dc   :  { %5674 = vmatpush1.bf16.msra.mxu1 %v8023_v9  ;;  %5589 = vmatprep.subr.bf16.mxu0 %v8028_v6  ;;  %v5727_v9 = vrot.slane %v5722_v5, %v8440_v28  ;;  %v5735_v6 = vrot.slane %v5722_v5, %v8456_v36 }
 0x3dd   :  { %5675 = vmatprep.subr.bf16.mxu1 %v8031_v10  ;;  %v5731_v10 = vrot.slane %v5722_v5, %v8446_v30 }
 0x3df   :  { %5590 = vmatpush1.bf16.msra.mxu0 %v8026_v11  ;;  %v5739_v11 = vrot.slane %v5722_v5, %v2798_v14 }
 0x3e0   :  { %5676 = vmatpush1.bf16.msra.mxu1 %v8029_v12  ;;  %5591 = vmatprep.subr.bf16.mxu0 %v8034_v13 }
 0x3e1   :  { %5677 = vmatprep.subr.bf16.mxu1 %v8037_v1 }
 0x3e3   :  { %5592 = vmatpush1.bf16.msra.mxu0 %v8032_v15 }
 0x3e4   :  { %5678 = vmatpush1.bf16.msra.mxu1 %v8035_v17  ;;  %5593 = vmatprep.subr.bf16.mxu0 %v8040_v18 }
 0x3e5   :  { %5679 = vmatprep.subr.bf16.mxu1 %v8043_v20 }
 0x3e7   :  { %5594 = vmatpush1.bf16.msra.mxu0 %v8038_v21 }
 0x3e8   :  { %5680 = vmatpush1.bf16.msra.mxu1 %v8041_v19  ;;  %5595 = vmatprep.subr.bf16.mxu0 %v8046_v22 }
 0x3e9   :  { %5681 = vmatprep.subr.bf16.mxu1 %v8049_v23 }
 0x3eb   :  { %5596 = vmatpush1.bf16.msra.mxu0 %v8044_v24 }
 0x3ec   :  { %5682 = vmatpush1.bf16.msra.mxu1 %v8047_v16  ;;  %5597 = vmatprep.subr.bf16.mxu0 %v8052_v25 }
 0x3ed   :  { %5683 = vmatprep.subr.bf16.mxu1 %v8055_v26 }
 0x3ef   :  { %5598 = vmatpush1.bf16.msra.mxu0 %v8050_v29 }
 0x3f0   :  { %5684 = vmatpush1.bf16.msra.mxu1 %v8053_v33  ;;  %5599 = vmatprep.subr.bf16.mxu0 %v8058_v34 }
 0x3f1   :  { %5685 = vmatprep.subr.bf16.mxu1 %v8061_v35 }
 0x3f3   :  { %5600 = vmatpush1.bf16.msra.mxu0 %v8056_v37 }
 0x3f4   :  { %5686 = vmatpush1.bf16.msra.mxu1 %v8059_v38  ;;  %5601 = vmatprep.subr.bf16.mxu0 %v8064_v39 }
 0x3f5   :  { %5687 = vmatprep.subr.bf16.mxu1 %v8067_v7 }
 0x3f7   :  { %5602 = vmatpush1.bf16.msra.mxu0 %v8062_v40 }
 0x3f8   :  { %5688 = vmatpush1.bf16.msra.mxu1 %v8065_v31  ;;  %5603 = vmatprep.subr.bf16.mxu0 %v8070_v41 }
 0x3f9   :  { %5689 = vmatprep.subr.bf16.mxu1 %v8073_v42 }
 0x3fb   :  { %5604 = vmatpush1.bf16.msra.mxu0 %v8068_v32 }
 0x3fc   :  { %5690 = vmatpush1.bf16.msra.mxu1 %v8071_v43  ;;  %5605 = vmatprep.subr.bf16.mxu0 %v8076_v45 }
 0x3fd   :  { %5691 = vmatprep.subr.bf16.mxu1 %v8079_v46 }
 0x3ff   :  { %5606 = vmatpush1.bf16.msra.mxu0 %v8074_v52 }
 0x400   :  { %5692 = vmatpush1.bf16.msra.mxu1 %v8077_v50  ;;  %5607 = vmatprep.subr.bf16.mxu0 %v8082_v8 }
 0x401   :  { %5693 = vmatprep.subr.bf16.mxu1 %v8085_v51 }
 0x403   :  { %5608 = vmatpush1.bf16.msra.mxu0 %v8080_v53 }
 0x404   :  { %5694 = vmatpush1.bf16.msra.mxu1 %v8083_v54  ;;  %5609 = vmatprep.subr.bf16.mxu0 %v8088_v55 }
 0x405   :  { %5695 = vmatprep.subr.bf16.mxu1 %v8091_v49 }
 0x407   :  { %5610 = vmatpush1.bf16.msra.mxu0 %v8086_v56 }
 0x408   :  { %5696 = vmatpush1.bf16.msra.mxu1 %v8089_v57  ;;  %5611 = vmatprep.subr.bf16.mxu0 %v8094_v58 }
 0x409   :  { %5697 = vmatprep.subr.bf16.mxu1 %v8097_v59 }
 0x40b   :  { %5612 = vmatpush1.bf16.msra.mxu0 %v8092_v60 }
 0x40c   :  { %5698 = vmatpush1.bf16.msra.mxu1 %v8095_v61  ;;  %5613 = vmatprep.subr.bf16.mxu0 %v8100_v62 }
 0x40d   :  { %5699 = vmatprep.subr.bf16.mxu1 %v8103_v63 }
 0x40f   :  { %5614 = vmatpush1.bf16.msra.mxu0 %v8098_v0 }
 0x410   :  { %5700 = vmatpush1.bf16.msra.mxu1 %v8101_v47  ;;  %5615 = vmatprep.subr.bf16.mxu0 %v8106_v48 }
 0x411   :  { %5701 = vmatprep.subr.bf16.mxu1 %v8109_v2 }
 0x413   :  { %5616 = vmatpush1.bf16.msra.mxu0 %v8104_v3 }
 0x414   :  { %5702 = vmatpush1.bf16.msra.mxu1 %v8107_v4 }
 0x416   :  { %5618 = vmatmul.mubr.bf16.vlgmr.msra.gmra.mrb[20].mxu0 %v4771_v44 }
 0x417   :  { %5704 = vmatmul.mubr.bf16.vlgmr.msra.gmra.mrb[20].mxu1 %v4771_v44 }
 0x4e9   :  { %v5619_v12 = vpop.f32.mrb[20].mxu0 }
 0x4ea   :  { %v5744_v13 = vadd.f32 %v5727_v9, %v5619_v12  ;;  %v5705_v1 = vpop.f32.mrb[20].mxu1  ;;  %v5621_v15 = vpop.f32.mrb[21].mxu0 }
 0x4eb   :  { %v5746_v17 = vadd.f32 %v5735_v6, %v5705_v1  ;;  %v5745_v18 = vadd.f32 %v5731_v10, %v5621_v15  ;;  %v5707_v20 = vpop.f32.mrb[21].mxu1  ;;  %v5623_v21 = vpop.f32.mrb[22].mxu0 }
 0x4ec   :  { %v5752_v19 = vmax.f32 %v5744_v13, 0.0  ;;  %v5747_v22 = vadd.f32 %v5739_v11, %v5707_v20  ;;  %v5748_v23 = vadd.f32 %v5727_v9, %v5623_v21  ;;  %v5709_v24 = vpop.f32.mrb[22].mxu1  ;;  %v5625_v28 = vpop.f32.mrb[23].mxu0 }
 0x4ed   :  { %v5754_v16 = vmax.f32 %v5746_v17, 0.0  ;;  %v5753_v36 = vmax.f32 %v5745_v18, 0.0  ;;  %v5750_v25 = vadd.f32 %v5735_v6, %v5709_v24  ;;  %v5749_v30 = vadd.f32 %v5731_v10, %v5625_v28  ;;  %v5711_v26 = vpop.f32.mrb[23].mxu1 }
 0x4ee   :  { %5760 = vst [vmem:[%s10413_s7] sm:$0xff] %v5752_v19  ;;  %v5755_v27 = vmax.f32 %v5747_v22, 0.0  ;;  %v5756_v14 = vmax.f32 %v5748_v23, 0.0  ;;  %v5751_v29 = vadd.f32 %v5739_v11, %v5711_v26 }
 0x4ef   :  { %5762 = vst [vmem:[%s10413_s7 + $0x10] sm:$0xff] %v5754_v16  ;;  %5761 = vst [vmem:[%s10413_s7 + $0x8] sm:$0xff] %v5753_v36  ;;  %v5758_v33 = vmax.f32 %v5750_v25, 0.0  ;;  %v5757_v34 = vmax.f32 %v5749_v30, 0.0 }
 0x4f0   :  { %5763 = vst [vmem:[%s10413_s7 + $0x18] sm:$0xff] %v5755_v27  ;;  %5764 = vst [vmem:[%s10413_s7 + $0x20] sm:$0xff] %v5756_v14  ;;  %v5759_v35 = vmax.f32 %v5751_v29, 0.0 }
 0x4f1   :  { %5766 = vst [vmem:[%s10413_s7 + $0x30] sm:$0xff] %v5758_v33  ;;  %5765 = vst [vmem:[%s10413_s7 + $0x28] sm:$0xff] %v5757_v34 }
 0x4f2   :  { %5767 = vst [vmem:[%s10413_s7 + $0x38] sm:$0xff] %v5759_v35 }

</bundles_post_ra>
